<compile_context>
chip_gen: v6e
topology: v6e:2x2x1
jax: 0.10.0
libtpu: 0.0.40
codegen_flags: <defaults>
</compile_context>

<pallas_src>
import functools

import jax
import jax.numpy as jnp
from jax import lax
from jax.experimental import pallas as pl
from jax.experimental.pallas import tpu as pltpu


# ----------------------------------------------------------------------------
# Fused kernel: B images (one grid step) per invocation.
#   x_ref  : (B, H, W*Cin)          input images, W folded into lanes
#   w1_ref : (W*Cin, W*C)           block-diag 1x1 conv #1 (BN scale folded in)
#   t1_ref : (1, W*C)               BN shift (+conv bias)
#   wct_ref: (W*C, 4*W*C)           ConvTranspose taps that read row p
#   wcb_ref: (W*C, 4*W*C)           ConvTranspose taps that read row p+1
#   t2_ref : (1, 4*W*C)
#   w3_ref : (4*W*C, 4*W*Cout)      block-diag 1x1 conv #3, columns ordered (a,q,b,co)
#   t3_ref : (1, 4*W*Cout)
#   o_ref  : (B, H, 4*W*Cout)       row p holds final rows 2p and 2p+1 back-to-back
# ----------------------------------------------------------------------------
def decoder_block_kernel(x_ref, w1_ref, t1_ref, wct_ref, wcb_ref, t2_ref,
                         w3_ref, t3_ref, o_ref, *, H):
    B = x_ref.shape[0]
    M = B * H
    x = x_ref[...].reshape(M, x_ref.shape[-1])           # layout-preserving (H % 8 == 0)

    # Stage 1: 1x1 conv (BN scale folded into columns) + shift + ReLU.
    y = jnp.dot(x, w1_ref[...], preferred_element_type=jnp.float32)
    y = jnp.maximum(y + t1_ref[...], 0.0)                 # (M, W*C), f32

    # Stage 2: ConvTranspose2d(3x3, stride 2, pad 1, out_pad 1) + shift + ReLU.
    # The q+1 column shift is folded into the weight block structure; the p+1 row
    # shift is an XLU sublane roll plus a per-image boundary mask (row H-1 of each
    # image must not see row 0 of the next image).
    y_nxt = pltpu.roll(y, shift=M - 1, axis=0)            # row r <- row r+1 (wraps)
    row = lax.broadcasted_iota(jnp.int32, (M, 1), 0)
    y_nxt = jnp.where((row % H) != (H - 1), y_nxt, 0.0)

    mm_dt = wct_ref.dtype
    p = jnp.dot(y.astype(mm_dt), wct_ref[...], preferred_element_type=jnp.float32)
    p = p + jnp.dot(y_nxt.astype(mm_dt), wcb_ref[...], preferred_element_type=jnp.float32)
    z = jnp.maximum(p + t2_ref[...], 0.0)                 # (M, 4*W*C), f32

    # Stage 3: 1x1 conv (BN scale folded) + shift + ReLU.  Output columns ordered
    # (a, q, b, co) so each row is exactly the two final output rows 2p and 2p+1.
    f = jnp.dot(z.astype(mm_dt), w3_ref[...], preferred_element_type=jnp.float32)
    f = jnp.maximum(f + t3_ref[...], 0.0)                 # (M, 4*W*Cout)

    o_ref[...] = f.reshape(o_ref.shape).astype(o_ref.dtype)   # single lane-dense store


# ----------------------------------------------------------------------------
# One-time host-side weight folding (BN scale -> weight columns, BN shift + conv
# bias -> shift vectors, W spatial columns -> lane axis via block-diagonal weights).
# ----------------------------------------------------------------------------
def prepare_decoder_params(params, H, W, eps=1e-5, mm_dtype=jnp.float32):
    f32 = jnp.float32
    Cin, C = params['w1'].shape
    Cout = params['w3'].shape[1]

    def fold(g, beta, m, v, conv_bias):
        sc = g / jnp.sqrt(v + eps)
        return sc, beta - m * sc + conv_bias * sc          # conv bias folded into shift

    sc1, sh1 = fold(params['g1'], params['beta1'], params['m1'], params['v1'], params['b1'])
    sc2, sh2 = fold(params['g2'], params['beta2'], params['m2'], params['v2'], params['bt'])
    sc3, sh3 = fold(params['g3'], params['beta3'], params['m3'], params['v3'], params['b3'])

    eye_w = jnp.eye(W, dtype=f32)

    # Stage 1: per-pixel 1x1 conv replicated over the W columns folded into lanes.
    w1_blk = jnp.kron(eye_w, params['w1'].astype(f32)) * jnp.tile(sc1, W)[None, :]
    t1 = jnp.tile(sh1, W)[None, :]

    # Stage 2: ConvTranspose decomposition.  Output pixel (2p+a, 2q+b):
    #   o00 = y[p,q]Wt[1,1]
    #   o01 = y[p,q]Wt[1,2] + y[p,q+1]Wt[1,0]
    #   o10 = y[p,q]Wt[2,1] + y[p+1,q]Wt[0,1]
    #   o11 = y[p,q]Wt[2,2] + y[p,q+1]Wt[2,0] + y[p+1,q]Wt[0,2] + y[p+1,q+1]Wt[0,0]
    # Rows of wc: [ y[p, q_in] | y[p+1, q_in] ] (q-major, C minor).
    # Cols of wc: (q_out, phase s = 2a+b, co).
    wt = params['wt'].astype(f32)                          # (ci, co, kh, kw)
    taps = [  # (row_half, dq = q_in - q_out, kh, kw, phase)
        (0, 0, 1, 1, 0),
        (0, 0, 1, 2, 1), (0, 1, 1, 0, 1),
        (0, 0, 2, 1, 2), (1, 0, 0, 1, 2),
        (0, 0, 2, 2, 3), (0, 1, 2, 0, 3), (1, 0, 0, 2, 3), (1, 1, 0, 0, 3),
    ]
    tapw = jnp.zeros((2, 2, 4, C, C), f32)                 # [half, dq, phase, ci, co]
    for h, dq, kh, kw, s in taps:
        tapw = tapw.at[h, dq, s].set(wt[:, :, kh, kw])
    shift = jnp.stack([eye_w, jnp.eye(W, k=-1, dtype=f32)])  # shift[dq, q_in, q_out]
    wc_blk = jnp.einsum('hdsio,dab->haibso', tapw, shift).reshape(2 * W * C, 4 * W * C)
    wc_blk = wc_blk * jnp.tile(sc2, 4 * W)[None, :]        # BN scale folded into columns
    t2 = jnp.tile(sh2, 4 * W)[None, :]

    # Stage 3: per-(pixel, phase) 1x1 conv; output columns reordered to (a, q, b, co).
    ph = jnp.zeros((4, 2, 2), f32)
    for a in range(2):
        for b in range(2):
            ph = ph.at[2 * a + b, a, b].set(1.0)
    w3_blk = jnp.einsum('qr,sab,io->qsiarbo', eye_w, ph,
                        params['w3'].astype(f32)).reshape(4 * W * C, 4 * W * Cout)
    w3_blk = w3_blk * jnp.tile(sc3, 4 * W)[None, :]
    t3 = jnp.tile(sh3, 4 * W)[None, :]

    return dict(w1=w1_blk.astype(mm_dtype), t1=t1,
                wct=wc_blk[:W * C].astype(mm_dtype),        # taps reading row p
                wcb=wc_blk[W * C:].astype(mm_dtype),        # taps reading row p+1
                t2=t2,
                w3=w3_blk.astype(mm_dtype), t3=t3)


def _pick_block_batch(N, H, max_rows=256):
    """Largest divisor of N with B*H <= max_rows (v6e/v7x MXU row width)."""
    best = 1
    for b in range(1, N + 1):
        if N % b == 0 and b * H <= max_rows:
            best = b
    return best


# ----------------------------------------------------------------------------
# Forward wrapper: one fused pallas_call, pure reshapes only around it.
# ----------------------------------------------------------------------------
def decoder_block_pallas(prep, x, *, block_batch=None):
    """x: (N, H, W, Cin) float32 NHWC. Returns (N, 2H, 2W, n_filters) float32."""
    N, H, W, Cin = x.shape
    wcin = W * Cin
    wc = prep['w1'].shape[1]            # W * C
    outw = prep['w3'].shape[1]          # 4 * W * Cout
    Cout = outw // (4 * W)

    # Lane/sublane tiling requirements for the chosen blocks.
    assert H % 8 == 0 and wcin % 128 == 0 and wc % 128 == 0 and outw % 128 == 0

    B = block_batch if block_batch is not None else _pick_block_batch(N, H)
    assert N % B == 0
    grid = (N // B,)
    # TODO(synk): on v7x (2 TensorCores) cap B so the parallel grid keeps >= 2 steps.

    mm_dtype = prep['w1'].dtype
    x_wide = x.reshape(N, H, wcin).astype(mm_dtype)        # free reshape, W -> lanes

    flops = 2 * N * H * (wcin * wc + 2 * wc * (4 * wc) + (4 * wc) * outw)
    bytes_accessed = int(
        x_wide.size * x_wide.dtype.itemsize
        + sum(prep[k].size * prep[k].dtype.itemsize for k in prep)
        + N * H * outw * 4)
    cost = pl.CostEstimate(flops=int(flops), transcendentals=0,
                           bytes_accessed=bytes_accessed)

    def wspec(a):
        # Constant across the grid -> single VMEM buffer (no wasted double buffer).
        return pl.BlockSpec(a.shape, lambda g: (0, 0), pipeline_mode=pl.Buffered(1))

    out = pl.pallas_call(
        functools.partial(decoder_block_kernel, H=H),
        out_shape=jax.ShapeDtypeStruct((N, H, outw), jnp.float32),
        grid_spec=pltpu.PrefetchScalarGridSpec(
            num_scalar_prefetch=0,
            grid=grid,
            in_specs=[
                pl.BlockSpec((B, H, wcin), lambda g: (g, 0, 0)),
                wspec(prep['w1']), wspec(prep['t1']),
                wspec(prep['wct']), wspec(prep['wcb']), wspec(prep['t2']),
                wspec(prep['w3']), wspec(prep['t3']),
            ],
            out_specs=pl.BlockSpec((B, H, outw), lambda g: (g, 0, 0)),
        ),
        compiler_params=pltpu.CompilerParams(
            dimension_semantics=("parallel",),
            vmem_limit_bytes=32 * 1024 * 1024,
        ),
        cost_estimate=cost,
    )(x_wide, prep['w1'], prep['t1'], prep['wct'], prep['wcb'], prep['t2'],
      prep['w3'], prep['t3'])

    # Row p of `out` holds final rows 2p and 2p+1 back to back -> pure reshape.
    return out.reshape(N, 2 * H, 2 * W, Cout)


# ----------------------------------------------------------------------------
# Pure-JAX reference (for validation)
# ----------------------------------------------------------------------------
def ref_forward(params, x, eps=1e-5):
    def bn(y, g, beta, m, v):
        return (y - m) / jnp.sqrt(v + eps) * g + beta

    y = jnp.einsum('nhwc,cd->nhwd', x, params['w1'],
                   precision=lax.Precision.HIGHEST) + params['b1']
    y = jax.nn.relu(bn(y, params['g1'], params['beta1'], params['m1'], params['v1']))

    # ConvTranspose2d == dilated conv with spatially-flipped, (ci,co)-ordered kernel.
    k = jnp.transpose(params['wt'][:, :, ::-1, ::-1], (2, 3, 0, 1))   # (kh, kw, ci, co)
    y = lax.conv_general_dilated(
        y, k, window_strides=(1, 1), padding=((1, 2), (1, 2)),
        lhs_dilation=(2, 2), rhs_dilation=(1, 1),
        dimension_numbers=('NHWC', 'HWIO', 'NHWC'),
        precision=lax.Precision.HIGHEST) + params['bt']
    y = jax.nn.relu(bn(y, params['g2'], params['beta2'], params['m2'], params['v2']))

    y = jnp.einsum('nhwc,cd->nhwd', y, params['w3'],
                   precision=lax.Precision.HIGHEST) + params['b3']
    y = jax.nn.relu(bn(y, params['g3'], params['beta3'], params['m3'], params['v3']))
    return y


# ----------------------------------------------------------------------------
# Deterministic parameter init (synthetic)
# ----------------------------------------------------------------------------
def init_params(key, in_channels, n_filters):
    C = in_channels // 4
    ks = jax.random.split(key, 20)
    f32 = jnp.float32
    return dict(
        w1=0.1 * jax.random.normal(ks[0], (in_channels, C), f32),
        b1=0.1 * jax.random.normal(ks[1], (C,), f32),
        g1=1.0 + 0.1 * jax.random.normal(ks[2], (C,), f32),
        beta1=0.1 * jax.random.normal(ks[3], (C,), f32),
        m1=0.1 * jax.random.normal(ks[4], (C,), f32),
        v1=jax.random.uniform(ks[5], (C,), f32, minval=0.5, maxval=1.5),
        wt=0.1 * jax.random.normal(ks[6], (C, C, 3, 3), f32),   # ConvTranspose2d (ci, co, kh, kw)
        bt=0.1 * jax.random.normal(ks[7], (C,), f32),
        g2=1.0 + 0.1 * jax.random.normal(ks[8], (C,), f32),
        beta2=0.1 * jax.random.normal(ks[9], (C,), f32),
        m2=0.1 * jax.random.normal(ks[10], (C,), f32),
        v2=jax.random.uniform(ks[11], (C,), f32, minval=0.5, maxval=1.5),
        w3=0.1 * jax.random.normal(ks[12], (C, n_filters), f32),
        b3=0.1 * jax.random.normal(ks[13], (n_filters,), f32),
        g3=1.0 + 0.1 * jax.random.normal(ks[14], (n_filters,), f32),
        beta3=0.1 * jax.random.normal(ks[15], (n_filters,), f32),
        m3=0.1 * jax.random.normal(ks[16], (n_filters,), f32),
        v3=jax.random.uniform(ks[17], (n_filters,), f32, minval=0.5, maxval=1.5),
    )


if __name__ == "__main__":
    N, H, W = 2, 16, 16
    in_channels, n_filters = 32, 16

    key = jax.random.PRNGKey(0)
    kx, kp = jax.random.split(key)
    # layout: NHWC here; the equivalent PyTorch input is NCHW (2, 32, 16, 16).
    x = jax.random.normal(kx, (N, H, W, in_channels), jnp.float32)
    params = init_params(kp, in_channels, n_filters)

    ref = jax.block_until_ready(ref_forward(params, x))
    fwd = jax.jit(decoder_block_pallas)

    ok = True

    # f32 matmul path (exact-semantics path).
    prep32 = prepare_decoder_params(params, H, W, mm_dtype=jnp.float32)
    out32 = jax.block_until_ready(fwd(prep32, x))
    ok &= out32.shape == (N, 2 * H, 2 * W, n_filters)
    ok &= bool(jnp.allclose(out32, ref, atol=5e-4, rtol=5e-4))

    # bf16 matmul-operand path (v6e/v7x MXU-native); BN/ReLU epilogue stays f32.
    prep16 = prepare_decoder_params(params, H, W, mm_dtype=jnp.bfloat16)
    out16 = jax.block_until_ready(fwd(prep16, x))
    ok &= bool(jnp.allclose(out16, ref, atol=5e-2, rtol=5e-2))

    if ok:
        print("KERNEL_OK")
    else:
        print("MISMATCH f32_max_abs_err=", float(jnp.max(jnp.abs(out32 - ref))),
              " bf16_max_abs_err=", float(jnp.max(jnp.abs(out16 - ref))))
</pallas_src>

<mosaic_0001>
module attributes {stable_mosaic.version = 11 : i64} {
  func.func @decoder_block_kernel(%arg0: i32, %arg1: memref<2x16x512xf32, #tpu.memory_space<vmem>>, %arg2: memref<512x128xf32, #tpu.memory_space<vmem>>, %arg3: memref<1x128xf32, #tpu.memory_space<vmem>>, %arg4: memref<128x512xf32, #tpu.memory_space<vmem>>, %arg5: memref<128x512xf32, #tpu.memory_space<vmem>>, %arg6: memref<1x512xf32, #tpu.memory_space<vmem>>, %arg7: memref<512x1024xf32, #tpu.memory_space<vmem>>, %arg8: memref<1x1024xf32, #tpu.memory_space<vmem>>, %arg9: memref<2x16x1024xf32, #tpu.memory_space<vmem>>) attributes {dimension_semantics = [#tpu.dimension_semantics<parallel>], iteration_bounds = array<i64: 1>, scalar_prefetch = 0 : i64, scratch_operands = 0 : i64, tpu.core_type = #tpu.core_type<tc>, window_params = [{transform_indices = @transform_0, window_bounds = array<i64: 2, 16, 512>}, {pipeline_mode = #tpu.pipeline_mode<synchronous>, transform_indices = @transform_1, window_bounds = array<i64: 512, 128>}, {pipeline_mode = #tpu.pipeline_mode<synchronous>, transform_indices = @transform_2, window_bounds = array<i64: 1, 128>}, {pipeline_mode = #tpu.pipeline_mode<synchronous>, transform_indices = @transform_3, window_bounds = array<i64: 128, 512>}, {pipeline_mode = #tpu.pipeline_mode<synchronous>, transform_indices = @transform_4, window_bounds = array<i64: 128, 512>}, {pipeline_mode = #tpu.pipeline_mode<synchronous>, transform_indices = @transform_5, window_bounds = array<i64: 1, 512>}, {pipeline_mode = #tpu.pipeline_mode<synchronous>, transform_indices = @transform_6, window_bounds = array<i64: 512, 1024>}, {pipeline_mode = #tpu.pipeline_mode<synchronous>, transform_indices = @transform_7, window_bounds = array<i64: 1, 1024>}, {transform_indices = @transform_8, window_bounds = array<i64: 2, 16, 1024>}]} {
    %c0 = arith.constant 0 : index
    %c0_0 = arith.constant 0 : index
    %c0_1 = arith.constant 0 : index
    %0 = vector.load %arg1[%c0, %c0_0, %c0_1] : memref<2x16x512xf32, #tpu.memory_space<vmem>>, vector<2x16x512xf32>
    %1 = vector.shape_cast %0 : vector<2x16x512xf32> to vector<32x512xf32>
    %c0_2 = arith.constant 0 : index
    %c0_3 = arith.constant 0 : index
    %2 = vector.load %arg2[%c0_2, %c0_3] : memref<512x128xf32, #tpu.memory_space<vmem>>, vector<512x128xf32>
    %cst = arith.constant dense<0.000000e+00> : vector<32x128xf32>
    %3 = tpu.matmul %1, %2, %cst {dimension_numbers = #tpu.dot_dimension_numbers<[1], [0], [0], [1], [0, 0, 1, 1], [], []>} : vector<32x512xf32>, vector<512x128xf32>, vector<32x128xf32> -> vector<32x128xf32>
    %c0_4 = arith.constant 0 : index
    %c0_5 = arith.constant 0 : index
    %4 = vector.load %arg3[%c0_4, %c0_5] : memref<1x128xf32, #tpu.memory_space<vmem>>, vector<1x128xf32>
    %5 = vector.broadcast %4 : vector<1x128xf32> to vector<32x128xf32>
    %6 = arith.addf %3, %5 : vector<32x128xf32>
    %cst_6 = arith.constant 0.000000e+00 : f32
    %7 = vector.broadcast %cst_6 : f32 to vector<32x128xf32>
    %8 = arith.maximumf %6, %7 : vector<32x128xf32>
    %c31_i32 = arith.constant 31 : i32
    %9 = tpu.dynamic_rotate %8 by %c31_i32 dim 0 : vector<32x128xf32>, i32 -> vector<32x128xf32>
    %10 = tpu.iota {dimensions = array<i32: 0>} : vector<32x1xi32>
    %c16_i32 = arith.constant 16 : i32
    %c0_i32 = arith.constant 0 : i32
    %11 = arith.cmpi eq, %c16_i32, %c0_i32 : i32
    %c1_i32 = arith.constant 1 : i32
    %12 = arith.select %11, %c1_i32, %c16_i32 : i32
    %13 = vector.broadcast %12 : i32 to vector<32x1xi32>
    %14 = arith.remsi %10, %13 : vector<32x1xi32>
    %c0_i32_7 = arith.constant 0 : i32
    %15 = vector.broadcast %c0_i32_7 : i32 to vector<32x1xi32>
    %16 = arith.cmpi ne, %14, %15 : vector<32x1xi32>
    %c0_i32_8 = arith.constant 0 : i32
    %17 = vector.broadcast %c0_i32_8 : i32 to vector<32x1xi32>
    %18 = arith.cmpi slt, %14, %17 : vector<32x1xi32>
    %c0_i32_9 = arith.constant 0 : i32
    %19 = arith.cmpi slt, %12, %c0_i32_9 : i32
    %20 = vector.broadcast %19 : i1 to vector<32x1xi1>
    %21 = vector.broadcast %20 : vector<32x1xi1> to vector<32x1xi1>
    %22 = arith.xori %18, %21 : vector<32x1xi1>
    %23 = arith.andi %22, %16 : vector<32x1xi1>
    %24 = vector.broadcast %12 : i32 to vector<32x1xi32>
    %25 = arith.addi %14, %24 : vector<32x1xi32>
    %26 = arith.select %23, %25, %14 : vector<32x1xi1>, vector<32x1xi32>
    %c15_i32 = arith.constant 15 : i32
    %27 = vector.broadcast %c15_i32 : i32 to vector<32x1xi32>
    %28 = arith.cmpi ne, %26, %27 : vector<32x1xi32>
    %cst_10 = arith.constant 0.000000e+00 : f32
    %29 = vector.shape_cast %28 : vector<32x1xi1> to vector<32x1xi1>
    %30 = vector.broadcast %29 : vector<32x1xi1> to vector<32x128xi1>
    %31 = vector.broadcast %cst_10 : f32 to vector<32x128xf32>
    %32 = arith.select %30, %9, %31 : vector<32x128xi1>, vector<32x128xf32>
    %c0_11 = arith.constant 0 : index
    %c0_12 = arith.constant 0 : index
    %33 = vector.load %arg4[%c0_11, %c0_12] : memref<128x512xf32, #tpu.memory_space<vmem>>, vector<128x512xf32>
    %cst_13 = arith.constant dense<0.000000e+00> : vector<32x512xf32>
    %34 = tpu.matmul %8, %33, %cst_13 {dimension_numbers = #tpu.dot_dimension_numbers<[1], [0], [0], [1], [0, 0, 1, 1], [], []>} : vector<32x128xf32>, vector<128x512xf32>, vector<32x512xf32> -> vector<32x512xf32>
    %c0_14 = arith.constant 0 : index
    %c0_15 = arith.constant 0 : index
    %35 = vector.load %arg5[%c0_14, %c0_15] : memref<128x512xf32, #tpu.memory_space<vmem>>, vector<128x512xf32>
    %cst_16 = arith.constant dense<0.000000e+00> : vector<32x512xf32>
    %36 = tpu.matmul %32, %35, %cst_16 {dimension_numbers = #tpu.dot_dimension_numbers<[1], [0], [0], [1], [0, 0, 1, 1], [], []>} : vector<32x128xf32>, vector<128x512xf32>, vector<32x512xf32> -> vector<32x512xf32>
    %37 = arith.addf %34, %36 : vector<32x512xf32>
    %c0_17 = arith.constant 0 : index
    %c0_18 = arith.constant 0 : index
    %38 = vector.load %arg6[%c0_17, %c0_18] : memref<1x512xf32, #tpu.memory_space<vmem>>, vector<1x512xf32>
    %39 = vector.broadcast %38 : vector<1x512xf32> to vector<32x512xf32>
    %40 = arith.addf %37, %39 : vector<32x512xf32>
    %cst_19 = arith.constant 0.000000e+00 : f32
    %41 = vector.broadcast %cst_19 : f32 to vector<32x512xf32>
    %42 = arith.maximumf %40, %41 : vector<32x512xf32>
    %c0_20 = arith.constant 0 : index
    %c0_21 = arith.constant 0 : index
    %43 = vector.load %arg7[%c0_20, %c0_21] : memref<512x1024xf32, #tpu.memory_space<vmem>>, vector<512x1024xf32>
    %cst_22 = arith.constant dense<0.000000e+00> : vector<32x1024xf32>
    %44 = tpu.matmul %42, %43, %cst_22 {dimension_numbers = #tpu.dot_dimension_numbers<[1], [0], [0], [1], [0, 0, 1, 1], [], []>} : vector<32x512xf32>, vector<512x1024xf32>, vector<32x1024xf32> -> vector<32x1024xf32>
    %c0_23 = arith.constant 0 : index
    %c0_24 = arith.constant 0 : index
    %45 = vector.load %arg8[%c0_23, %c0_24] : memref<1x1024xf32, #tpu.memory_space<vmem>>, vector<1x1024xf32>
    %46 = vector.broadcast %45 : vector<1x1024xf32> to vector<32x1024xf32>
    %47 = arith.addf %44, %46 : vector<32x1024xf32>
    %cst_25 = arith.constant 0.000000e+00 : f32
    %48 = vector.broadcast %cst_25 : f32 to vector<32x1024xf32>
    %49 = arith.maximumf %47, %48 : vector<32x1024xf32>
    %50 = vector.shape_cast %49 : vector<32x1024xf32> to vector<2x16x1024xf32>
    %c0_26 = arith.constant 0 : index
    %c0_27 = arith.constant 0 : index
    %c0_28 = arith.constant 0 : index
    %51 = vector.load %arg9[%c0_26, %c0_27, %c0_28] : memref<2x16x1024xf32, #tpu.memory_space<vmem>>, vector<2x16x1024xf32>
    tpu.vector_store %arg9[%c0_26, %c0_27, %c0_28], %50 {strides = array<i32>} : memref<2x16x1024xf32, #tpu.memory_space<vmem>>, vector<2x16x1024xf32>,
    return
  }
  func.func @transform_0(%arg0: i32) -> (i32, i32, i32) {
    %c0_i32 = arith.constant 0 : i32
    %c0_i32_0 = arith.constant 0 : i32
    %c0_i32_1 = arith.constant 0 : i32
    return %arg0, %c0_i32, %c0_i32_0 : i32, i32, i32
  }
  func.func @transform_1(%arg0: i32) -> (i32, i32) {
    %c0_i32 = arith.constant 0 : i32
    %c0_i32_0 = arith.constant 0 : i32
    %c0_i32_1 = arith.constant 0 : i32
    return %c0_i32, %c0_i32_0 : i32, i32
  }
  func.func @transform_2(%arg0: i32) -> (i32, i32) {
    %c0_i32 = arith.constant 0 : i32
    %c0_i32_0 = arith.constant 0 : i32
    %c0_i32_1 = arith.constant 0 : i32
    return %c0_i32, %c0_i32_0 : i32, i32
  }
  func.func @transform_3(%arg0: i32) -> (i32, i32) {
    %c0_i32 = arith.constant 0 : i32
    %c0_i32_0 = arith.constant 0 : i32
    %c0_i32_1 = arith.constant 0 : i32
    return %c0_i32, %c0_i32_0 : i32, i32
  }
  func.func @transform_4(%arg0: i32) -> (i32, i32) {
    %c0_i32 = arith.constant 0 : i32
    %c0_i32_0 = arith.constant 0 : i32
    %c0_i32_1 = arith.constant 0 : i32
    return %c0_i32, %c0_i32_0 : i32, i32
  }
  func.func @transform_5(%arg0: i32) -> (i32, i32) {
    %c0_i32 = arith.constant 0 : i32
    %c0_i32_0 = arith.constant 0 : i32
    %c0_i32_1 = arith.constant 0 : i32
    return %c0_i32, %c0_i32_0 : i32, i32
  }
  func.func @transform_6(%arg0: i32) -> (i32, i32) {
    %c0_i32 = arith.constant 0 : i32
    %c0_i32_0 = arith.constant 0 : i32
    %c0_i32_1 = arith.constant 0 : i32
    return %c0_i32, %c0_i32_0 : i32, i32
  }
  func.func @transform_7(%arg0: i32) -> (i32, i32) {
    %c0_i32 = arith.constant 0 : i32
    %c0_i32_0 = arith.constant 0 : i32
    %c0_i32_1 = arith.constant 0 : i32
    return %c0_i32, %c0_i32_0 : i32, i32
  }
  func.func @transform_8(%arg0: i32) -> (i32, i32, i32) {
    %c0_i32 = arith.constant 0 : i32
    %c0_i32_0 = arith.constant 0 : i32
    %c0_i32_1 = arith.constant 0 : i32
    return %arg0, %c0_i32, %c0_i32_0 : i32, i32, i32
  }
}

</mosaic_0001>

<bundles_post_ra>
// kernel: decoder_block_pallas.1
= control target key start
LH: loop header
LB: loop body
LE: loop exit
PB: predicated region body
PF: predicated region fallthrough
CT: control target
= control target key end

     0   :  { %13 = vsyncpa [#allocation3], 0  ;;  %s3052_s0 = inlined_call_operand.vmem [shape: f32[2,16,512], index: 0, kind: input, shape index: {}]   ;;  %s3053_s1 = inlined_call_operand.hbm [shape: f32[512,128], index: 1, kind: input, shape index: {}]   ;;  %s3054_s2 = inlined_call_operand.hbm [shape: f32[1,128], index: 2, kind: input, shape index: {}]   ;;  %s3055_s3 = inlined_call_operand.hbm [shape: f32[128,512], index: 3, kind: input, shape index: {}]   ;;  %s3056_s4 = inlined_call_operand.hbm [shape: f32[128,512], index: 4, kind: input, shape index: {}]   ;;  %s3057_s5 = inlined_call_operand.hbm [shape: f32[1,512], index: 5, kind: input, shape index: {}]   ;;  %s3058_s6 = inlined_call_operand.hbm [shape: f32[512,1024], index: 6, kind: input, shape index: {}]   ;;  %s3059_s7 = inlined_call_operand.hbm [shape: f32[1,1024], index: 7, kind: input, shape index: {}]   ;;  %s3060_s8 = inlined_call_operand.vmem [shape: f32[2,16,1024], index: 8, kind: output, shape index: {}]  }
   0x1   :  { %14 = vsyncpa [#allocation5], 0 }
   0x2   :  { %15 = vsyncpa [#allocation8], 0 }
   0x3   :  { %16 = vsyncpa [#allocation11], 0  ;;  %s2588_s27 = smov [#allocation4]  }
   0x4   :  { %s37_s28 = sshll.u32 %s2588_s27, 4  ;;  %s38_s28 = int_to_ptr.vmem [resolvable:$true] %s37_s28 }
   0x5   :  { %s2448_s29 = scalar_lea.vmem %s38_s28, 16  ;;  %s2452_s30 = scalar_lea.vmem %s38_s28, 32 }
   0x6   :  { %p2449_p0 = scmp.ne.s32.totalorder %s38_s28, %s2448_s29  ;;  %p2453_p1 = scmp.lt.s32.totalorder %s38_s28, %s38_s28 }
   0x7   :  { %p2454_p2 = scmp.lt.s32.totalorder %s2452_s30, %s2448_s29 }
   0x9   :  { %p2455_p3 = por %p2454_p2, %p2453_p1 }
   0xb   :  { %p2456_p4 = pnand %p2455_p3, %p2449_p0 }
   0xd   :  { %2459 = shalt.err (!%p2456_p4)
}
   0xe   :  { %40 = dma.hbm_to_vmem [thread:$0]  %s3054_s2, 16, %s38_s28, [#allocation5]  }
   0xf   :  { %s2589_s11 = smov [#allocation7]   ;;  %s2590_s13 = smov [#allocation10]  }
  0x10   :  { %s58_s12 = sshll.u32 %s2589_s11, 4  ;;  %s80_s14 = sshll.u32 %s2590_s13, 4  ;;  %s59_s12 = int_to_ptr.vmem [resolvable:$true] %s58_s12  ;;  %s81_s14 = int_to_ptr.vmem [resolvable:$true] %s80_s14 }
  0x11   :  { %s2468_s15 = scalar_lea.vmem %s59_s12, 8192  ;;  %p2473_p6 = scmp.lt.s32.totalorder %s59_s12, %s59_s12 }
  0x12   :  { %p2469_p5 = scmp.ne.s32.totalorder %s59_s12, %s2468_s15  ;;  %p2474_p7 = scmp.lt.s32.totalorder %s2468_s15, %s2468_s15 }
  0x14   :  { %p2475_p8 = por %p2474_p7, %p2473_p6 }
  0x16   :  { %p2476_p9 = pnand %p2475_p8, %p2469_p5 }
  0x18   :  { %2479 = shalt.err (!%p2476_p9)
}
  0x19   :  { %s2591_s16 = smov 512   ;;  %s2592_s17 = smov 32  }
  0x1a   :  { %64 = dma.hbm_to_vmem [thread:$0]  %s3056_s4, 8192, %s59_s12, [#allocation8], %s2591_s16, %s2591_s16, %s2592_s17  }
  0x1b   :  { %s2488_s2 = scalar_lea.vmem %s81_s14, 65536  ;;  %p2493_p11 = scmp.lt.s32.totalorder %s81_s14, %s81_s14 }
  0x1c   :  { %p2489_p10 = scmp.ne.s32.totalorder %s81_s14, %s2488_s2  ;;  %p2494_p12 = scmp.lt.s32.totalorder %s2488_s2, %s2488_s2 }
  0x1e   :  { %p2495_p13 = por %p2494_p12, %p2493_p11 }
  0x20   :  { %p2496_p0 = pnand %p2495_p13, %p2489_p10 }
  0x22   :  { %2499 = shalt.err (!%p2496_p0)
}
  0x23   :  { %s2593_s20 = smov 1024   ;;  %s2594_s21 = smov 64  }
  0x24   :  { %86 = dma.hbm_to_vmem [thread:$0]  %s3058_s6, 65536, %s81_s14, [#allocation11], %s2593_s20, %s2593_s20, %s2594_s21  }
  0x25   :  { %s2595_s24 = smov [#allocation2]  }
  0x26   :  { %s24_s25 = sshll.u32 %s2595_s24, 4  ;;  %s25_s25 = int_to_ptr.vmem [resolvable:$true] %s24_s25 }
  0x27   :  { %s2508_s26 = scalar_lea.vmem %s25_s25, 8192  ;;  %p2513_p2 = scmp.lt.s32.totalorder %s25_s25, %s25_s25 }
  0x28   :  { %p2509_p1 = scmp.ne.s32.totalorder %s25_s25, %s2508_s26  ;;  %p2514_p3 = scmp.lt.s32.totalorder %s2508_s26, %s2508_s26 }
  0x2a   :  { %p2515_p4 = por %p2514_p3, %p2513_p2 }
  0x2c   :  { %p2516_p5 = pnand %p2515_p4, %p2509_p1 }
  0x2e   :  { %2519 = shalt.err (!%p2516_p5)
}
  0x2f   :  { %s2596_s4 = smov 128   ;;  %s2597_s27 = smov 8  }
  0x30   :  { %30 = dma.hbm_to_vmem [thread:$0]  %s3053_s1, 8192, %s25_s25, [#allocation3], %s2596_s4, %s2596_s4, %s2597_s27  }
  0x31   :  { %s2598_s30 = smov [#allocation6]   ;;  %s2599_s10 = smov [#allocation9]  }
  0x32   :  { %s46_s9 = sshll.u32 %s2598_s30, 4  ;;  %s71_s6 = sshll.u32 %s2599_s10, 4  ;;  %s47_s9 = int_to_ptr.vmem [resolvable:$true] %s46_s9  ;;  %s72_s6 = int_to_ptr.vmem [resolvable:$true] %s71_s6 }
  0x33   :  { %s2528_s11 = scalar_lea.vmem %s47_s9, 8192  ;;  %p2533_p7 = scmp.lt.s32.totalorder %s47_s9, %s47_s9 }
  0x34   :  { %p2529_p6 = scmp.ne.s32.totalorder %s47_s9, %s2528_s11  ;;  %p2534_p8 = scmp.lt.s32.totalorder %s2528_s11, %s2528_s11 }
  0x36   :  { %p2535_p9 = por %p2534_p8, %p2533_p7 }
  0x38   :  { %p2536_p10 = pnand %p2535_p9, %p2529_p6 }
  0x3a   :  { %2539 = shalt.err (!%p2536_p10)
}
  0x3b   :  { %52 = dma.hbm_to_vmem [thread:$0]  %s3055_s3, 8192, %s47_s9, [#allocation5], %s2591_s16, %s2591_s16, %s2592_s17  }
  0x3c   :  { %s2548_s1 = scalar_lea.vmem %s72_s6, 64  ;;  %p2553_p12 = scmp.lt.s32.totalorder %s72_s6, %s72_s6 }
  0x3d   :  { %p2549_p11 = scmp.ne.s32.totalorder %s72_s6, %s2548_s1  ;;  %p2554_p13 = scmp.lt.s32.totalorder %s2548_s1, %s2548_s1 }
  0x3f   :  { %p2555_p0 = por %p2554_p13, %p2553_p12 }
  0x41   :  { %p2556_p1 = pnand %p2555_p0, %p2549_p11 }
  0x43   :  { %2559 = shalt.err (!%p2556_p1)
}
  0x44   :  { %74 = dma.hbm_to_vmem [thread:$0]  %s3057_s5, 64, %s72_s6, [#allocation8]  }
  0x45   :  { %s2600_s18 = smov [#allocation12]  }
  0x46   :  { %s93_s19 = sshll.u32 %s2600_s18, 4  ;;  %s94_s19 = int_to_ptr.vmem [resolvable:$true] %s93_s19 }
  0x47   :  { %s2568_s2 = scalar_lea.vmem %s94_s19, 128  ;;  %p2573_p3 = scmp.lt.s32.totalorder %s94_s19, %s94_s19 }
  0x48   :  { %p2569_p2 = scmp.ne.s32.totalorder %s94_s19, %s2568_s2  ;;  %p2574_p4 = scmp.lt.s32.totalorder %s2568_s2, %s2568_s2 }
  0x4a   :  { %p2575_p5 = por %p2574_p4, %p2573_p3 }
  0x4c   :  { %p2576_p6 = pnand %p2575_p5, %p2569_p2 }
  0x4e   :  { %2579 = shalt.err (!%p2576_p6)
}
  0x4f   :  { %96 = dma.hbm_to_vmem [thread:$0]  %s3059_s7, 128, %s94_s19, [#allocation11]  }
  0x50   :  { %2580 = dma.done.wait [#allocation3], 8192  }
  0x51   :  { %2581 = vsyncadd [#allocation3], 4294959104 }
  0x52   :  { %2582 = dma.done.wait [#allocation5], 8208  }
  0x53   :  { %2583 = vsyncadd [#allocation5], 4294959088 }
  0x54   :  { %2584 = dma.done.wait [#allocation8], 8256  }
  0x55   :  { %2585 = vsyncadd [#allocation8], 4294959040 }
  0x56   :  { %2586 = dma.done.wait [#allocation11], 65664  }
  0x57   :  { %2587 = vsyncadd [#allocation11], 4294901632  ;;  %v165_v0 = vld [vmem:[#allocation2 + $0xf8] sm:$0xff]  ;;  %v164_v4 = vld [vmem:[#allocation2 + $0xf0] sm:$0xff] }
  0x58   :  { %v197_v1 = vld [vmem:[#allocation2 + $0x1f8] sm:$0xff]  ;;  %2338 = vmatprep.subr.mxu0 %v165_v0  ;;  %v196_v5 = vld [vmem:[#allocation2 + $0x1f0] sm:$0xff]  ;;  %v163_v8 = vld [vmem:[#allocation2 + $0xe8] sm:$0xff] }
  0x59   :  { %v149_v2 = vld [vmem:[#allocation2 + $0x78] sm:$0xff]  ;;  %2382 = vmatprep.subr.mxu1 %v197_v1  ;;  %v148_v6 = vld [vmem:[#allocation2 + $0x70] sm:$0xff]  ;;  %v195_v9 = vld [vmem:[#allocation2 + $0x1e8] sm:$0xff] }
  0x5a   :  { %v181_v3 = vld [vmem:[#allocation2 + $0x178] sm:$0xff]  ;;  %2339 = vmatpush3.msra.mxu0 %v149_v2  ;;  %v180_v7 = vld [vmem:[#allocation2 + $0x170] sm:$0xff]  ;;  %v147_v10 = vld [vmem:[#allocation2 + $0x68] sm:$0xff] }
  0x5b   :  { %2383 = vmatpush3.msra.mxu1 %v181_v3  ;;  %2340 = vmatprep.subr.mxu0 %v164_v4  ;;  %v179_v11 = vld [vmem:[#allocation2 + $0x168] sm:$0xff]  ;;  %v162_v12 = vld [vmem:[#allocation2 + $0xe0] sm:$0xff]  ;;  %v161_v16 = vld [vmem:[#allocation2 + $0xd8] sm:$0xff] }
  0x5c   :  { %2384 = vmatprep.subr.mxu1 %v196_v5  ;;  %2341 = vmatpush3.msra.mxu0 %v148_v6  ;;  %v194_v13 = vld [vmem:[#allocation2 + $0x1e0] sm:$0xff]  ;;  %v193_v17 = vld [vmem:[#allocation2 + $0x1d8] sm:$0xff]  ;;  %v160_v20 = vld [vmem:[#allocation2 + $0xd0] sm:$0xff] }
  0x5d   :  { %2385 = vmatpush3.msra.mxu1 %v180_v7  ;;  %2342 = vmatprep.subr.mxu0 %v163_v8  ;;  %v146_v14 = vld [vmem:[#allocation2 + $0x60] sm:$0xff]  ;;  %v145_v18 = vld [vmem:[#allocation2 + $0x58] sm:$0xff]  ;;  %v192_v21 = vld [vmem:[#allocation2 + $0x1d0] sm:$0xff] }
  0x5e   :  { %2386 = vmatprep.subr.mxu1 %v195_v9  ;;  %v178_v15 = vld [vmem:[#allocation2 + $0x160] sm:$0xff]  ;;  %2343 = vmatpush3.msra.mxu0 %v147_v10  ;;  %v177_v19 = vld [vmem:[#allocation2 + $0x158] sm:$0xff]  ;;  %v144_v22 = vld [vmem:[#allocation2 + $0x50] sm:$0xff] }
  0x5f   :  { %2387 = vmatpush3.msra.mxu1 %v179_v11  ;;  %2344 = vmatprep.subr.mxu0 %v162_v12  ;;  %v176_v23 = vld [vmem:[#allocation2 + $0x150] sm:$0xff]  ;;  %v159_v24 = vld [vmem:[#allocation2 + $0xc8] sm:$0xff]  ;;  %v158_v28 = vld [vmem:[#allocation2 + $0xc0] sm:$0xff] }
  0x60   :  { %2388 = vmatprep.subr.mxu1 %v194_v13  ;;  %2345 = vmatpush3.msra.mxu0 %v146_v14  ;;  %v191_v25 = vld [vmem:[#allocation2 + $0x1c8] sm:$0xff]  ;;  %v190_v29 = vld [vmem:[#allocation2 + $0x1c0] sm:$0xff]  ;;  %v157_v32 = vld [vmem:[#allocation2 + $0xb8] sm:$0xff] }
  0x61   :  { %2389 = vmatpush3.msra.mxu1 %v178_v15  ;;  %2346 = vmatprep.subr.mxu0 %v161_v16  ;;  %v143_v26 = vld [vmem:[#allocation2 + $0x48] sm:$0xff]  ;;  %v142_v30 = vld [vmem:[#allocation2 + $0x40] sm:$0xff]  ;;  %v189_v33 = vld [vmem:[#allocation2 + $0x1b8] sm:$0xff] }
  0x62   :  { %2390 = vmatprep.subr.mxu1 %v193_v17  ;;  %2347 = vmatpush3.msra.mxu0 %v145_v18  ;;  %v175_v27 = vld [vmem:[#allocation2 + $0x148] sm:$0xff]  ;;  %v174_v31 = vld [vmem:[#allocation2 + $0x140] sm:$0xff]  ;;  %v141_v34 = vld [vmem:[#allocation2 + $0x38] sm:$0xff] }
  0x63   :  { %2391 = vmatpush3.msra.mxu1 %v177_v19  ;;  %2348 = vmatprep.subr.mxu0 %v160_v20  ;;  %v173_v35 = vld [vmem:[#allocation2 + $0x138] sm:$0xff]  ;;  %v156_v36 = vld [vmem:[#allocation2 + $0xb0] sm:$0xff]  ;;  %v155_v40 = vld [vmem:[#allocation2 + $0xa8] sm:$0xff] }
  0x64   :  { %2392 = vmatprep.subr.mxu1 %v192_v21  ;;  %2349 = vmatpush3.msra.mxu0 %v144_v22  ;;  %v188_v37 = vld [vmem:[#allocation2 + $0x1b0] sm:$0xff]  ;;  %v187_v41 = vld [vmem:[#allocation2 + $0x1a8] sm:$0xff]  ;;  %v154_v44 = vld [vmem:[#allocation2 + $0xa0] sm:$0xff] }
  0x65   :  { %2393 = vmatpush3.msra.mxu1 %v176_v23  ;;  %2350 = vmatprep.subr.mxu0 %v159_v24  ;;  %v140_v38 = vld [vmem:[#allocation2 + $0x30] sm:$0xff]  ;;  %v139_v42 = vld [vmem:[#allocation2 + $0x28] sm:$0xff]  ;;  %v186_v45 = vld [vmem:[#allocation2 + $0x1a0] sm:$0xff] }
  0x66   :  { %2394 = vmatprep.subr.mxu1 %v191_v25  ;;  %2351 = vmatpush3.msra.mxu0 %v143_v26  ;;  %v172_v39 = vld [vmem:[#allocation2 + $0x130] sm:$0xff]  ;;  %v171_v43 = vld [vmem:[#allocation2 + $0x128] sm:$0xff]  ;;  %v138_v46 = vld [vmem:[#allocation2 + $0x20] sm:$0xff] }
  0x67   :  { %2395 = vmatpush3.msra.mxu1 %v175_v27  ;;  %2352 = vmatprep.subr.mxu0 %v158_v28  ;;  %v170_v47 = vld [vmem:[#allocation2 + $0x120] sm:$0xff]  ;;  %v153_v48 = vld [vmem:[#allocation2 + $0x98] sm:$0xff]  ;;  %v152_v52 = vld [vmem:[#allocation2 + $0x90] sm:$0xff] }
  0x68   :  { %2396 = vmatprep.subr.mxu1 %v190_v29  ;;  %2353 = vmatpush3.msra.mxu0 %v142_v30  ;;  %v185_v49 = vld [vmem:[#allocation2 + $0x198] sm:$0xff]  ;;  %v184_v53 = vld [vmem:[#allocation2 + $0x190] sm:$0xff]  ;;  %v151_v56 = vld [vmem:[#allocation2 + $0x88] sm:$0xff] }
  0x69   :  { %2397 = vmatpush3.msra.mxu1 %v174_v31  ;;  %2354 = vmatprep.subr.mxu0 %v157_v32  ;;  %v137_v50 = vld [vmem:[#allocation2 + $0x18] sm:$0xff]  ;;  %v136_v54 = vld [vmem:[#allocation2 + $0x10] sm:$0xff]  ;;  %v183_v57 = vld [vmem:[#allocation2 + $0x188] sm:$0xff] }
  0x6a   :  { %2398 = vmatprep.subr.mxu1 %v189_v33  ;;  %2355 = vmatpush3.msra.mxu0 %v141_v34  ;;  %v169_v51 = vld [vmem:[#allocation2 + $0x118] sm:$0xff]  ;;  %v168_v55 = vld [vmem:[#allocation2 + $0x110] sm:$0xff]  ;;  %v135_v58 = vld [vmem:[#allocation2 + $0x8] sm:$0xff] }
  0x6b   :  { %2399 = vmatpush3.msra.mxu1 %v173_v35  ;;  %2356 = vmatprep.subr.mxu0 %v156_v36  ;;  %v167_v59 = vld [vmem:[#allocation2 + $0x108] sm:$0xff]  ;;  %v150_v60 = vld [vmem:[#allocation2 + $0x80] sm:$0xff]  ;;  %v121_v1 = vld [vmem:[%s3052_s0 + $0x18] sm:$0xff] }
  0x6c   :  { %2400 = vmatprep.subr.mxu1 %v188_v37  ;;  %2357 = vmatpush3.msra.mxu0 %v140_v38  ;;  %v182_v61 = vld [vmem:[#allocation2 + $0x180] sm:$0xff]  ;;  %v119_v63 = vld [vmem:[%s3052_s0 + $0x8] sm:$0xff]  ;;  %v120_v3 = vld [vmem:[%s3052_s0 + $0x10] sm:$0xff] }
  0x6d   :  { %2401 = vmatpush3.msra.mxu1 %v172_v39  ;;  %2358 = vmatprep.subr.mxu0 %v155_v40  ;;  %v134_v62 = vld [vmem:[#allocation2] sm:$0xff]  ;;  %v123_v4 = vld [vmem:[%s3052_s0 + $0x28] sm:$0xff]  ;;  %v125_v5 = vld [vmem:[%s3052_s0 + $0x38] sm:$0xff] }
  0x6e   :  { %2402 = vmatprep.subr.mxu1 %v187_v41  ;;  %2359 = vmatpush3.msra.mxu0 %v139_v42  ;;  %v166_v0 = vld [vmem:[#allocation2 + $0x100] sm:$0xff]  ;;  %v582_v6 = vld [vmem:[#allocation7 + $0x1e8] sm:$0xff]  ;;  %v583_v9 = vld [vmem:[#allocation7 + $0x1f0] sm:$0xff] }
  0x6f   :  { %2403 = vmatpush3.msra.mxu1 %v171_v43  ;;  %2360 = vmatprep.subr.mxu0 %v154_v44  ;;  %v118_v2 = vld [vmem:[%s3052_s0] sm:$0xff]  ;;  %v124_v11 = vld [vmem:[%s3052_s0 + $0x30] sm:$0xff]  ;;  %v127_v12 = vld [vmem:[%s3052_s0 + $0x48] sm:$0xff] }
  0x70   :  { %2404 = vmatprep.subr.mxu1 %v186_v45  ;;  %2361 = vmatpush3.msra.mxu0 %v138_v46  ;;  %v584_v7 = vld [vmem:[#allocation7 + $0x1f8] sm:$0xff]  ;;  %v581_v8 = vld [vmem:[#allocation7 + $0x1e0] sm:$0xff]  ;;  %v578_v14 = vld [vmem:[#allocation7 + $0x1c8] sm:$0xff] }
  0x71   :  { %2405 = vmatpush3.msra.mxu1 %v170_v47  ;;  %2362 = vmatprep.subr.mxu0 %v153_v48  ;;  %v122_v10 = vld [vmem:[%s3052_s0 + $0x20] sm:$0xff]  ;;  %v129_v13 = vld [vmem:[%s3052_s0 + $0x58] sm:$0xff]  ;;  %v128_v19 = vld [vmem:[%s3052_s0 + $0x50] sm:$0xff] }
  0x72   :  { %2406 = vmatprep.subr.mxu1 %v185_v49  ;;  %2363 = vmatpush3.msra.mxu0 %v137_v50  ;;  %v580_v15 = vld [vmem:[#allocation7 + $0x1d8] sm:$0xff]  ;;  %v577_v16 = vld [vmem:[#allocation7 + $0x1c0] sm:$0xff]  ;;  %v579_v17 = vld [vmem:[#allocation7 + $0x1d0] sm:$0xff] }
  0x73   :  { %2407 = vmatpush3.msra.mxu1 %v169_v51  ;;  %2364 = vmatprep.subr.mxu0 %v152_v52  ;;  %v126_v18 = vld [vmem:[%s3052_s0 + $0x40] sm:$0xff]  ;;  %v131_v20 = vld [vmem:[%s3052_s0 + $0x68] sm:$0xff]  ;;  %v133_v21 = vld [vmem:[%s3052_s0 + $0x78] sm:$0xff] }
  0x74   :  { %2408 = vmatprep.subr.mxu1 %v184_v53  ;;  %2365 = vmatpush3.msra.mxu0 %v136_v54  ;;  %v574_v22 = vld [vmem:[#allocation7 + $0x1a8] sm:$0xff]  ;;  %v576_v23 = vld [vmem:[#allocation7 + $0x1b8] sm:$0xff]  ;;  %v573_v24 = vld [vmem:[#allocation7 + $0x1a0] sm:$0xff] }
  0x75   :  { %2409 = vmatpush3.msra.mxu1 %v168_v55  ;;  %2366 = vmatprep.subr.mxu0 %v151_v56  ;;  %v575_v25 = vld [vmem:[#allocation7 + $0x1b0] sm:$0xff]  ;;  %v130_v26 = vld [vmem:[%s3052_s0 + $0x60] sm:$0xff]  ;;  %v570_v28 = vld [vmem:[#allocation7 + $0x188] sm:$0xff] }
  0x76   :  { %2410 = vmatprep.subr.mxu1 %v183_v57  ;;  %2367 = vmatpush3.msra.mxu0 %v135_v58  ;;  %v132_v27 = vld [vmem:[%s3052_s0 + $0x70] sm:$0xff]  ;;  %v572_v29 = vld [vmem:[#allocation7 + $0x198] sm:$0xff]  ;;  %v569_v30 = vld [vmem:[#allocation7 + $0x180] sm:$0xff] }
  0x77   :  { %2411 = vmatpush3.msra.mxu1 %v167_v59  ;;  %2368 = vmatprep.subr.mxu0 %v150_v60  ;;  %v571_v31 = vld [vmem:[#allocation7 + $0x190] sm:$0xff]  ;;  %v566_v32 = vld [vmem:[#allocation7 + $0x168] sm:$0xff]  ;;  %v568_v33 = vld [vmem:[#allocation7 + $0x178] sm:$0xff] }
  0x78   :  { %2412 = vmatprep.subr.mxu1 %v182_v61  ;;  %2369 = vmatpush3.msra.mxu0 %v134_v62  ;;  %v565_v34 = vld [vmem:[#allocation7 + $0x160] sm:$0xff]  ;;  %v567_v35 = vld [vmem:[#allocation7 + $0x170] sm:$0xff]  ;;  %v562_v36 = vld [vmem:[#allocation7 + $0x148] sm:$0xff] }
  0x79   :  { %269 = vmatprep.mubr.f32.mxu0 %v119_v63  ;;  %2413 = vmatpush3.msra.mxu1 %v166_v0  ;;  %v564_v37 = vld [vmem:[#allocation7 + $0x158] sm:$0xff]  ;;  %v561_v38 = vld [vmem:[#allocation7 + $0x140] sm:$0xff]  ;;  %v563_v39 = vld [vmem:[#allocation7 + $0x150] sm:$0xff] }
  0x7a   :  { %354 = vmatprep.mubr.f32.mxu1 %v121_v1  ;;  %270 = vmatmul.mubr.f32.vlgmr.msra.gmra.mxu0 %v118_v2  ;;  %v558_v40 = vld [vmem:[#allocation7 + $0x128] sm:$0xff]  ;;  %v560_v41 = vld [vmem:[#allocation7 + $0x138] sm:$0xff]  ;;  %v557_v42 = vld [vmem:[#allocation7 + $0x120] sm:$0xff] }
  0x7b   :  { %355 = vmatmul.mubr.f32.vlgmr.msra.gmra.mxu1 %v120_v3  ;;  %274 = vmatprep.mubr.f32.mxu0 %v123_v4  ;;  %v559_v43 = vld [vmem:[#allocation7 + $0x130] sm:$0xff]  ;;  %v554_v44 = vld [vmem:[#allocation7 + $0x108] sm:$0xff]  ;;  %v556_v45 = vld [vmem:[#allocation7 + $0x118] sm:$0xff] }
  0x7c   :  { %359 = vmatprep.mubr.f32.mxu1 %v125_v5  ;;  %585 = vmatprep.subr.mxu0 %v582_v6  ;;  %v553_v46 = vld [vmem:[#allocation7 + $0x100] sm:$0xff]  ;;  %v555_v47 = vld [vmem:[#allocation7 + $0x110] sm:$0xff]  ;;  %v550_v48 = vld [vmem:[#allocation7 + $0xe8] sm:$0xff] }
  0x7d   :  { %674 = vmatprep.subr.mxu1 %v584_v7  ;;  %586 = vmatpush1.msra.mxu0 %v581_v8  ;;  %v552_v49 = vld [vmem:[#allocation7 + $0xf8] sm:$0xff]  ;;  %v549_v50 = vld [vmem:[#allocation7 + $0xe0] sm:$0xff]  ;;  %v551_v51 = vld [vmem:[#allocation7 + $0xf0] sm:$0xff] }
  0x7e   :  { %675 = vmatpush1.msra.mxu1 %v583_v9  ;;  %275 = vmatmul.mubr.f32.gmra.mxu0 %v122_v10  ;;  %v546_v52 = vld [vmem:[#allocation7 + $0xc8] sm:$0xff]  ;;  %v548_v53 = vld [vmem:[#allocation7 + $0xd8] sm:$0xff]  ;;  %v545_v54 = vld [vmem:[#allocation7 + $0xc0] sm:$0xff] }
  0x7f   :  { %360 = vmatmul.mubr.f32.gmra.mxu1 %v124_v11  ;;  %279 = vmatprep.mubr.f32.mxu0 %v127_v12  ;;  %v547_v55 = vld [vmem:[#allocation7 + $0xd0] sm:$0xff]  ;;  %v542_v56 = vld [vmem:[#allocation7 + $0xa8] sm:$0xff]  ;;  %v544_v57 = vld [vmem:[#allocation7 + $0xb8] sm:$0xff] }
  0x80   :  { %364 = vmatprep.mubr.f32.mxu1 %v129_v13  ;;  %587 = vmatprep.subr.mxu0 %v578_v14  ;;  %v541_v58 = vld [vmem:[#allocation7 + $0xa0] sm:$0xff]  ;;  %v543_v59 = vld [vmem:[#allocation7 + $0xb0] sm:$0xff]  ;;  %v538_v60 = vld [vmem:[#allocation7 + $0x88] sm:$0xff] }
  0x81   :  { %676 = vmatprep.subr.mxu1 %v580_v15  ;;  %588 = vmatpush1.msra.mxu0 %v577_v16  ;;  %v540_v61 = vld [vmem:[#allocation7 + $0x98] sm:$0xff]  ;;  %v537_v62 = vld [vmem:[#allocation7 + $0x80] sm:$0xff]  ;;  %v539_v63 = vld [vmem:[#allocation7 + $0x90] sm:$0xff] }
  0x82   :  { %677 = vmatpush1.msra.mxu1 %v579_v17  ;;  %280 = vmatmul.mubr.f32.gmra.mxu0 %v126_v18  ;;  %v534_v0 = vld [vmem:[#allocation7 + $0x68] sm:$0xff]  ;;  %v536_v1 = vld [vmem:[#allocation7 + $0x78] sm:$0xff]  ;;  %v533_v2 = vld [vmem:[#allocation7 + $0x60] sm:$0xff]  ;;  %v2601_v18 = vmov 0.0  }
  0x83   :  { %365 = vmatmul.mubr.f32.gmra.mxu1 %v128_v19  ;;  %284 = vmatprep.mubr.f32.mxu0 %v131_v20  ;;  %v535_v3 = vld [vmem:[#allocation7 + $0x70] sm:$0xff]  ;;  %v530_v4 = vld [vmem:[#allocation7 + $0x48] sm:$0xff]  ;;  %v532_v5 = vld [vmem:[#allocation7 + $0x58] sm:$0xff] }
  0x84   :  { %369 = vmatprep.mubr.f32.mxu1 %v133_v21  ;;  %589 = vmatprep.subr.mxu0 %v574_v22  ;;  %v529_v6 = vld [vmem:[#allocation7 + $0x40] sm:$0xff]  ;;  %v531_v7 = vld [vmem:[#allocation7 + $0x50] sm:$0xff]  ;;  %v526_v8 = vld [vmem:[#allocation7 + $0x28] sm:$0xff] }
  0x85   :  { %678 = vmatprep.subr.mxu1 %v576_v23  ;;  %590 = vmatpush1.msra.mxu0 %v573_v24  ;;  %v528_v9 = vld [vmem:[#allocation7 + $0x38] sm:$0xff]  ;;  %v525_v10 = vld [vmem:[#allocation7 + $0x20] sm:$0xff]  ;;  %v527_v11 = vld [vmem:[#allocation7 + $0x30] sm:$0xff] }
  0x86   :  { %679 = vmatpush1.msra.mxu1 %v575_v25  ;;  %285 = vmatmul.mubr.f32.gmra.mxu0 %v130_v26  ;;  %v522_v12 = vld [vmem:[#allocation7 + $0x8] sm:$0xff]  ;;  %v524_v13 = vld [vmem:[#allocation7 + $0x18] sm:$0xff]  ;;  %v521_v14 = vld [vmem:[#allocation7] sm:$0xff] }
  0x87   :  { %370 = vmatmul.mubr.f32.gmra.mxu1 %v132_v27  ;;  %591 = vmatprep.subr.mxu0 %v570_v28  ;;  %v523_v15 = vld [vmem:[#allocation7 + $0x10] sm:$0xff]  ;;  %v518_v16 = vld [vmem:[#allocation6 + $0x1e8] sm:$0xff]  ;;  %v520_v17 = vld [vmem:[#allocation6 + $0x1f8] sm:$0xff] }
  0x88   :  { %680 = vmatprep.subr.mxu1 %v572_v29  ;;  %592 = vmatpush1.msra.mxu0 %v569_v30  ;;  %v2333_v21 = vld [vmem:[#allocation4] ss:$0 sm:$0xff]  ;;  %v383_v29 = vlaneseq }
  0x89   :  { %681 = vmatpush1.msra.mxu1 %v571_v31  ;;  %593 = vmatprep.subr.mxu0 %v566_v32 }
  0x8a   :  { %682 = vmatprep.subr.mxu1 %v568_v33  ;;  %594 = vmatpush1.msra.mxu0 %v565_v34 }
  0x8b   :  { %683 = vmatpush1.msra.mxu1 %v567_v35  ;;  %595 = vmatprep.subr.mxu0 %v562_v36 }
  0x8c   :  { %684 = vmatprep.subr.mxu1 %v564_v37  ;;  %596 = vmatpush1.msra.mxu0 %v561_v38  ;;  %v2724_v38 = vshrl.u32 %v383_v29, 7  ;;  %v496_v29 = vld [vmem:[#allocation6 + $0x138] sm:$0xff] }
  0x8d   :  { %685 = vmatpush1.msra.mxu1 %v563_v39  ;;  %597 = vmatprep.subr.mxu0 %v558_v40 }
  0x8e   :  { %686 = vmatprep.subr.mxu1 %v560_v41  ;;  %598 = vmatpush1.msra.mxu0 %v557_v42  ;;  %vm385_vm0 = vcmp.lt.s32.totalorder %v2724_v38, 7 }
  0x8f   :  { %687 = vmatpush1.msra.mxu1 %v559_v43  ;;  %599 = vmatprep.subr.mxu0 %v554_v44 }
  0x90   :  { %688 = vmatprep.subr.mxu1 %v556_v45  ;;  %600 = vmatpush1.msra.mxu0 %v553_v46 }
  0x91   :  { %689 = vmatpush1.msra.mxu1 %v555_v47  ;;  %601 = vmatprep.subr.mxu0 %v550_v48 }
  0x92   :  { %690 = vmatprep.subr.mxu1 %v552_v49  ;;  %602 = vmatpush1.msra.mxu0 %v549_v50  ;;  %v390_v49 = vadd.s32 8, %v2724_v38 }
  0x93   :  { %691 = vmatpush1.msra.mxu1 %v551_v51  ;;  %603 = vmatprep.subr.mxu0 %v546_v52 }
  0x94   :  { %692 = vmatprep.subr.mxu1 %v548_v53  ;;  %604 = vmatpush1.msra.mxu0 %v545_v54 }
  0x95   :  { %693 = vmatpush1.msra.mxu1 %v547_v55  ;;  %605 = vmatprep.subr.mxu0 %v542_v56 }
  0x96   :  { %694 = vmatprep.subr.mxu1 %v544_v57  ;;  %606 = vmatpush1.msra.mxu0 %v541_v58  ;;  %v517_v57 = vld [vmem:[#allocation6 + $0x1e0] sm:$0xff]  ;;  %v519_v58 = vld [vmem:[#allocation6 + $0x1f0] sm:$0xff] }
  0x97   :  { %695 = vmatpush1.msra.mxu1 %v543_v59  ;;  %607 = vmatprep.subr.mxu0 %v538_v60 }
  0x98   :  { %696 = vmatprep.subr.mxu1 %v540_v61  ;;  %608 = vmatpush1.msra.mxu0 %v537_v62  ;;  %v514_v62 = vld [vmem:[#allocation6 + $0x1c8] sm:$0xff] }
  0x99   :  { %697 = vmatpush1.msra.mxu1 %v539_v63  ;;  %609 = vmatprep.subr.mxu0 %v534_v0  ;;  %v516_v63 = vld [vmem:[#allocation6 + $0x1d8] sm:$0xff]  ;;  %v404_v0 = vand.u32 15, %v390_v49 }
  0x9a   :  { %698 = vmatprep.subr.mxu1 %v536_v1  ;;  %610 = vmatpush1.msra.mxu0 %v533_v2  ;;  %v513_v1 = vld [vmem:[#allocation6 + $0x1c0] sm:$0xff]  ;;  %v515_v2 = vld [vmem:[#allocation6 + $0x1d0] sm:$0xff]  ;;  %v480_v49 = vld [vmem:[#allocation6 + $0xb8] sm:$0xff] }
  0x9b   :  { %699 = vmatpush1.msra.mxu1 %v535_v3  ;;  %611 = vmatprep.subr.mxu0 %v530_v4  ;;  %vm442_vm1 = vcmp.ne.s32.totalorder %v404_v0, 15  ;;  %v467_v0 = vld [vmem:[#allocation6 + $0x50] sm:$0xff] }
  0x9c   :  { %700 = vmatprep.subr.mxu1 %v532_v5  ;;  %612 = vmatpush1.msra.mxu0 %v529_v6  ;;  %v510_v5 = vld [vmem:[#allocation6 + $0x1a8] sm:$0xff]  ;;  %v512_v6 = vld [vmem:[#allocation6 + $0x1b8] sm:$0xff] }
  0x9d   :  { %701 = vmatpush1.msra.mxu1 %v531_v7  ;;  %613 = vmatprep.subr.mxu0 %v526_v8 }
  0x9e   :  { %702 = vmatprep.subr.mxu1 %v528_v9  ;;  %614 = vmatpush1.msra.mxu0 %v525_v10  ;;  %v509_v9 = vld [vmem:[#allocation6 + $0x1a0] sm:$0xff]  ;;  %v511_v10 = vld [vmem:[#allocation6 + $0x1b0] sm:$0xff] }
  0x9f   :  { %703 = vmatpush1.msra.mxu1 %v527_v11  ;;  %615 = vmatprep.subr.mxu0 %v522_v12  ;;  %v506_v11 = vld [vmem:[#allocation6 + $0x188] sm:$0xff]  ;;  %v508_v12 = vld [vmem:[#allocation6 + $0x198] sm:$0xff] }
  0xa0   :  { %704 = vmatprep.subr.mxu1 %v524_v13  ;;  %616 = vmatpush1.msra.mxu0 %v521_v14  ;;  %v505_v14 = vld [vmem:[#allocation6 + $0x180] sm:$0xff] }
  0xa1   :  { %705 = vmatpush1.msra.mxu1 %v523_v15  ;;  %649 = vmatprep.mubr.f32.mxu0 %v2601_v18  ;;  %v507_v15 = vld [vmem:[#allocation6 + $0x190] sm:$0xff] }
  0xa2   :  { %738 = vmatprep.mubr.f32.mxu1 %v2601_v18  ;;  %763 = vmatprep.subr.mxu0 %v518_v16  ;;  %v392_v16 = vadd.s32 24, %v2724_v38 }
  0xa3   :  { %852 = vmatprep.subr.mxu1 %v520_v17  ;;  %v502_v17 = vld [vmem:[#allocation6 + $0x168] sm:$0xff] }
 0x13a   :  { %v2370_v19 = vpop.f32.mrf.mxu0 }
 0x13b   :  { %v2414_v20 = vpop.f32.mrf.mxu1 }
 0x13c   :  { %v2371_v22 = vpop.f32.mrf.mxu0 }
 0x13d   :  { %v2415_v23 = vpop.f32.mrf.mxu1  ;;  %v2372_v24 = vadd.f32 %v2371_v22, %v2370_v19  ;;  %v504_v19 = vld [vmem:[#allocation6 + $0x178] sm:$0xff]  ;;  %v503_v22 = vld [vmem:[#allocation6 + $0x170] sm:$0xff] }
 0x13e   :  { %v2373_v25 = vpop.f32.mrf.mxu0  ;;  %v2416_v28 = vadd.f32 %v2415_v23, %v2414_v20  ;;  %v498_v23 = vld [vmem:[#allocation6 + $0x148] sm:$0xff] }
 0x13f   :  { %v2417_v26 = vpop.f32.mrf.mxu1  ;;  %v272_v27 = vadd.f32 %v2372_v24, %v2333_v21  ;;  %v500_v24 = vld [vmem:[#allocation6 + $0x158] sm:$0xff] }
 0x140   :  { %v2374_v30 = vpop.f32.mrf.mxu0 }
 0x141   :  { %v2418_v31 = vpop.f32.mrf.mxu1  ;;  %v357_v32 = vadd.f32 %v2416_v28, %v272_v27  ;;  %v2375_v33 = vadd.f32 %v2374_v30, %v2373_v25  ;;  %v418_v25 = vand.u32 15, %v392_v16  ;;  %v499_v27 = vld [vmem:[#allocation6 + $0x150] sm:$0xff]  ;;  %v494_v28 = vld [vmem:[#allocation6 + $0x128] sm:$0xff]  ;;  %v493_v30 = vld [vmem:[#allocation6 + $0x120] sm:$0xff] }
 0x142   :  { %v2376_v34 = vpop.f32.mrf.mxu0  ;;  %v2419_v37 = vadd.f32 %v2418_v31, %v2417_v26  ;;  %v497_v26 = vld [vmem:[#allocation6 + $0x140] sm:$0xff]  ;;  %v495_v31 = vld [vmem:[#allocation6 + $0x130] sm:$0xff] }
 0x143   :  { %v2420_v35 = vpop.f32.mrf.mxu1  ;;  %v277_v36 = vadd.f32 %v2375_v33, %v2333_v21  ;;  %v2726_v39 = vmax.f32 %v357_v32, 0.0  ;;  %vm444_vm2 = vcmp.ne.s32.totalorder %v418_v25, 15  ;;  %v490_v33 = vld [vmem:[#allocation6 + $0x108] sm:$0xff] }
 0x144   :  { %v2377_v40 = vpop.f32.mrf.mxu0  ;;  %v1107_v16 = vld [vmem:[#allocation10 + $0x380] sm:$0xff]  ;;  %v1084_v25 = vld [vmem:[#allocation10 + $0x2c8] sm:$0xff] }
 0x145   :  { %v2421_v41 = vpop.f32.mrf.mxu1  ;;  %v362_v42 = vadd.f32 %v2419_v37, %v277_v36  ;;  %v2378_v43 = vadd.f32 %v2377_v40, %v2376_v34  ;;  %v379_v50 = vrot.slane %v2726_v39, 1  ;;  %v492_v34 = vld [vmem:[#allocation6 + $0x118] sm:$0xff]  ;;  %v491_v36 = vld [vmem:[#allocation6 + $0x110] sm:$0xff]  ;;  %v486_v37 = vld [vmem:[#allocation6 + $0xe8] sm:$0xff] }
 0x146   :  { %v2422_v44 = vadd.f32 %v2421_v41, %v2420_v35  ;;  %v2379_v45 = vpop.f32.mrf.mxu0  ;;  %v489_v35 = vld [vmem:[#allocation6 + $0x100] sm:$0xff]  ;;  %v488_v40 = vld [vmem:[#allocation6 + $0xf8] sm:$0xff] }
 0x147   :  { %v2423_v46 = vpop.f32.mrf.mxu1  ;;  %v2728_v47 = vmax.f32 %v362_v42, 0.0  ;;  %v282_v48 = vadd.f32 %v2378_v43, %v2333_v21  ;;  %v485_v41 = vld [vmem:[#allocation6 + $0xe0] sm:$0xff]  ;;  %v487_v42 = vld [vmem:[#allocation6 + $0xf0] sm:$0xff]  ;;  %v482_v43 = vld [vmem:[#allocation6 + $0xc8] sm:$0xff] }
 0x148   :  { %v2380_v51 = vpop.f32.mrf.mxu0 }
 0x149   :  { %v2424_v52 = vpop.f32.mrf.mxu1  ;;  %v380_v53 = vrot.slane %v2728_v47, 1  ;;  %v367_v54 = vadd.f32 %v2422_v44, %v282_v48  ;;  %v2381_v55 = vadd.f32 %v2380_v51, %v2379_v45  ;;  %v484_v44 = vld [vmem:[#allocation6 + $0xd8] sm:$0xff]  ;;  %v481_v45 = vld [vmem:[#allocation6 + $0xc0] sm:$0xff]  ;;  %v478_v48 = vld [vmem:[#allocation6 + $0xa8] sm:$0xff] }
 0x14a   :  { %v2425_v56 = vadd.f32 %v2424_v52, %v2423_v46  ;;  %v483_v46 = vld [vmem:[#allocation6 + $0xd0] sm:$0xff]  ;;  %v474_v52 = vld [vmem:[#allocation6 + $0x88] sm:$0xff] }
 0x14b   :  { %v2734_v59 = vmax.f32 %v367_v54, 0.0  ;;  %v287_v60 = vadd.f32 %v2381_v55, %v2333_v21  ;;  %v388_v61 = vsel %vm385_vm0, %v379_v50, %v380_v53  ;;  %v501_v21 = vld [vmem:[#allocation6 + $0x160] sm:$0xff]  ;;  %v479_v51 = vld [vmem:[#allocation6 + $0xb0] sm:$0xff] }
 0x14c   :  { %650 = vmatmul.mubr.f32.vlgmr.msra.gmra.mxu0 %v388_v61  ;;  %739 = vmatmul.mubr.f32.vlgmr.msra.gmra.mxu1 %v388_v61  ;;  %v473_v54 = vld [vmem:[#allocation6 + $0x80] sm:$0xff]  ;;  %v475_v55 = vld [vmem:[#allocation6 + $0x90] sm:$0xff]  ;;  %v466_v61 = vld [vmem:[#allocation6 + $0x48] sm:$0xff] }
 0x14d   :  { %v381_v3 = vrot.slane %v2734_v59, 1  ;;  %v372_v4 = vadd.f32 %v2425_v56, %v287_v60  ;;  %764 = vmatpush1.msra.mxu0 %v517_v57  ;;  %853 = vmatpush1.msra.mxu1 %v519_v58  ;;  %v470_v56 = vld [vmem:[#allocation6 + $0x68] sm:$0xff]  ;;  %v472_v57 = vld [vmem:[#allocation6 + $0x78] sm:$0xff]  ;;  %v469_v58 = vld [vmem:[#allocation6 + $0x60] sm:$0xff] }
 0x14e   :  { %765 = vmatprep.subr.mxu0 %v514_v62  ;;  %854 = vmatprep.subr.mxu1 %v516_v63  ;;  %v471_v60 = vld [vmem:[#allocation6 + $0x70] sm:$0xff]  ;;  %v468_v62 = vld [vmem:[#allocation6 + $0x58] sm:$0xff]  ;;  %v465_v63 = vld [vmem:[#allocation6 + $0x40] sm:$0xff] }
 0x14f   :  { %v2741_v7 = vmax.f32 %v372_v4, 0.0  ;;  %766 = vmatpush1.msra.mxu0 %v513_v1  ;;  %855 = vmatpush1.msra.mxu1 %v515_v2  ;;  %v387_v8 = vsel %vm385_vm0, %v380_v53, %v381_v3  ;;  %v476_v53 = vld [vmem:[#allocation6 + $0x98] sm:$0xff]  ;;  %v462_v1 = vld [vmem:[#allocation6 + $0x28] sm:$0xff]  ;;  %v463_v4 = vld [vmem:[#allocation6 + $0x30] sm:$0xff] }
 0x150   :  { %655 = vmatprep.mubr.f32.mxu0 %v2601_v18  ;;  %744 = vmatprep.mubr.f32.mxu1 %v2601_v18  ;;  %v464_v2 = vld [vmem:[#allocation6 + $0x38] sm:$0xff] }
 0x151   :  { %767 = vmatprep.subr.mxu0 %v510_v5  ;;  %856 = vmatprep.subr.mxu1 %v512_v6  ;;  %v382_v13 = vrot.slane %v2741_v7, 1  ;;  %v458_v5 = vld [vmem:[#allocation6 + $0x8] sm:$0xff]  ;;  %v460_v6 = vld [vmem:[#allocation6 + $0x18] sm:$0xff] }
 0x152   :  { %2334 = vmatmul.mubr.msk.f32.gmra.mxu0 %vm442_vm1, %v387_v8  ;;  %2336 = vmatmul.mubr.msk.f32.gmra.mxu1 %vm442_vm1, %v387_v8  ;;  %v457_v8 = vld [vmem:[#allocation6] sm:$0xff] }
 0x153   :  { %768 = vmatpush1.msra.mxu0 %v509_v9  ;;  %857 = vmatpush1.msra.mxu1 %v511_v10  ;;  %v386_v20 = vsel %vm385_vm0, %v381_v3, %v382_v13  ;;  %v389_v32 = vsel %vm385_vm0, %v382_v13, %v379_v50  ;;  %v477_v50 = vld [vmem:[#allocation6 + $0xa0] sm:$0xff]  ;;  %v459_v9 = vld [vmem:[#allocation6 + $0x10] sm:$0xff] }
 0x154   :  { %769 = vmatprep.subr.mxu0 %v506_v11  ;;  %858 = vmatprep.subr.mxu1 %v508_v12  ;;  %v461_v3 = vld [vmem:[#allocation6 + $0x20] sm:$0xff]  ;;  %v1116_v10 = vld [vmem:[#allocation10 + $0x3c8] sm:$0xff] }
 0x155   :  { %770 = vmatpush1.msra.mxu0 %v505_v14  ;;  %859 = vmatpush1.msra.mxu1 %v507_v15  ;;  %v1372_v11 = vld [vmem:[#allocation10 + $0xbc8] sm:$0xff]  ;;  %v1115_v12 = vld [vmem:[#allocation10 + $0x3c0] sm:$0xff] }
 0x156   :  { %661 = vmatprep.mubr.f32.mxu0 %v2601_v18  ;;  %750 = vmatprep.mubr.f32.mxu1 %v2601_v18  ;;  %v1371_v13 = vld [vmem:[#allocation10 + $0xbc0] sm:$0xff]  ;;  %v1108_v14 = vld [vmem:[#allocation10 + $0x388] sm:$0xff] }
 0x157   :  { %771 = vmatprep.subr.mxu0 %v502_v17  ;;  %860 = vmatprep.subr.mxu1 %v504_v19  ;;  %v1364_v15 = vld [vmem:[#allocation10 + $0xb88] sm:$0xff]  ;;  %v1363_v17 = vld [vmem:[#allocation10 + $0xb80] sm:$0xff] }
 0x158   :  { %662 = vmatmul.mubr.f32.gmra.mxu0 %v386_v20  ;;  %751 = vmatmul.mubr.f32.gmra.mxu1 %v386_v20  ;;  %v1356_v19 = vld [vmem:[#allocation10 + $0xb48] sm:$0xff]  ;;  %v1099_v20 = vld [vmem:[#allocation10 + $0x340] sm:$0xff] }
 0x159   :  { %772 = vmatpush1.msra.mxu0 %v501_v21  ;;  %861 = vmatpush1.msra.mxu1 %v503_v22  ;;  %v1355_v21 = vld [vmem:[#allocation10 + $0xb40] sm:$0xff]  ;;  %v1348_v22 = vld [vmem:[#allocation10 + $0xb08] sm:$0xff] }
 0x15a   :  { %773 = vmatprep.subr.mxu0 %v498_v23  ;;  %862 = vmatprep.subr.mxu1 %v500_v24  ;;  %v1091_v23 = vld [vmem:[#allocation10 + $0x300] sm:$0xff] }
 0x15b   :  { %774 = vmatpush1.msra.mxu0 %v497_v26  ;;  %863 = vmatpush1.msra.mxu1 %v499_v27  ;;  %v1347_v24 = vld [vmem:[#allocation10 + $0xb00] sm:$0xff] }
 0x15c   :  { %667 = vmatprep.mubr.f32.mxu0 %v2601_v18  ;;  %756 = vmatprep.mubr.f32.mxu1 %v2601_v18  ;;  %v1083_v26 = vld [vmem:[#allocation10 + $0x2c0] sm:$0xff] }
 0x15d   :  { %775 = vmatprep.subr.mxu0 %v494_v28  ;;  %864 = vmatprep.subr.mxu1 %v496_v29  ;;  %v1339_v27 = vld [vmem:[#allocation10 + $0xac0] sm:$0xff]  ;;  %v1332_v28 = vld [vmem:[#allocation10 + $0xa88] sm:$0xff] }
 0x15e   :  { %2335 = vmatmul.mubr.msk.f32.gmra.mxu0 %vm444_vm2, %v389_v32  ;;  %2337 = vmatmul.mubr.msk.f32.gmra.mxu1 %vm444_vm2, %v389_v32  ;;  %v1075_v29 = vld [vmem:[#allocation10 + $0x280] sm:$0xff]  ;;  %v1324_v32 = vld [vmem:[#allocation10 + $0xa48] sm:$0xff] }
 0x15f   :  { %776 = vmatpush1.msra.mxu0 %v493_v30  ;;  %865 = vmatpush1.msra.mxu1 %v495_v31  ;;  %v1331_v30 = vld [vmem:[#allocation10 + $0xa80] sm:$0xff]  ;;  %v1068_v31 = vld [vmem:[#allocation10 + $0x248] sm:$0xff] }
 0x160   :  { %777 = vmatprep.subr.mxu0 %v490_v33  ;;  %866 = vmatprep.subr.mxu1 %v492_v34  ;;  %v1323_v33 = vld [vmem:[#allocation10 + $0xa40] sm:$0xff]  ;;  %v1060_v34 = vld [vmem:[#allocation10 + $0x208] sm:$0xff] }
 0x161   :  { %778 = vmatpush1.msra.mxu0 %v489_v35  ;;  %867 = vmatpush1.msra.mxu1 %v491_v36  ;;  %v1316_v35 = vld [vmem:[#allocation10 + $0xa08] sm:$0xff]  ;;  %v1059_v36 = vld [vmem:[#allocation10 + $0x200] sm:$0xff] }
 0x162   :  { %779 = vmatprep.subr.mxu0 %v486_v37  ;;  %868 = vmatprep.subr.mxu1 %v488_v40  ;;  %v1315_v37 = vld [vmem:[#allocation10 + $0xa00] sm:$0xff]  ;;  %v1052_v40 = vld [vmem:[#allocation10 + $0x1c8] sm:$0xff] }
 0x163   :  { %780 = vmatpush1.msra.mxu0 %v485_v41  ;;  %869 = vmatpush1.msra.mxu1 %v487_v42  ;;  %v1308_v41 = vld [vmem:[#allocation10 + $0x9c8] sm:$0xff]  ;;  %v1051_v42 = vld [vmem:[#allocation10 + $0x1c0] sm:$0xff] }
 0x164   :  { %781 = vmatprep.subr.mxu0 %v482_v43  ;;  %870 = vmatprep.subr.mxu1 %v484_v44  ;;  %v1307_v43 = vld [vmem:[#allocation10 + $0x9c0] sm:$0xff]  ;;  %v1044_v44 = vld [vmem:[#allocation10 + $0x188] sm:$0xff] }
 0x165   :  { %782 = vmatpush1.msra.mxu0 %v481_v45  ;;  %871 = vmatpush1.msra.mxu1 %v483_v46  ;;  %v1300_v45 = vld [vmem:[#allocation10 + $0x988] sm:$0xff]  ;;  %v1043_v46 = vld [vmem:[#allocation10 + $0x180] sm:$0xff] }
 0x166   :  { %783 = vmatprep.subr.mxu0 %v478_v48  ;;  %872 = vmatprep.subr.mxu1 %v480_v49  ;;  %v1299_v48 = vld [vmem:[#allocation10 + $0x980] sm:$0xff]  ;;  %v1036_v49 = vld [vmem:[#allocation10 + $0x148] sm:$0xff] }
 0x167   :  { %784 = vmatpush1.msra.mxu0 %v477_v50  ;;  %873 = vmatpush1.msra.mxu1 %v479_v51  ;;  %v1292_v50 = vld [vmem:[#allocation10 + $0x948] sm:$0xff]  ;;  %v1035_v51 = vld [vmem:[#allocation10 + $0x140] sm:$0xff] }
 0x168   :  { %785 = vmatprep.subr.mxu0 %v474_v52  ;;  %874 = vmatprep.subr.mxu1 %v476_v53  ;;  %v1291_v52 = vld [vmem:[#allocation10 + $0x940] sm:$0xff]  ;;  %v1028_v53 = vld [vmem:[#allocation10 + $0x108] sm:$0xff] }
 0x169   :  { %786 = vmatpush1.msra.mxu0 %v473_v54  ;;  %875 = vmatpush1.msra.mxu1 %v475_v55  ;;  %v1284_v54 = vld [vmem:[#allocation10 + $0x908] sm:$0xff]  ;;  %v1027_v55 = vld [vmem:[#allocation10 + $0x100] sm:$0xff] }
 0x16a   :  { %787 = vmatprep.subr.mxu0 %v470_v56  ;;  %876 = vmatprep.subr.mxu1 %v472_v57  ;;  %v1283_v56 = vld [vmem:[#allocation10 + $0x900] sm:$0xff]  ;;  %v1020_v57 = vld [vmem:[#allocation10 + $0xc8] sm:$0xff] }
 0x16b   :  { %788 = vmatpush1.msra.mxu0 %v469_v58  ;;  %877 = vmatpush1.msra.mxu1 %v471_v60  ;;  %v1276_v58 = vld [vmem:[#allocation10 + $0x8c8] sm:$0xff]  ;;  %v1019_v60 = vld [vmem:[#allocation10 + $0xc0] sm:$0xff] }
 0x16c   :  { %789 = vmatprep.subr.mxu0 %v466_v61  ;;  %878 = vmatprep.subr.mxu1 %v468_v62  ;;  %v1275_v61 = vld [vmem:[#allocation10 + $0x8c0] sm:$0xff]  ;;  %v1012_v62 = vld [vmem:[#allocation10 + $0x88] sm:$0xff] }
 0x16d   :  { %790 = vmatpush1.msra.mxu0 %v465_v63  ;;  %879 = vmatpush1.msra.mxu1 %v467_v0  ;;  %v1268_v63 = vld [vmem:[#allocation10 + $0x888] sm:$0xff]  ;;  %v1011_v0 = vld [vmem:[#allocation10 + $0x80] sm:$0xff] }
 0x16e   :  { %791 = vmatprep.subr.mxu0 %v462_v1  ;;  %880 = vmatprep.subr.mxu1 %v464_v2  ;;  %v1267_v1 = vld [vmem:[#allocation10 + $0x880] sm:$0xff]  ;;  %v1004_v2 = vld [vmem:[#allocation10 + $0x48] sm:$0xff] }
 0x16f   :  { %792 = vmatpush1.msra.mxu0 %v461_v3  ;;  %881 = vmatpush1.msra.mxu1 %v463_v4  ;;  %v1260_v3 = vld [vmem:[#allocation10 + $0x848] sm:$0xff]  ;;  %v1003_v4 = vld [vmem:[#allocation10 + $0x40] sm:$0xff] }
 0x170   :  { %793 = vmatprep.subr.mxu0 %v458_v5  ;;  %882 = vmatprep.subr.mxu1 %v460_v6  ;;  %v1259_v5 = vld [vmem:[#allocation10 + $0x840] sm:$0xff]  ;;  %v996_v6 = vld [vmem:[#allocation10 + $0x8] sm:$0xff] }
 0x171   :  { %794 = vmatpush1.msra.mxu0 %v457_v8  ;;  %827 = vmatprep.mubr.f32.mxu0 %v2601_v18  ;;  %v1252_v8 = vld [vmem:[#allocation10 + $0x808] sm:$0xff] }
 0x172   :  { %883 = vmatpush1.msra.mxu1 %v459_v9  ;;  %916 = vmatprep.mubr.f32.mxu1 %v2601_v18  ;;  %v995_v9 = vld [vmem:[#allocation10] sm:$0xff] }
 0x173   :  { %828 = vmatmul.mubr.f32.vlgmr.msra.gmra.mxu0 %v2726_v39  ;;  %917 = vmatmul.mubr.f32.vlgmr.msra.gmra.mxu1 %v2726_v39  ;;  %v1100_v39 = vld [vmem:[#allocation10 + $0x348] sm:$0xff] }
 0x174   :  { %833 = vmatprep.mubr.f32.mxu0 %v2601_v18  ;;  %922 = vmatprep.mubr.f32.mxu1 %v2601_v18 }
 0x175   :  { %1549 = vmatprep.subr.mxu0 %v1116_v10  ;;  %1638 = vmatprep.subr.mxu1 %v1372_v11  ;;  %v1251_v10 = vld [vmem:[#allocation10 + $0x800] sm:$0xff]  ;;  %v1244_v11 = vld [vmem:[#allocation10 + $0x7c8] sm:$0xff] }
 0x176   :  { %1550 = vmatpush1.msra.mxu0 %v1115_v12  ;;  %1639 = vmatpush1.msra.mxu1 %v1371_v13  ;;  %v1500_v12 = vld [vmem:[#allocation10 + $0xfc8] sm:$0xff]  ;;  %v1243_v13 = vld [vmem:[#allocation10 + $0x7c0] sm:$0xff] }
 0x177   :  { %834 = vmatmul.mubr.f32.gmra.mxu0 %v2728_v47  ;;  %923 = vmatmul.mubr.f32.gmra.mxu1 %v2728_v47  ;;  %v1092_v47 = vld [vmem:[#allocation10 + $0x308] sm:$0xff] }
 0x178   :  { %839 = vmatprep.mubr.f32.mxu0 %v2601_v18  ;;  %928 = vmatprep.mubr.f32.mxu1 %v2601_v18 }
 0x179   :  { %1551 = vmatprep.subr.mxu0 %v1108_v14  ;;  %1640 = vmatprep.subr.mxu1 %v1364_v15  ;;  %v1499_v14 = vld [vmem:[#allocation10 + $0xfc0] sm:$0xff]  ;;  %v1236_v15 = vld [vmem:[#allocation10 + $0x788] sm:$0xff] }
 0x17a   :  { %1552 = vmatpush1.msra.mxu0 %v1107_v16  ;;  %1641 = vmatpush1.msra.mxu1 %v1363_v17  ;;  %v1492_v16 = vld [vmem:[#allocation10 + $0xf88] sm:$0xff]  ;;  %v1235_v17 = vld [vmem:[#allocation10 + $0x780] sm:$0xff] }
 0x17b   :  { %840 = vmatmul.mubr.f32.gmra.mxu0 %v2734_v59  ;;  %929 = vmatmul.mubr.f32.gmra.mxu1 %v2734_v59  ;;  %v1340_v59 = vld [vmem:[#allocation10 + $0xac8] sm:$0xff] }
 0x17c   :  { %845 = vmatprep.mubr.f32.mxu0 %v2601_v18  ;;  %934 = vmatprep.mubr.f32.mxu1 %v2601_v18  ;;  %v1076_v18 = vld [vmem:[#allocation10 + $0x288] sm:$0xff] }
 0x17d   :  { %1553 = vmatprep.subr.mxu0 %v1100_v39  ;;  %1642 = vmatprep.subr.mxu1 %v1356_v19  ;;  %v1491_v39 = vld [vmem:[#allocation10 + $0xf80] sm:$0xff]  ;;  %v1228_v19 = vld [vmem:[#allocation10 + $0x748] sm:$0xff] }
 0x17e   :  { %1554 = vmatpush1.msra.mxu0 %v1099_v20  ;;  %1643 = vmatpush1.msra.mxu1 %v1355_v21  ;;  %v1484_v20 = vld [vmem:[#allocation10 + $0xf48] sm:$0xff]  ;;  %v1227_v21 = vld [vmem:[#allocation10 + $0x740] sm:$0xff] }
 0x17f   :  { %846 = vmatmul.mubr.f32.gmra.mxu0 %v2741_v7  ;;  %935 = vmatmul.mubr.f32.gmra.mxu1 %v2741_v7  ;;  %v1067_v7 = vld [vmem:[#allocation10 + $0x240] sm:$0xff] }
 0x180   :  { %1555 = vmatprep.subr.mxu0 %v1092_v47  ;;  %1644 = vmatprep.subr.mxu1 %v1348_v22  ;;  %v1483_v47 = vld [vmem:[#allocation10 + $0xf40] sm:$0xff]  ;;  %v1220_v22 = vld [vmem:[#allocation10 + $0x708] sm:$0xff] }
 0x181   :  { %1556 = vmatpush1.msra.mxu0 %v1091_v23  ;;  %1645 = vmatpush1.msra.mxu1 %v1347_v24  ;;  %v1476_v23 = vld [vmem:[#allocation10 + $0xf08] sm:$0xff]  ;;  %v1219_v24 = vld [vmem:[#allocation10 + $0x700] sm:$0xff] }
 0x182   :  { %1557 = vmatprep.subr.mxu0 %v1084_v25  ;;  %1646 = vmatprep.subr.mxu1 %v1340_v59  ;;  %v1475_v25 = vld [vmem:[#allocation10 + $0xf00] sm:$0xff]  ;;  %v1212_v59 = vld [vmem:[#allocation10 + $0x6c8] sm:$0xff] }
 0x183   :  { %1558 = vmatpush1.msra.mxu0 %v1083_v26  ;;  %1647 = vmatpush1.msra.mxu1 %v1339_v27  ;;  %v1468_v26 = vld [vmem:[#allocation10 + $0xec8] sm:$0xff]  ;;  %v1211_v27 = vld [vmem:[#allocation10 + $0x6c0] sm:$0xff] }
 0x184   :  { %1559 = vmatprep.subr.mxu0 %v1076_v18  ;;  %1648 = vmatprep.subr.mxu1 %v1332_v28  ;;  %v1467_v18 = vld [vmem:[#allocation10 + $0xec0] sm:$0xff]  ;;  %v1204_v28 = vld [vmem:[#allocation10 + $0x688] sm:$0xff] }
 0x185   :  { %1560 = vmatpush1.msra.mxu0 %v1075_v29  ;;  %1649 = vmatpush1.msra.mxu1 %v1331_v30  ;;  %v1460_v29 = vld [vmem:[#allocation10 + $0xe88] sm:$0xff]  ;;  %v1203_v30 = vld [vmem:[#allocation10 + $0x680] sm:$0xff] }
 0x186   :  { %1561 = vmatprep.subr.mxu0 %v1068_v31  ;;  %1650 = vmatprep.subr.mxu1 %v1324_v32  ;;  %v1459_v31 = vld [vmem:[#allocation10 + $0xe80] sm:$0xff]  ;;  %v1196_v32 = vld [vmem:[#allocation10 + $0x648] sm:$0xff] }
 0x187   :  { %1562 = vmatpush1.msra.mxu0 %v1067_v7  ;;  %1651 = vmatpush1.msra.mxu1 %v1323_v33  ;;  %v1452_v7 = vld [vmem:[#allocation10 + $0xe48] sm:$0xff]  ;;  %v1195_v33 = vld [vmem:[#allocation10 + $0x640] sm:$0xff] }
 0x188   :  { %1563 = vmatprep.subr.mxu0 %v1060_v34  ;;  %1652 = vmatprep.subr.mxu1 %v1316_v35  ;;  %v1451_v34 = vld [vmem:[#allocation10 + $0xe40] sm:$0xff]  ;;  %v1188_v35 = vld [vmem:[#allocation10 + $0x608] sm:$0xff] }
 0x189   :  { %1564 = vmatpush1.msra.mxu0 %v1059_v36  ;;  %1653 = vmatpush1.msra.mxu1 %v1315_v37  ;;  %v1444_v36 = vld [vmem:[#allocation10 + $0xe08] sm:$0xff]  ;;  %v1187_v37 = vld [vmem:[#allocation10 + $0x600] sm:$0xff] }
 0x18a   :  { %1565 = vmatprep.subr.mxu0 %v1052_v40  ;;  %1654 = vmatprep.subr.mxu1 %v1308_v41  ;;  %v1443_v40 = vld [vmem:[#allocation10 + $0xe00] sm:$0xff]  ;;  %v1180_v41 = vld [vmem:[#allocation10 + $0x5c8] sm:$0xff] }
 0x18b   :  { %1566 = vmatpush1.msra.mxu0 %v1051_v42  ;;  %1655 = vmatpush1.msra.mxu1 %v1307_v43  ;;  %v1436_v42 = vld [vmem:[#allocation10 + $0xdc8] sm:$0xff]  ;;  %v1179_v43 = vld [vmem:[#allocation10 + $0x5c0] sm:$0xff] }
 0x18c   :  { %1567 = vmatprep.subr.mxu0 %v1044_v44  ;;  %1656 = vmatprep.subr.mxu1 %v1300_v45  ;;  %v1435_v44 = vld [vmem:[#allocation10 + $0xdc0] sm:$0xff]  ;;  %v1172_v45 = vld [vmem:[#allocation10 + $0x588] sm:$0xff] }
 0x18d   :  { %1568 = vmatpush1.msra.mxu0 %v1043_v46  ;;  %1657 = vmatpush1.msra.mxu1 %v1299_v48  ;;  %v1428_v46 = vld [vmem:[#allocation10 + $0xd88] sm:$0xff]  ;;  %v1171_v48 = vld [vmem:[#allocation10 + $0x580] sm:$0xff] }
 0x18e   :  { %1569 = vmatprep.subr.mxu0 %v1036_v49  ;;  %1658 = vmatprep.subr.mxu1 %v1292_v50  ;;  %v1427_v49 = vld [vmem:[#allocation10 + $0xd80] sm:$0xff]  ;;  %v1164_v50 = vld [vmem:[#allocation10 + $0x548] sm:$0xff] }
 0x18f   :  { %1570 = vmatpush1.msra.mxu0 %v1035_v51  ;;  %1659 = vmatpush1.msra.mxu1 %v1291_v52  ;;  %v1420_v51 = vld [vmem:[#allocation10 + $0xd48] sm:$0xff]  ;;  %v1163_v52 = vld [vmem:[#allocation10 + $0x540] sm:$0xff] }
 0x190   :  { %1571 = vmatprep.subr.mxu0 %v1028_v53  ;;  %1660 = vmatprep.subr.mxu1 %v1284_v54  ;;  %v1419_v53 = vld [vmem:[#allocation10 + $0xd40] sm:$0xff]  ;;  %v1156_v54 = vld [vmem:[#allocation10 + $0x508] sm:$0xff] }
 0x191   :  { %1572 = vmatpush1.msra.mxu0 %v1027_v55  ;;  %1661 = vmatpush1.msra.mxu1 %v1283_v56  ;;  %v1412_v55 = vld [vmem:[#allocation10 + $0xd08] sm:$0xff]  ;;  %v1155_v56 = vld [vmem:[#allocation10 + $0x500] sm:$0xff] }
 0x192   :  { %1573 = vmatprep.subr.mxu0 %v1020_v57  ;;  %1662 = vmatprep.subr.mxu1 %v1276_v58  ;;  %v1411_v57 = vld [vmem:[#allocation10 + $0xd00] sm:$0xff]  ;;  %v1148_v58 = vld [vmem:[#allocation10 + $0x4c8] sm:$0xff] }
 0x193   :  { %1574 = vmatpush1.msra.mxu0 %v1019_v60  ;;  %1663 = vmatpush1.msra.mxu1 %v1275_v61  ;;  %v1404_v60 = vld [vmem:[#allocation10 + $0xcc8] sm:$0xff]  ;;  %v1147_v61 = vld [vmem:[#allocation10 + $0x4c0] sm:$0xff] }
 0x194   :  { %1575 = vmatprep.subr.mxu0 %v1012_v62  ;;  %1664 = vmatprep.subr.mxu1 %v1268_v63  ;;  %v1403_v62 = vld [vmem:[#allocation10 + $0xcc0] sm:$0xff]  ;;  %v1140_v63 = vld [vmem:[#allocation10 + $0x488] sm:$0xff] }
 0x195   :  { %1576 = vmatpush1.msra.mxu0 %v1011_v0  ;;  %1665 = vmatpush1.msra.mxu1 %v1267_v1  ;;  %v1396_v0 = vld [vmem:[#allocation10 + $0xc88] sm:$0xff]  ;;  %v1139_v1 = vld [vmem:[#allocation10 + $0x480] sm:$0xff] }
 0x196   :  { %1577 = vmatprep.subr.mxu0 %v1004_v2  ;;  %1666 = vmatprep.subr.mxu1 %v1260_v3  ;;  %v1395_v2 = vld [vmem:[#allocation10 + $0xc80] sm:$0xff]  ;;  %v1132_v3 = vld [vmem:[#allocation10 + $0x448] sm:$0xff] }
 0x197   :  { %1578 = vmatpush1.msra.mxu0 %v1003_v4  ;;  %1667 = vmatpush1.msra.mxu1 %v1259_v5  ;;  %v1388_v4 = vld [vmem:[#allocation10 + $0xc48] sm:$0xff]  ;;  %v1131_v5 = vld [vmem:[#allocation10 + $0x440] sm:$0xff] }
 0x198   :  { %1579 = vmatprep.subr.mxu0 %v996_v6  ;;  %1668 = vmatprep.subr.mxu1 %v1252_v8  ;;  %v1387_v6 = vld [vmem:[#allocation10 + $0xc40] sm:$0xff]  ;;  %v1124_v8 = vld [vmem:[#allocation10 + $0x408] sm:$0xff] }
 0x199   :  { %1580 = vmatpush1.msra.mxu0 %v995_v9  ;;  %1669 = vmatpush1.msra.mxu1 %v1251_v10  ;;  %v1380_v9 = vld [vmem:[#allocation10 + $0xc08] sm:$0xff]  ;;  %v1123_v10 = vld [vmem:[#allocation10 + $0x400] sm:$0xff] }
 0x19a   :  { %1581 = vmatprep.subr.mxu0 %v1244_v11  ;;  %1670 = vmatprep.subr.mxu1 %v1500_v12  ;;  %v1379_v11 = vld [vmem:[#allocation10 + $0xc00] sm:$0xff]  ;;  %v1118_v12 = vld [vmem:[#allocation10 + $0x3d8] sm:$0xff] }
 0x19b   :  { %1582 = vmatpush2.msra.mxu0 %v1243_v13  ;;  %1671 = vmatpush2.msra.mxu1 %v1499_v14  ;;  %v1374_v13 = vld [vmem:[#allocation10 + $0xbd8] sm:$0xff] }
 0x19c   :  { %1583 = vmatprep.subr.mxu0 %v1236_v15  ;;  %1672 = vmatprep.subr.mxu1 %v1492_v16 }
 0x19d   :  { %1584 = vmatpush2.msra.mxu0 %v1235_v17  ;;  %1673 = vmatpush2.msra.mxu1 %v1491_v39 }
 0x19e   :  { %1585 = vmatprep.subr.mxu0 %v1228_v19  ;;  %1674 = vmatprep.subr.mxu1 %v1484_v20 }
 0x19f   :  { %1586 = vmatpush2.msra.mxu0 %v1227_v21  ;;  %1675 = vmatpush2.msra.mxu1 %v1483_v47 }
 0x1a0   :  { %1587 = vmatprep.subr.mxu0 %v1220_v22  ;;  %1676 = vmatprep.subr.mxu1 %v1476_v23 }
 0x1a1   :  { %1588 = vmatpush2.msra.mxu0 %v1219_v24  ;;  %1677 = vmatpush2.msra.mxu1 %v1475_v25 }
 0x1a2   :  { %1589 = vmatprep.subr.mxu0 %v1212_v59  ;;  %1678 = vmatprep.subr.mxu1 %v1468_v26  ;;  %v945_v26 = vsub.s32 0, %v2724_v38 }
 0x1a3   :  { %1590 = vmatpush2.msra.mxu0 %v1211_v27  ;;  %1679 = vmatpush2.msra.mxu1 %v1467_v18  ;;  %v953_v27 = vsub.s32 2, %v2724_v38  ;;  %v941_v18 = vld [vmem:[#allocation9] sm:$0xf] }
 0x1a4   :  { %1591 = vmatprep.subr.mxu0 %v1204_v28  ;;  %1680 = vmatprep.subr.mxu1 %v1460_v29  ;;  %v949_v28 = vsub.s32 1, %v2724_v38  ;;  %v957_v29 = vsub.s32 3, %v2724_v38 }
 0x1a5   :  { %1592 = vmatpush2.msra.mxu0 %v1203_v30  ;;  %1681 = vmatpush2.msra.mxu1 %v1459_v31 }
 0x1a6   :  { %1593 = vmatprep.subr.mxu0 %v1196_v32  ;;  %1682 = vmatprep.subr.mxu1 %v1452_v7  ;;  %v2791_v7 = vrot.slane %v941_v18, %v945_v26 }
 0x1a7   :  { %1594 = vmatpush2.msra.mxu0 %v1195_v33  ;;  %1683 = vmatpush2.msra.mxu1 %v1451_v34  ;;  %v2795_v34 = vrot.slane %v941_v18, %v953_v27 }
 0x1a8   :  { %1595 = vmatprep.subr.mxu0 %v1188_v35  ;;  %1684 = vmatprep.subr.mxu1 %v1444_v36 }
 0x1a9   :  { %1596 = vmatpush2.msra.mxu0 %v1187_v37  ;;  %1685 = vmatpush2.msra.mxu1 %v1443_v40  ;;  %v2799_v37 = vrot.slane %v941_v18, %v949_v28  ;;  %v2803_v40 = vrot.slane %v941_v18, %v957_v29 }
 0x1aa   :  { %1597 = vmatprep.subr.mxu0 %v1180_v41  ;;  %1686 = vmatprep.subr.mxu1 %v1436_v42 }
 0x1ab   :  { %1598 = vmatpush2.msra.mxu0 %v1179_v43  ;;  %1687 = vmatpush2.msra.mxu1 %v1435_v44 }
 0x1ac   :  { %1599 = vmatprep.subr.mxu0 %v1172_v45  ;;  %1688 = vmatprep.subr.mxu1 %v1428_v46 }
 0x1ad   :  { %1600 = vmatpush2.msra.mxu0 %v1171_v48  ;;  %1689 = vmatpush2.msra.mxu1 %v1427_v49 }
 0x1ae   :  { %1601 = vmatprep.subr.mxu0 %v1164_v50  ;;  %1690 = vmatprep.subr.mxu1 %v1420_v51 }
 0x1af   :  { %1602 = vmatpush2.msra.mxu0 %v1163_v52  ;;  %1691 = vmatpush2.msra.mxu1 %v1419_v53 }
 0x1b0   :  { %1603 = vmatprep.subr.mxu0 %v1156_v54  ;;  %1692 = vmatprep.subr.mxu1 %v1412_v55 }
 0x1b1   :  { %1604 = vmatpush2.msra.mxu0 %v1155_v56  ;;  %1693 = vmatpush2.msra.mxu1 %v1411_v57 }
 0x1b2   :  { %1605 = vmatprep.subr.mxu0 %v1148_v58  ;;  %1694 = vmatprep.subr.mxu1 %v1404_v60 }
 0x1b3   :  { %1606 = vmatpush2.msra.mxu0 %v1147_v61  ;;  %1695 = vmatpush2.msra.mxu1 %v1403_v62 }
 0x1b4   :  { %1607 = vmatprep.subr.mxu0 %v1140_v63  ;;  %1696 = vmatprep.subr.mxu1 %v1396_v0  ;;  %v1117_v0 = vld [vmem:[#allocation10 + $0x3d0] sm:$0xff] }
 0x1b5   :  { %1608 = vmatpush2.msra.mxu0 %v1139_v1  ;;  %1697 = vmatpush2.msra.mxu1 %v1395_v2 }
 0x1b6   :  { %1609 = vmatprep.subr.mxu0 %v1132_v3  ;;  %1698 = vmatprep.subr.mxu1 %v1388_v4  ;;  %v1373_v4 = vld [vmem:[#allocation10 + $0xbd0] sm:$0xff] }
 0x1b7   :  { %1610 = vmatpush2.msra.mxu0 %v1131_v5  ;;  %1699 = vmatpush2.msra.mxu1 %v1387_v6  ;;  %v1110_v5 = vld [vmem:[#allocation10 + $0x398] sm:$0xff] }
 0x1b8   :  { %1611 = vmatprep.subr.mxu0 %v1124_v8  ;;  %1700 = vmatprep.subr.mxu1 %v1380_v9 }
 0x1b9   :  { %1612 = vmatpush2.msra.mxu0 %v1123_v10  ;;  %1701 = vmatpush2.msra.mxu1 %v1379_v11  ;;  %v1366_v10 = vld [vmem:[#allocation10 + $0xb98] sm:$0xff]  ;;  %v1109_v11 = vld [vmem:[#allocation10 + $0x390] sm:$0xff] }
 0x1ba   :  { %1727 = vmatprep.subr.mxu0 %v1118_v12  ;;  %1816 = vmatprep.subr.mxu1 %v1374_v13 }
 0x20c   :  { %v651_v14 = vpop.f32.mrf.mxu0  ;;  %v740_v15 = vpop.f32.mrf.mxu1 }
 0x20e   :  { %v653_v16 = vpop.f32.mrf.mxu0  ;;  %v742_v17 = vpop.f32.mrf.mxu1 }
 0x212   :  { %v657_v39 = vpop.f32.mrf.mxu0  ;;  %v746_v19 = vpop.f32.mrf.mxu1 }
 0x214   :  { %v659_v20 = vpop.f32.mrf.mxu0  ;;  %v748_v21 = vpop.f32.mrf.mxu1 }
 0x218   :  { %v663_v47 = vpop.f32.mrf.mxu0  ;;  %v2775_v22 = vpop.f32.mrf.mxu1 }
 0x21a   :  { %v665_v23 = vpop.f32.mrf.mxu0  ;;  %v754_v24 = vpop.f32.mrf.mxu1 }
 0x21e   :  { %v2777_v25 = vpop.f32.mrf.mxu0  ;;  %v2779_v59 = vpop.f32.mrf.mxu1 }
 0x220   :  { %v2785_v30 = vpop.f32.mrf.mxu0  ;;  %v2787_v31 = vpop.f32.mrf.mxu1 }
 0x233   :  { %v829_v32 = vpop.f32.mrf.mxu0  ;;  %v918_v33 = vpop.f32.mrf.mxu1 }
 0x234   :  { %v830_v35 = vadd.f32 %v829_v32, %v651_v14  ;;  %v919_v36 = vadd.f32 %v918_v33, %v740_v15  ;;  %v1365_v15 = vld [vmem:[#allocation10 + $0xb90] sm:$0xff]  ;;  %v1358_v32 = vld [vmem:[#allocation10 + $0xb58] sm:$0xff] }
 0x235   :  { %v831_v41 = vpop.f32.mrf.mxu0  ;;  %v920_v42 = vpop.f32.mrf.mxu1 }
 0x236   :  { %v832_v43 = vadd.f32 %v831_v41, %v653_v16  ;;  %v921_v44 = vadd.f32 %v920_v42, %v742_v17  ;;  %v963_v45 = vadd.f32 %v2791_v7, %v830_v35  ;;  %v965_v49 = vadd.f32 %v2795_v34, %v919_v36  ;;  %v1357_v42 = vld [vmem:[#allocation10 + $0xb50] sm:$0xff] }
 0x237   :  { %v835_v46 = vpop.f32.mrf.mxu0  ;;  %v924_v48 = vpop.f32.mrf.mxu1 }
 0x238   :  { %v964_v50 = vadd.f32 %v2799_v37, %v832_v43  ;;  %v966_v51 = vadd.f32 %v2803_v40, %v921_v44  ;;  %v836_v52 = vadd.f32 %v835_v46, %v657_v39  ;;  %v925_v53 = vadd.f32 %v924_v48, %v746_v19  ;;  %v1094_v43 = vld [vmem:[#allocation10 + $0x318] sm:$0xff] }
 0x239   :  { %v837_v54 = vpop.f32.mrf.mxu0  ;;  %v926_v55 = vpop.f32.mrf.mxu1  ;;  %v2813_v61 = vmax.f32 %v963_v45, 0.0  ;;  %v2815_v1 = vmax.f32 %v965_v49, 0.0  ;;  %v1350_v48 = vld [vmem:[#allocation10 + $0xb18] sm:$0xff]  ;;  %v1093_v49 = vld [vmem:[#allocation10 + $0x310] sm:$0xff] }
 0x23a   :  { %v2809_v56 = vmax.f32 %v964_v50, 0.0  ;;  %v2811_v57 = vmax.f32 %v966_v51, 0.0  ;;  %v838_v58 = vadd.f32 %v837_v54, %v659_v20  ;;  %v927_v60 = vadd.f32 %v926_v55, %v748_v21  ;;  %v1102_v21 = vld [vmem:[#allocation10 + $0x358] sm:$0xff] }
 0x23b   :  { %v841_v62 = vpop.f32.mrf.mxu0  ;;  %v930_v63 = vpop.f32.mrf.mxu1  ;;  %v967_v6 = vadd.f32 %v2791_v7, %v836_v52  ;;  %v969_v12 = vadd.f32 %v2795_v34, %v925_v53  ;;  %v1086_v54 = vld [vmem:[#allocation10 + $0x2d8] sm:$0xff] }
 0x23c   :  { %v968_v2 = vadd.f32 %v2799_v37, %v838_v58  ;;  %v970_v3 = vadd.f32 %v2803_v40, %v927_v60  ;;  %1613 = vmatprep.mubr.f32.mxu0 %v2809_v56  ;;  %1702 = vmatprep.mubr.f32.mxu1 %v2811_v57  ;;  %v842_v16 = vadd.f32 %v841_v62, %v663_v47  ;;  %v1342_v58 = vld [vmem:[#allocation10 + $0xad8] sm:$0xff]  ;;  %v1085_v62 = vld [vmem:[#allocation10 + $0x2d0] sm:$0xff] }
 0x23d   :  { %v843_v8 = vpop.f32.mrf.mxu0  ;;  %v932_v9 = vpop.f32.mrf.mxu1  ;;  %1614 = vmatmul.mubr.f32.vlgmr.msra.gmra.mxu0 %v2813_v61  ;;  %1703 = vmatmul.mubr.f32.vlgmr.msra.gmra.mxu1 %v2815_v1  ;;  %v931_v18 = vadd.f32 %v930_v63, %v2775_v22  ;;  %v2830_v33 = vmax.f32 %v967_v6, 0.0  ;;  %v2835_v41 = vmax.f32 %v969_v12, 0.0  ;;  %v1070_v6 = vld [vmem:[#allocation10 + $0x258] sm:$0xff] }
 0x23e   :  { %v2824_v13 = vmax.f32 %v968_v2, 0.0  ;;  %v2826_v14 = vmax.f32 %v970_v3, 0.0  ;;  %1728 = vmatpush1.msra.mxu0 %v1117_v0  ;;  %v844_v17 = vadd.f32 %v843_v8, %v665_v23  ;;  %v933_v39 = vadd.f32 %v932_v9, %v754_v24  ;;  %1817 = vmatpush1.msra.mxu1 %v1373_v4  ;;  %v1101_v24 = vld [vmem:[#allocation10 + $0x350] sm:$0xff]  ;;  %v1318_v12 = vld [vmem:[#allocation10 + $0xa18] sm:$0xff] }
 0x23f   :  { %1729 = vmatprep.subr.mxu0 %v1110_v5  ;;  %v847_v19 = vpop.f32.mrf.mxu0  ;;  %v936_v20 = vpop.f32.mrf.mxu1  ;;  %1818 = vmatprep.subr.mxu1 %v1366_v10  ;;  %v971_v44 = vadd.f32 %v2791_v7, %v842_v16  ;;  %v973_v50 = vadd.f32 %v2795_v34, %v931_v18  ;;  %v1077_v2 = vld [vmem:[#allocation10 + $0x290] sm:$0xff]  ;;  %v1302_v18 = vld [vmem:[#allocation10 + $0x998] sm:$0xff] }
 0x240   :  { %1730 = vmatpush1.msra.mxu0 %v1109_v11  ;;  %v972_v35 = vadd.f32 %v2799_v37, %v844_v17  ;;  %v974_v36 = vadd.f32 %v2803_v40, %v933_v39  ;;  %1819 = vmatpush1.msra.mxu1 %v1365_v15  ;;  %v848_v52 = vadd.f32 %v847_v19, %v2777_v25  ;;  %v1341_v25 = vld [vmem:[#allocation10 + $0xad0] sm:$0xff]  ;;  %v1062_v11 = vld [vmem:[#allocation10 + $0x218] sm:$0xff] }
 0x241   :  { %1619 = vmatprep.mubr.f32.mxu0 %v2824_v13  ;;  %v849_v47 = vpop.f32.mrf.mxu0  ;;  %v938_v23 = vpop.f32.mrf.mxu1  ;;  %1708 = vmatprep.mubr.f32.mxu1 %v2826_v14  ;;  %v2852_v60 = vmax.f32 %v971_v44, 0.0  ;;  %v2855_v63 = vmax.f32 %v973_v50, 0.0  ;;  %v1333_v5 = vld [vmem:[#allocation10 + $0xa90] sm:$0xff]  ;;  %v1054_v17 = vld [vmem:[#allocation10 + $0x1d8] sm:$0xff] }
 0x242   :  { %1731 = vmatprep.subr.mxu0 %v1102_v21  ;;  %v850_v22 = vadd.f32 %v849_v47, %v2785_v30  ;;  %v2840_v45 = vmax.f32 %v972_v35, 0.0  ;;  %1820 = vmatprep.subr.mxu1 %v1358_v32  ;;  %v939_v46 = vadd.f32 %v938_v23, %v2787_v31  ;;  %v2845_v51 = vmax.f32 %v974_v36, 0.0  ;;  %v1349_v30 = vld [vmem:[#allocation10 + $0xb10] sm:$0xff]  ;;  %v1310_v39 = vld [vmem:[#allocation10 + $0x9d8] sm:$0xff] }
 0x243   :  { %1620 = vmatmul.mubr.f32.gmra.mxu0 %v2830_v33  ;;  %1709 = vmatmul.mubr.f32.gmra.mxu1 %v2835_v41  ;;  %v937_v31 = vadd.f32 %v936_v20, %v2779_v59  ;;  %v975_v59 = vadd.f32 %v2791_v7, %v848_v52  ;;  %v1326_v7 = vld [vmem:[#allocation10 + $0xa58] sm:$0xff]  ;;  %v1069_v9 = vld [vmem:[#allocation10 + $0x250] sm:$0xff] }
 0x244   :  { %1732 = vmatpush1.msra.mxu0 %v1101_v24  ;;  %v976_v53 = vadd.f32 %v2799_v37, %v850_v22  ;;  %1821 = vmatpush1.msra.mxu1 %v1357_v42  ;;  %v978_v55 = vadd.f32 %v2803_v40, %v939_v46  ;;  %v1078_v37 = vld [vmem:[#allocation10 + $0x298] sm:$0xff]  ;;  %v1061_v15 = vld [vmem:[#allocation10 + $0x210] sm:$0xff] }
 0x245   :  { %1733 = vmatprep.subr.mxu0 %v1094_v43  ;;  %1822 = vmatprep.subr.mxu1 %v1350_v48  ;;  %v1334_v40 = vld [vmem:[#allocation10 + $0xa98] sm:$0xff]  ;;  %v977_v3 = vadd.f32 %v2795_v34, %v937_v31  ;;  %v2866_v8 = vmax.f32 %v975_v59, 0.0  ;;  %v1325_v34 = vld [vmem:[#allocation10 + $0xa50] sm:$0xff] }
 0x246   :  { %1734 = vmatpush1.msra.mxu0 %v1093_v49  ;;  %1823 = vmatpush1.msra.mxu1 %v1349_v30  ;;  %v2859_v0 = vmax.f32 %v976_v53, 0.0  ;;  %v2863_v4 = vmax.f32 %v978_v55, 0.0  ;;  %v1317_v16 = vld [vmem:[#allocation10 + $0xa10] sm:$0xff]  ;;  %v1046_v21 = vld [vmem:[#allocation10 + $0x198] sm:$0xff] }
 0x247   :  { %1625 = vmatprep.mubr.f32.mxu0 %v2840_v45  ;;  %1714 = vmatprep.mubr.f32.mxu1 %v2845_v51  ;;  %v2869_v10 = vmax.f32 %v977_v3, 0.0  ;;  %v1053_v19 = vld [vmem:[#allocation10 + $0x1d0] sm:$0xff]  ;;  %v1038_v36 = vld [vmem:[#allocation10 + $0x158] sm:$0xff] }
 0x248   :  { %1735 = vmatprep.subr.mxu0 %v1086_v54  ;;  %1824 = vmatprep.subr.mxu1 %v1342_v58  ;;  %v1309_v20 = vld [vmem:[#allocation10 + $0x9d0] sm:$0xff]  ;;  %v1294_v47 = vld [vmem:[#allocation10 + $0x958] sm:$0xff] }
 0x249   :  { %1626 = vmatmul.mubr.f32.gmra.mxu0 %v2852_v60  ;;  %1715 = vmatmul.mubr.f32.gmra.mxu1 %v2855_v63  ;;  %v1045_v32 = vld [vmem:[#allocation10 + $0x190] sm:$0xff]  ;;  %v1030_v22 = vld [vmem:[#allocation10 + $0x118] sm:$0xff] }
 0x24a   :  { %1736 = vmatpush1.msra.mxu0 %v1085_v62  ;;  %1825 = vmatpush1.msra.mxu1 %v1341_v25  ;;  %v1301_v35 = vld [vmem:[#allocation10 + $0x990] sm:$0xff]  ;;  %v1286_v42 = vld [vmem:[#allocation10 + $0x918] sm:$0xff] }
 0x24b   :  { %1737 = vmatprep.subr.mxu0 %v1078_v37  ;;  %1826 = vmatprep.subr.mxu1 %v1334_v40  ;;  %v1037_v23 = vld [vmem:[#allocation10 + $0x150] sm:$0xff]  ;;  %v1022_v46 = vld [vmem:[#allocation10 + $0xd8] sm:$0xff] }
 0x24c   :  { %1738 = vmatpush1.msra.mxu0 %v1077_v2  ;;  %1827 = vmatpush1.msra.mxu1 %v1333_v5  ;;  %v1293_v24 = vld [vmem:[#allocation10 + $0x950] sm:$0xff]  ;;  %v1278_v48 = vld [vmem:[#allocation10 + $0x8d8] sm:$0xff] }
 0x24d   :  { %1631 = vmatprep.mubr.f32.mxu0 %v2859_v0  ;;  %1720 = vmatprep.mubr.f32.mxu1 %v2863_v4  ;;  %v1029_v43 = vld [vmem:[#allocation10 + $0x110] sm:$0xff]  ;;  %v1014_v30 = vld [vmem:[#allocation10 + $0x98] sm:$0xff] }
 0x24e   :  { %1739 = vmatprep.subr.mxu0 %v1070_v6  ;;  %1828 = vmatprep.subr.mxu1 %v1326_v7  ;;  %v1285_v44 = vld [vmem:[#allocation10 + $0x910] sm:$0xff]  ;;  %v1270_v52 = vld [vmem:[#allocation10 + $0x898] sm:$0xff] }
 0x24f   :  { %1632 = vmatmul.mubr.f32.gmra.mxu0 %v2866_v8  ;;  %1721 = vmatmul.mubr.f32.gmra.mxu1 %v2869_v10  ;;  %v1021_v49 = vld [vmem:[#allocation10 + $0xd0] sm:$0xff]  ;;  %v1006_v31 = vld [vmem:[#allocation10 + $0x58] sm:$0xff] }
 0x250   :  { %1740 = vmatpush1.msra.mxu0 %v1069_v9  ;;  %1829 = vmatpush1.msra.mxu1 %v1325_v34  ;;  %v1277_v50 = vld [vmem:[#allocation10 + $0x8d0] sm:$0xff]  ;;  %v1262_v55 = vld [vmem:[#allocation10 + $0x858] sm:$0xff] }
 0x251   :  { %1741 = vmatprep.subr.mxu0 %v1062_v11  ;;  %1791 = vmatprep.mubr.f32.mxu0 %v2809_v56  ;;  %v1013_v53 = vld [vmem:[#allocation10 + $0x90] sm:$0xff]  ;;  %v998_v25 = vld [vmem:[#allocation10 + $0x18] sm:$0xff] }
 0x252   :  { %1830 = vmatprep.subr.mxu1 %v1318_v12  ;;  %1880 = vmatprep.mubr.f32.mxu1 %v2811_v57  ;;  %v1269_v54 = vld [vmem:[#allocation10 + $0x890] sm:$0xff]  ;;  %v1254_v37 = vld [vmem:[#allocation10 + $0x818] sm:$0xff] }
 0x253   :  { %1742 = vmatpush1.msra.mxu0 %v1061_v15  ;;  %1831 = vmatpush1.msra.mxu1 %v1317_v16  ;;  %v1005_v58 = vld [vmem:[#allocation10 + $0x50] sm:$0xff]  ;;  %v1246_v2 = vld [vmem:[#allocation10 + $0x7d8] sm:$0xff] }
 0x254   :  { %1743 = vmatprep.subr.mxu0 %v1054_v17  ;;  %1832 = vmatprep.subr.mxu1 %v1310_v39  ;;  %v1261_v62 = vld [vmem:[#allocation10 + $0x850] sm:$0xff]  ;;  %v1502_v3 = vld [vmem:[#allocation10 + $0xfd8] sm:$0xff] }
 0x255   :  { %1744 = vmatpush1.msra.mxu0 %v1053_v19  ;;  %1833 = vmatpush1.msra.mxu1 %v1309_v20  ;;  %v997_v59 = vld [vmem:[#allocation10 + $0x10] sm:$0xff]  ;;  %v1238_v7 = vld [vmem:[#allocation10 + $0x798] sm:$0xff] }
 0x256   :  { %1745 = vmatprep.subr.mxu0 %v1046_v21  ;;  %1834 = vmatprep.subr.mxu1 %v1302_v18  ;;  %v1253_v40 = vld [vmem:[#allocation10 + $0x810] sm:$0xff]  ;;  %v1494_v9 = vld [vmem:[#allocation10 + $0xf98] sm:$0xff] }
 0x257   :  { %1746 = vmatpush1.msra.mxu0 %v1045_v32  ;;  %1835 = vmatpush1.msra.mxu1 %v1301_v35  ;;  %v1245_v5 = vld [vmem:[#allocation10 + $0x7d0] sm:$0xff]  ;;  %v1230_v12 = vld [vmem:[#allocation10 + $0x758] sm:$0xff] }
 0x258   :  { %1747 = vmatprep.subr.mxu0 %v1038_v36  ;;  %1836 = vmatprep.subr.mxu1 %v1294_v47  ;;  %v1501_v6 = vld [vmem:[#allocation10 + $0xfd0] sm:$0xff]  ;;  %v1486_v15 = vld [vmem:[#allocation10 + $0xf58] sm:$0xff] }
 0x259   :  { %1748 = vmatpush1.msra.mxu0 %v1037_v23  ;;  %1837 = vmatpush1.msra.mxu1 %v1293_v24  ;;  %v1237_v34 = vld [vmem:[#allocation10 + $0x790] sm:$0xff]  ;;  %v1222_v39 = vld [vmem:[#allocation10 + $0x718] sm:$0xff] }
 0x25a   :  { %1749 = vmatprep.subr.mxu0 %v1030_v22  ;;  %1838 = vmatprep.subr.mxu1 %v1286_v42  ;;  %v1493_v11 = vld [vmem:[#allocation10 + $0xf90] sm:$0xff]  ;;  %v1478_v19 = vld [vmem:[#allocation10 + $0xf18] sm:$0xff] }
 0x25b   :  { %1750 = vmatpush1.msra.mxu0 %v1029_v43  ;;  %1839 = vmatpush1.msra.mxu1 %v1285_v44  ;;  %v1229_v16 = vld [vmem:[#allocation10 + $0x750] sm:$0xff]  ;;  %v1214_v18 = vld [vmem:[#allocation10 + $0x6d8] sm:$0xff] }
 0x25c   :  { %1751 = vmatprep.subr.mxu0 %v1022_v46  ;;  %1840 = vmatprep.subr.mxu1 %v1278_v48  ;;  %v1485_v17 = vld [vmem:[#allocation10 + $0xf50] sm:$0xff]  ;;  %v1470_v32 = vld [vmem:[#allocation10 + $0xed8] sm:$0xff] }
 0x25d   :  { %1752 = vmatpush1.msra.mxu0 %v1021_v49  ;;  %1841 = vmatpush1.msra.mxu1 %v1277_v50  ;;  %v1221_v20 = vld [vmem:[#allocation10 + $0x710] sm:$0xff]  ;;  %v1206_v47 = vld [vmem:[#allocation10 + $0x698] sm:$0xff] }
 0x25e   :  { %1753 = vmatprep.subr.mxu0 %v1014_v30  ;;  %1842 = vmatprep.subr.mxu1 %v1270_v52  ;;  %v1477_v21 = vld [vmem:[#allocation10 + $0xf10] sm:$0xff]  ;;  %v1462_v23 = vld [vmem:[#allocation10 + $0xe98] sm:$0xff] }
 0x25f   :  { %1754 = vmatpush1.msra.mxu0 %v1013_v53  ;;  %1843 = vmatpush1.msra.mxu1 %v1269_v54  ;;  %v1213_v35 = vld [vmem:[#allocation10 + $0x6d0] sm:$0xff]  ;;  %v1198_v42 = vld [vmem:[#allocation10 + $0x658] sm:$0xff] }
 0x260   :  { %1755 = vmatprep.subr.mxu0 %v1006_v31  ;;  %1844 = vmatprep.subr.mxu1 %v1262_v55  ;;  %v1469_v36 = vld [vmem:[#allocation10 + $0xed0] sm:$0xff]  ;;  %v1454_v43 = vld [vmem:[#allocation10 + $0xe58] sm:$0xff] }
 0x261   :  { %1756 = vmatpush1.msra.mxu0 %v1005_v58  ;;  %1845 = vmatpush1.msra.mxu1 %v1261_v62  ;;  %v1205_v24 = vld [vmem:[#allocation10 + $0x690] sm:$0xff]  ;;  %v1190_v48 = vld [vmem:[#allocation10 + $0x618] sm:$0xff] }
 0x262   :  { %1757 = vmatprep.subr.mxu0 %v998_v25  ;;  %1846 = vmatprep.subr.mxu1 %v1254_v37  ;;  %v1461_v22 = vld [vmem:[#allocation10 + $0xe90] sm:$0xff]  ;;  %v1446_v49 = vld [vmem:[#allocation10 + $0xe18] sm:$0xff] }
 0x263   :  { %1758 = vmatpush1.msra.mxu0 %v997_v59  ;;  %1847 = vmatpush1.msra.mxu1 %v1253_v40  ;;  %v1197_v44 = vld [vmem:[#allocation10 + $0x650] sm:$0xff]  ;;  %v1182_v52 = vld [vmem:[#allocation10 + $0x5d8] sm:$0xff] }
 0x264   :  { %1759 = vmatprep.subr.mxu0 %v1246_v2  ;;  %1848 = vmatprep.subr.mxu1 %v1502_v3  ;;  %v1453_v46 = vld [vmem:[#allocation10 + $0xe50] sm:$0xff]  ;;  %v1438_v53 = vld [vmem:[#allocation10 + $0xdd8] sm:$0xff] }
 0x265   :  { %1760 = vmatpush2.msra.mxu0 %v1245_v5  ;;  %1849 = vmatpush2.msra.mxu1 %v1501_v6  ;;  %v1189_v50 = vld [vmem:[#allocation10 + $0x610] sm:$0xff]  ;;  %v1174_v55 = vld [vmem:[#allocation10 + $0x598] sm:$0xff] }
 0x266   :  { %1761 = vmatprep.subr.mxu0 %v1238_v7  ;;  %1850 = vmatprep.subr.mxu1 %v1494_v9  ;;  %v1445_v30 = vld [vmem:[#allocation10 + $0xe10] sm:$0xff]  ;;  %v1430_v58 = vld [vmem:[#allocation10 + $0xd98] sm:$0xff] }
 0x267   :  { %1762 = vmatpush2.msra.mxu0 %v1237_v34  ;;  %1851 = vmatpush2.msra.mxu1 %v1493_v11  ;;  %v1181_v54 = vld [vmem:[#allocation10 + $0x5d0] sm:$0xff]  ;;  %v1166_v37 = vld [vmem:[#allocation10 + $0x558] sm:$0xff] }
 0x268   :  { %1763 = vmatprep.subr.mxu0 %v1230_v12  ;;  %1852 = vmatprep.subr.mxu1 %v1486_v15  ;;  %v1437_v31 = vld [vmem:[#allocation10 + $0xdd0] sm:$0xff]  ;;  %v1422_v59 = vld [vmem:[#allocation10 + $0xd58] sm:$0xff] }
 0x269   :  { %1764 = vmatpush2.msra.mxu0 %v1229_v16  ;;  %1853 = vmatpush2.msra.mxu1 %v1485_v17  ;;  %v1173_v62 = vld [vmem:[#allocation10 + $0x590] sm:$0xff]  ;;  %v1158_v3 = vld [vmem:[#allocation10 + $0x518] sm:$0xff] }
 0x26a   :  { %1765 = vmatprep.subr.mxu0 %v1222_v39  ;;  %1854 = vmatprep.subr.mxu1 %v1478_v19  ;;  %v1429_v25 = vld [vmem:[#allocation10 + $0xd90] sm:$0xff]  ;;  %v1414_v5 = vld [vmem:[#allocation10 + $0xd18] sm:$0xff] }
 0x26b   :  { %1766 = vmatpush2.msra.mxu0 %v1221_v20  ;;  %1855 = vmatpush2.msra.mxu1 %v1477_v21  ;;  %v1165_v40 = vld [vmem:[#allocation10 + $0x550] sm:$0xff]  ;;  %v1150_v9 = vld [vmem:[#allocation10 + $0x4d8] sm:$0xff] }
 0x26c   :  { %1767 = vmatprep.subr.mxu0 %v1214_v18  ;;  %1856 = vmatprep.subr.mxu1 %v1470_v32  ;;  %v1421_v2 = vld [vmem:[#allocation10 + $0xd50] sm:$0xff]  ;;  %v1406_v34 = vld [vmem:[#allocation10 + $0xcd8] sm:$0xff] }
 0x26d   :  { %1768 = vmatpush2.msra.mxu0 %v1213_v35  ;;  %1857 = vmatpush2.msra.mxu1 %v1469_v36  ;;  %v1157_v6 = vld [vmem:[#allocation10 + $0x510] sm:$0xff]  ;;  %v1142_v15 = vld [vmem:[#allocation10 + $0x498] sm:$0xff] }
 0x26e   :  { %1769 = vmatprep.subr.mxu0 %v1206_v47  ;;  %1858 = vmatprep.subr.mxu1 %v1462_v23  ;;  %v1413_v7 = vld [vmem:[#allocation10 + $0xd10] sm:$0xff]  ;;  %v1398_v16 = vld [vmem:[#allocation10 + $0xc98] sm:$0xff]  ;;  %v1120_v23 = vld [vmem:[#allocation10 + $0x3e8] sm:$0xff] }
 0x26f   :  { %1770 = vmatpush2.msra.mxu0 %v1205_v24  ;;  %1859 = vmatpush2.msra.mxu1 %v1461_v22  ;;  %v1149_v11 = vld [vmem:[#allocation10 + $0x4d0] sm:$0xff]  ;;  %v1134_v19 = vld [vmem:[#allocation10 + $0x458] sm:$0xff]  ;;  %v1376_v24 = vld [vmem:[#allocation10 + $0xbe8] sm:$0xff] }
 0x270   :  { %1771 = vmatprep.subr.mxu0 %v1198_v42  ;;  %1860 = vmatprep.subr.mxu1 %v1454_v43  ;;  %v1405_v12 = vld [vmem:[#allocation10 + $0xcd0] sm:$0xff]  ;;  %v1390_v20 = vld [vmem:[#allocation10 + $0xc58] sm:$0xff]  ;;  %v1119_v22 = vld [vmem:[#allocation10 + $0x3e0] sm:$0xff] }
 0x271   :  { %1772 = vmatpush2.msra.mxu0 %v1197_v44  ;;  %1861 = vmatpush2.msra.mxu1 %v1453_v46  ;;  %v1141_v17 = vld [vmem:[#allocation10 + $0x490] sm:$0xff]  ;;  %v1126_v32 = vld [vmem:[#allocation10 + $0x418] sm:$0xff]  ;;  %v1375_v42 = vld [vmem:[#allocation10 + $0xbe0] sm:$0xff] }
 0x272   :  { %1773 = vmatprep.subr.mxu0 %v1190_v48  ;;  %1862 = vmatprep.subr.mxu1 %v1446_v49  ;;  %v1397_v39 = vld [vmem:[#allocation10 + $0xc90] sm:$0xff]  ;;  %v1382_v35 = vld [vmem:[#allocation10 + $0xc18] sm:$0xff]  ;;  %v1112_v43 = vld [vmem:[#allocation10 + $0x3a8] sm:$0xff] }
 0x273   :  { %1774 = vmatpush2.msra.mxu0 %v1189_v50  ;;  %1863 = vmatpush2.msra.mxu1 %v1445_v30  ;;  %v1133_v21 = vld [vmem:[#allocation10 + $0x450] sm:$0xff]  ;;  %v1368_v44 = vld [vmem:[#allocation10 + $0xba8] sm:$0xff]  ;;  %v1111_v46 = vld [vmem:[#allocation10 + $0x3a0] sm:$0xff] }
 0x274   :  { %1775 = vmatprep.subr.mxu0 %v1182_v52  ;;  %1864 = vmatprep.subr.mxu1 %v1438_v53  ;;  %v1389_v18 = vld [vmem:[#allocation10 + $0xc50] sm:$0xff]  ;;  %v1367_v48 = vld [vmem:[#allocation10 + $0xba0] sm:$0xff]  ;;  %v1104_v49 = vld [vmem:[#allocation10 + $0x368] sm:$0xff] }
 0x275   :  { %1776 = vmatpush2.msra.mxu0 %v1181_v54  ;;  %1865 = vmatpush2.msra.mxu1 %v1437_v31  ;;  %v1125_v36 = vld [vmem:[#allocation10 + $0x410] sm:$0xff]  ;;  %v1360_v50 = vld [vmem:[#allocation10 + $0xb68] sm:$0xff]  ;;  %v1103_v30 = vld [vmem:[#allocation10 + $0x360] sm:$0xff] }
 0x276   :  { %1777 = vmatprep.subr.mxu0 %v1174_v55  ;;  %1866 = vmatprep.subr.mxu1 %v1430_v58  ;;  %v1381_v47 = vld [vmem:[#allocation10 + $0xc10] sm:$0xff]  ;;  %v1359_v52 = vld [vmem:[#allocation10 + $0xb60] sm:$0xff]  ;;  %v1096_v53 = vld [vmem:[#allocation10 + $0x328] sm:$0xff] }
 0x277   :  { %1778 = vmatpush2.msra.mxu0 %v1173_v62  ;;  %1867 = vmatpush2.msra.mxu1 %v1429_v25  ;;  %v1352_v54 = vld [vmem:[#allocation10 + $0xb28] sm:$0xff]  ;;  %v1095_v31 = vld [vmem:[#allocation10 + $0x320] sm:$0xff] }
 0x278   :  { %1779 = vmatprep.subr.mxu0 %v1166_v37  ;;  %1868 = vmatprep.subr.mxu1 %v1422_v59  ;;  %v1351_v55 = vld [vmem:[#allocation10 + $0xb20] sm:$0xff]  ;;  %v1088_v58 = vld [vmem:[#allocation10 + $0x2e8] sm:$0xff] }
 0x279   :  { %1780 = vmatpush2.msra.mxu0 %v1165_v40  ;;  %1869 = vmatpush2.msra.mxu1 %v1421_v2  ;;  %v1344_v62 = vld [vmem:[#allocation10 + $0xae8] sm:$0xff]  ;;  %v1087_v25 = vld [vmem:[#allocation10 + $0x2e0] sm:$0xff] }
 0x27a   :  { %1781 = vmatprep.subr.mxu0 %v1158_v3  ;;  %1870 = vmatprep.subr.mxu1 %v1414_v5  ;;  %v1343_v37 = vld [vmem:[#allocation10 + $0xae0] sm:$0xff]  ;;  %v1080_v59 = vld [vmem:[#allocation10 + $0x2a8] sm:$0xff] }
 0x27b   :  { %1782 = vmatpush2.msra.mxu0 %v1157_v6  ;;  %1871 = vmatpush2.msra.mxu1 %v1413_v7  ;;  %v1336_v40 = vld [vmem:[#allocation10 + $0xaa8] sm:$0xff]  ;;  %v1079_v2 = vld [vmem:[#allocation10 + $0x2a0] sm:$0xff] }
 0x27c   :  { %1783 = vmatprep.subr.mxu0 %v1150_v9  ;;  %1872 = vmatprep.subr.mxu1 %v1406_v34  ;;  %v1335_v3 = vld [vmem:[#allocation10 + $0xaa0] sm:$0xff]  ;;  %v1072_v5 = vld [vmem:[#allocation10 + $0x268] sm:$0xff] }
 0x27d   :  { %1784 = vmatpush2.msra.mxu0 %v1149_v11  ;;  %1873 = vmatpush2.msra.mxu1 %v1405_v12  ;;  %v1328_v6 = vld [vmem:[#allocation10 + $0xa68] sm:$0xff]  ;;  %v1071_v7 = vld [vmem:[#allocation10 + $0x260] sm:$0xff] }
 0x27e   :  { %1785 = vmatprep.subr.mxu0 %v1142_v15  ;;  %1874 = vmatprep.subr.mxu1 %v1398_v16  ;;  %v1327_v9 = vld [vmem:[#allocation10 + $0xa60] sm:$0xff]  ;;  %v1064_v34 = vld [vmem:[#allocation10 + $0x228] sm:$0xff] }
 0x27f   :  { %1786 = vmatpush2.msra.mxu0 %v1141_v17  ;;  %1875 = vmatpush2.msra.mxu1 %v1397_v39  ;;  %v1320_v11 = vld [vmem:[#allocation10 + $0xa28] sm:$0xff]  ;;  %v1063_v12 = vld [vmem:[#allocation10 + $0x220] sm:$0xff] }
 0x280   :  { %1787 = vmatprep.subr.mxu0 %v1134_v19  ;;  %1876 = vmatprep.subr.mxu1 %v1390_v20  ;;  %v1319_v15 = vld [vmem:[#allocation10 + $0xa20] sm:$0xff]  ;;  %v1056_v16 = vld [vmem:[#allocation10 + $0x1e8] sm:$0xff] }
 0x281   :  { %1788 = vmatpush2.msra.mxu0 %v1133_v21  ;;  %1877 = vmatpush2.msra.mxu1 %v1389_v18  ;;  %v1312_v17 = vld [vmem:[#allocation10 + $0x9e8] sm:$0xff]  ;;  %v1055_v39 = vld [vmem:[#allocation10 + $0x1e0] sm:$0xff] }
 0x282   :  { %1789 = vmatprep.subr.mxu0 %v1126_v32  ;;  %1878 = vmatprep.subr.mxu1 %v1382_v35  ;;  %v1311_v19 = vld [vmem:[#allocation10 + $0x9e0] sm:$0xff]  ;;  %v1048_v20 = vld [vmem:[#allocation10 + $0x1a8] sm:$0xff] }
 0x283   :  { %1790 = vmatpush2.msra.mxu0 %v1125_v36  ;;  %1879 = vmatpush2.msra.mxu1 %v1381_v47  ;;  %v1304_v21 = vld [vmem:[#allocation10 + $0x9a8] sm:$0xff]  ;;  %v1047_v18 = vld [vmem:[#allocation10 + $0x1a0] sm:$0xff] }
 0x284   :  { %1792 = vmatmul.mubr.f32.vlgmr.msra.gmra.mxu0 %v2813_v61  ;;  %1881 = vmatmul.mubr.f32.vlgmr.msra.gmra.mxu1 %v2815_v1  ;;  %v1303_v32 = vld [vmem:[#allocation10 + $0x9a0] sm:$0xff]  ;;  %v1040_v35 = vld [vmem:[#allocation10 + $0x168] sm:$0xff] }
 0x285   :  { %1905 = vmatprep.subr.mxu0 %v1120_v23  ;;  %1994 = vmatprep.subr.mxu1 %v1376_v24  ;;  %v1296_v36 = vld [vmem:[#allocation10 + $0x968] sm:$0xff]  ;;  %v1039_v47 = vld [vmem:[#allocation10 + $0x160] sm:$0xff] }
 0x286   :  { %1797 = vmatprep.mubr.f32.mxu0 %v2824_v13  ;;  %1886 = vmatprep.mubr.f32.mxu1 %v2826_v14  ;;  %v1295_v23 = vld [vmem:[#allocation10 + $0x960] sm:$0xff]  ;;  %v1032_v24 = vld [vmem:[#allocation10 + $0x128] sm:$0xff] }
 0x287   :  { %1906 = vmatpush1.msra.mxu0 %v1119_v22  ;;  %1995 = vmatpush1.msra.mxu1 %v1375_v42  ;;  %v1288_v22 = vld [vmem:[#allocation10 + $0x928] sm:$0xff]  ;;  %v1031_v42 = vld [vmem:[#allocation10 + $0x120] sm:$0xff] }
 0x288   :  { %1907 = vmatprep.subr.mxu0 %v1112_v43  ;;  %1996 = vmatprep.subr.mxu1 %v1368_v44  ;;  %v1287_v43 = vld [vmem:[#allocation10 + $0x920] sm:$0xff]  ;;  %v1024_v44 = vld [vmem:[#allocation10 + $0xe8] sm:$0xff] }
 0x289   :  { %1908 = vmatpush1.msra.mxu0 %v1111_v46  ;;  %1997 = vmatpush1.msra.mxu1 %v1367_v48  ;;  %v1280_v46 = vld [vmem:[#allocation10 + $0x8e8] sm:$0xff]  ;;  %v1023_v48 = vld [vmem:[#allocation10 + $0xe0] sm:$0xff] }
 0x28a   :  { %1798 = vmatmul.mubr.f32.gmra.mxu0 %v2830_v33  ;;  %1887 = vmatmul.mubr.f32.gmra.mxu1 %v2835_v41 }
 0x28b   :  { %1909 = vmatprep.subr.mxu0 %v1104_v49  ;;  %1998 = vmatprep.subr.mxu1 %v1360_v50  ;;  %v1279_v49 = vld [vmem:[#allocation10 + $0x8e0] sm:$0xff]  ;;  %v1016_v50 = vld [vmem:[#allocation10 + $0xa8] sm:$0xff] }
 0x28c   :  { %1803 = vmatprep.mubr.f32.mxu0 %v2840_v45  ;;  %1892 = vmatprep.mubr.f32.mxu1 %v2845_v51 }
 0x28d   :  { %1910 = vmatpush1.msra.mxu0 %v1103_v30  ;;  %1999 = vmatpush1.msra.mxu1 %v1359_v52  ;;  %v1272_v30 = vld [vmem:[#allocation10 + $0x8a8] sm:$0xff]  ;;  %v1015_v52 = vld [vmem:[#allocation10 + $0xa0] sm:$0xff] }
 0x28e   :  { %1911 = vmatprep.subr.mxu0 %v1096_v53  ;;  %2000 = vmatprep.subr.mxu1 %v1352_v54  ;;  %v1271_v53 = vld [vmem:[#allocation10 + $0x8a0] sm:$0xff]  ;;  %v1008_v54 = vld [vmem:[#allocation10 + $0x68] sm:$0xff] }
 0x28f   :  { %1912 = vmatpush1.msra.mxu0 %v1095_v31  ;;  %2001 = vmatpush1.msra.mxu1 %v1351_v55  ;;  %v1264_v31 = vld [vmem:[#allocation10 + $0x868] sm:$0xff]  ;;  %v1007_v55 = vld [vmem:[#allocation10 + $0x60] sm:$0xff] }
 0x290   :  { %1804 = vmatmul.mubr.f32.gmra.mxu0 %v2852_v60  ;;  %1893 = vmatmul.mubr.f32.gmra.mxu1 %v2855_v63 }
 0x291   :  { %1913 = vmatprep.subr.mxu0 %v1088_v58  ;;  %2002 = vmatprep.subr.mxu1 %v1344_v62  ;;  %v1263_v58 = vld [vmem:[#allocation10 + $0x860] sm:$0xff]  ;;  %v1000_v62 = vld [vmem:[#allocation10 + $0x28] sm:$0xff] }
 0x292   :  { %1809 = vmatprep.mubr.f32.mxu0 %v2859_v0  ;;  %1898 = vmatprep.mubr.f32.mxu1 %v2863_v4 }
 0x293   :  { %1914 = vmatpush1.msra.mxu0 %v1087_v25  ;;  %2003 = vmatpush1.msra.mxu1 %v1343_v37  ;;  %v1256_v25 = vld [vmem:[#allocation10 + $0x828] sm:$0xff]  ;;  %v999_v37 = vld [vmem:[#allocation10 + $0x20] sm:$0xff] }
 0x294   :  { %1915 = vmatprep.subr.mxu0 %v1080_v59  ;;  %2004 = vmatprep.subr.mxu1 %v1336_v40  ;;  %v1255_v59 = vld [vmem:[#allocation10 + $0x820] sm:$0xff]  ;;  %v1248_v40 = vld [vmem:[#allocation10 + $0x7e8] sm:$0xff] }
 0x295   :  { %1916 = vmatpush1.msra.mxu0 %v1079_v2  ;;  %2005 = vmatpush1.msra.mxu1 %v1335_v3  ;;  %v1504_v2 = vld [vmem:[#allocation10 + $0xfe8] sm:$0xff]  ;;  %v1247_v3 = vld [vmem:[#allocation10 + $0x7e0] sm:$0xff] }
 0x296   :  { %1810 = vmatmul.mubr.f32.gmra.mxu0 %v2866_v8  ;;  %1899 = vmatmul.mubr.f32.gmra.mxu1 %v2869_v10 }
 0x297   :  { %1917 = vmatprep.subr.mxu0 %v1072_v5  ;;  %2006 = vmatprep.subr.mxu1 %v1328_v6  ;;  %v1503_v5 = vld [vmem:[#allocation10 + $0xfe0] sm:$0xff]  ;;  %v1240_v6 = vld [vmem:[#allocation10 + $0x7a8] sm:$0xff] }
 0x298   :  { %1918 = vmatpush1.msra.mxu0 %v1071_v7  ;;  %1969 = vmatprep.mubr.f32.mxu0 %v2809_v56  ;;  %v1496_v7 = vld [vmem:[#allocation10 + $0xfa8] sm:$0xff] }
 0x299   :  { %2007 = vmatpush1.msra.mxu1 %v1327_v9  ;;  %2058 = vmatprep.mubr.f32.mxu1 %v2811_v57  ;;  %v1239_v9 = vld [vmem:[#allocation10 + $0x7a0] sm:$0xff] }
 0x29a   :  { %1919 = vmatprep.subr.mxu0 %v1064_v34  ;;  %2008 = vmatprep.subr.mxu1 %v1320_v11  ;;  %v1495_v34 = vld [vmem:[#allocation10 + $0xfa0] sm:$0xff]  ;;  %v1232_v11 = vld [vmem:[#allocation10 + $0x768] sm:$0xff] }
 0x29b   :  { %1920 = vmatpush1.msra.mxu0 %v1063_v12  ;;  %2009 = vmatpush1.msra.mxu1 %v1319_v15  ;;  %v1488_v12 = vld [vmem:[#allocation10 + $0xf68] sm:$0xff]  ;;  %v1231_v15 = vld [vmem:[#allocation10 + $0x760] sm:$0xff] }
 0x29c   :  { %1921 = vmatprep.subr.mxu0 %v1056_v16  ;;  %2010 = vmatprep.subr.mxu1 %v1312_v17  ;;  %v1487_v16 = vld [vmem:[#allocation10 + $0xf60] sm:$0xff]  ;;  %v1224_v17 = vld [vmem:[#allocation10 + $0x728] sm:$0xff] }
 0x29d   :  { %1922 = vmatpush1.msra.mxu0 %v1055_v39  ;;  %2011 = vmatpush1.msra.mxu1 %v1311_v19  ;;  %v1480_v39 = vld [vmem:[#allocation10 + $0xf28] sm:$0xff]  ;;  %v1223_v19 = vld [vmem:[#allocation10 + $0x720] sm:$0xff] }
 0x29e   :  { %1923 = vmatprep.subr.mxu0 %v1048_v20  ;;  %2012 = vmatprep.subr.mxu1 %v1304_v21  ;;  %v1479_v20 = vld [vmem:[#allocation10 + $0xf20] sm:$0xff]  ;;  %v1216_v21 = vld [vmem:[#allocation10 + $0x6e8] sm:$0xff] }
 0x29f   :  { %1924 = vmatpush1.msra.mxu0 %v1047_v18  ;;  %2013 = vmatpush1.msra.mxu1 %v1303_v32  ;;  %v1472_v18 = vld [vmem:[#allocation10 + $0xee8] sm:$0xff]  ;;  %v1215_v32 = vld [vmem:[#allocation10 + $0x6e0] sm:$0xff] }
 0x2a0   :  { %1925 = vmatprep.subr.mxu0 %v1040_v35  ;;  %2014 = vmatprep.subr.mxu1 %v1296_v36  ;;  %v1471_v35 = vld [vmem:[#allocation10 + $0xee0] sm:$0xff]  ;;  %v1208_v36 = vld [vmem:[#allocation10 + $0x6a8] sm:$0xff] }
 0x2a1   :  { %1926 = vmatpush1.msra.mxu0 %v1039_v47  ;;  %2015 = vmatpush1.msra.mxu1 %v1295_v23  ;;  %v1464_v47 = vld [vmem:[#allocation10 + $0xea8] sm:$0xff]  ;;  %v1207_v23 = vld [vmem:[#allocation10 + $0x6a0] sm:$0xff] }
 0x2a2   :  { %1927 = vmatprep.subr.mxu0 %v1032_v24  ;;  %2016 = vmatprep.subr.mxu1 %v1288_v22  ;;  %v1463_v24 = vld [vmem:[#allocation10 + $0xea0] sm:$0xff]  ;;  %v1200_v22 = vld [vmem:[#allocation10 + $0x668] sm:$0xff] }
 0x2a3   :  { %1928 = vmatpush1.msra.mxu0 %v1031_v42  ;;  %2017 = vmatpush1.msra.mxu1 %v1287_v43  ;;  %v1456_v42 = vld [vmem:[#allocation10 + $0xe68] sm:$0xff]  ;;  %v1199_v43 = vld [vmem:[#allocation10 + $0x660] sm:$0xff] }
 0x2a4   :  { %1929 = vmatprep.subr.mxu0 %v1024_v44  ;;  %2018 = vmatprep.subr.mxu1 %v1280_v46  ;;  %v1455_v44 = vld [vmem:[#allocation10 + $0xe60] sm:$0xff]  ;;  %v1192_v46 = vld [vmem:[#allocation10 + $0x628] sm:$0xff] }
 0x2a5   :  { %1930 = vmatpush1.msra.mxu0 %v1023_v48  ;;  %2019 = vmatpush1.msra.mxu1 %v1279_v49  ;;  %v1448_v48 = vld [vmem:[#allocation10 + $0xe28] sm:$0xff]  ;;  %v1191_v49 = vld [vmem:[#allocation10 + $0x620] sm:$0xff] }
 0x2a6   :  { %1931 = vmatprep.subr.mxu0 %v1016_v50  ;;  %2020 = vmatprep.subr.mxu1 %v1272_v30  ;;  %v1447_v50 = vld [vmem:[#allocation10 + $0xe20] sm:$0xff]  ;;  %v1184_v30 = vld [vmem:[#allocation10 + $0x5e8] sm:$0xff] }
 0x2a7   :  { %1932 = vmatpush1.msra.mxu0 %v1015_v52  ;;  %2021 = vmatpush1.msra.mxu1 %v1271_v53  ;;  %v1440_v52 = vld [vmem:[#allocation10 + $0xde8] sm:$0xff]  ;;  %v1183_v53 = vld [vmem:[#allocation10 + $0x5e0] sm:$0xff] }
 0x2a8   :  { %1933 = vmatprep.subr.mxu0 %v1008_v54  ;;  %2022 = vmatprep.subr.mxu1 %v1264_v31  ;;  %v1439_v54 = vld [vmem:[#allocation10 + $0xde0] sm:$0xff]  ;;  %v1176_v31 = vld [vmem:[#allocation10 + $0x5a8] sm:$0xff] }
 0x2a9   :  { %1934 = vmatpush1.msra.mxu0 %v1007_v55  ;;  %2023 = vmatpush1.msra.mxu1 %v1263_v58  ;;  %v1432_v55 = vld [vmem:[#allocation10 + $0xda8] sm:$0xff]  ;;  %v1175_v58 = vld [vmem:[#allocation10 + $0x5a0] sm:$0xff] }
 0x2aa   :  { %1935 = vmatprep.subr.mxu0 %v1000_v62  ;;  %2024 = vmatprep.subr.mxu1 %v1256_v25  ;;  %v1431_v62 = vld [vmem:[#allocation10 + $0xda0] sm:$0xff]  ;;  %v1168_v25 = vld [vmem:[#allocation10 + $0x568] sm:$0xff] }
 0x2ab   :  { %1936 = vmatpush1.msra.mxu0 %v999_v37  ;;  %2025 = vmatpush1.msra.mxu1 %v1255_v59  ;;  %v1424_v37 = vld [vmem:[#allocation10 + $0xd68] sm:$0xff]  ;;  %v1167_v59 = vld [vmem:[#allocation10 + $0x560] sm:$0xff] }
 0x2ac   :  { %1937 = vmatprep.subr.mxu0 %v1248_v40  ;;  %2026 = vmatprep.subr.mxu1 %v1504_v2  ;;  %v1423_v40 = vld [vmem:[#allocation10 + $0xd60] sm:$0xff]  ;;  %v1160_v2 = vld [vmem:[#allocation10 + $0x528] sm:$0xff] }
 0x2ad   :  { %1938 = vmatpush2.msra.mxu0 %v1247_v3  ;;  %2027 = vmatpush2.msra.mxu1 %v1503_v5  ;;  %v1416_v3 = vld [vmem:[#allocation10 + $0xd28] sm:$0xff]  ;;  %v1159_v5 = vld [vmem:[#allocation10 + $0x520] sm:$0xff] }
 0x2ae   :  { %1939 = vmatprep.subr.mxu0 %v1240_v6  ;;  %2028 = vmatprep.subr.mxu1 %v1496_v7  ;;  %v1415_v6 = vld [vmem:[#allocation10 + $0xd20] sm:$0xff]  ;;  %v1152_v7 = vld [vmem:[#allocation10 + $0x4e8] sm:$0xff] }
 0x2af   :  { %1940 = vmatpush2.msra.mxu0 %v1239_v9  ;;  %2029 = vmatpush2.msra.mxu1 %v1495_v34  ;;  %v1408_v9 = vld [vmem:[#allocation10 + $0xce8] sm:$0xff]  ;;  %v1151_v34 = vld [vmem:[#allocation10 + $0x4e0] sm:$0xff] }
 0x2b0   :  { %1941 = vmatprep.subr.mxu0 %v1232_v11  ;;  %2030 = vmatprep.subr.mxu1 %v1488_v12  ;;  %v1407_v11 = vld [vmem:[#allocation10 + $0xce0] sm:$0xff]  ;;  %v1144_v12 = vld [vmem:[#allocation10 + $0x4a8] sm:$0xff] }
 0x2b1   :  { %1942 = vmatpush2.msra.mxu0 %v1231_v15  ;;  %2031 = vmatpush2.msra.mxu1 %v1487_v16  ;;  %v1400_v15 = vld [vmem:[#allocation10 + $0xca8] sm:$0xff]  ;;  %v1143_v16 = vld [vmem:[#allocation10 + $0x4a0] sm:$0xff] }
 0x2b2   :  { %1943 = vmatprep.subr.mxu0 %v1224_v17  ;;  %2032 = vmatprep.subr.mxu1 %v1480_v39  ;;  %v1399_v17 = vld [vmem:[#allocation10 + $0xca0] sm:$0xff]  ;;  %v1136_v39 = vld [vmem:[#allocation10 + $0x468] sm:$0xff] }
 0x2b3   :  { %1944 = vmatpush2.msra.mxu0 %v1223_v19  ;;  %2033 = vmatpush2.msra.mxu1 %v1479_v20  ;;  %v1392_v19 = vld [vmem:[#allocation10 + $0xc68] sm:$0xff]  ;;  %v1135_v20 = vld [vmem:[#allocation10 + $0x460] sm:$0xff] }
 0x2b4   :  { %1945 = vmatprep.subr.mxu0 %v1216_v21  ;;  %2034 = vmatprep.subr.mxu1 %v1472_v18  ;;  %v1391_v21 = vld [vmem:[#allocation10 + $0xc60] sm:$0xff]  ;;  %v1128_v18 = vld [vmem:[#allocation10 + $0x428] sm:$0xff] }
 0x2b5   :  { %1946 = vmatpush2.msra.mxu0 %v1215_v32  ;;  %2035 = vmatpush2.msra.mxu1 %v1471_v35  ;;  %v1384_v32 = vld [vmem:[#allocation10 + $0xc28] sm:$0xff]  ;;  %v1127_v35 = vld [vmem:[#allocation10 + $0x420] sm:$0xff] }
 0x2b6   :  { %1947 = vmatprep.subr.mxu0 %v1208_v36  ;;  %2036 = vmatprep.subr.mxu1 %v1464_v47  ;;  %v1383_v36 = vld [vmem:[#allocation10 + $0xc20] sm:$0xff]  ;;  %v1122_v47 = vld [vmem:[#allocation10 + $0x3f8] sm:$0xff] }
 0x2b7   :  { %1948 = vmatpush2.msra.mxu0 %v1207_v23  ;;  %2037 = vmatpush2.msra.mxu1 %v1463_v24  ;;  %v1378_v23 = vld [vmem:[#allocation10 + $0xbf8] sm:$0xff]  ;;  %v1121_v24 = vld [vmem:[#allocation10 + $0x3f0] sm:$0xff] }
 0x2b8   :  { %1949 = vmatprep.subr.mxu0 %v1200_v22  ;;  %2038 = vmatprep.subr.mxu1 %v1456_v42  ;;  %v1377_v22 = vld [vmem:[#allocation10 + $0xbf0] sm:$0xff]  ;;  %v1114_v42 = vld [vmem:[#allocation10 + $0x3b8] sm:$0xff] }
 0x2b9   :  { %1950 = vmatpush2.msra.mxu0 %v1199_v43  ;;  %2039 = vmatpush2.msra.mxu1 %v1455_v44  ;;  %v1370_v43 = vld [vmem:[#allocation10 + $0xbb8] sm:$0xff]  ;;  %v1113_v44 = vld [vmem:[#allocation10 + $0x3b0] sm:$0xff] }
 0x2ba   :  { %1951 = vmatprep.subr.mxu0 %v1192_v46  ;;  %2040 = vmatprep.subr.mxu1 %v1448_v48  ;;  %v1369_v46 = vld [vmem:[#allocation10 + $0xbb0] sm:$0xff]  ;;  %v1106_v48 = vld [vmem:[#allocation10 + $0x378] sm:$0xff] }
 0x2bb   :  { %1952 = vmatpush2.msra.mxu0 %v1191_v49  ;;  %2041 = vmatpush2.msra.mxu1 %v1447_v50  ;;  %v1362_v49 = vld [vmem:[#allocation10 + $0xb78] sm:$0xff]  ;;  %v1105_v50 = vld [vmem:[#allocation10 + $0x370] sm:$0xff] }
 0x2bc   :  { %1953 = vmatprep.subr.mxu0 %v1184_v30  ;;  %2042 = vmatprep.subr.mxu1 %v1440_v52  ;;  %v1361_v30 = vld [vmem:[#allocation10 + $0xb70] sm:$0xff]  ;;  %v1098_v52 = vld [vmem:[#allocation10 + $0x338] sm:$0xff] }
 0x2bd   :  { %1954 = vmatpush2.msra.mxu0 %v1183_v53  ;;  %2043 = vmatpush2.msra.mxu1 %v1439_v54  ;;  %v1354_v53 = vld [vmem:[#allocation10 + $0xb38] sm:$0xff]  ;;  %v1097_v54 = vld [vmem:[#allocation10 + $0x330] sm:$0xff] }
 0x2be   :  { %1955 = vmatprep.subr.mxu0 %v1176_v31  ;;  %2044 = vmatprep.subr.mxu1 %v1432_v55  ;;  %v1353_v31 = vld [vmem:[#allocation10 + $0xb30] sm:$0xff]  ;;  %v1090_v55 = vld [vmem:[#allocation10 + $0x2f8] sm:$0xff] }
 0x2bf   :  { %1956 = vmatpush2.msra.mxu0 %v1175_v58  ;;  %2045 = vmatpush2.msra.mxu1 %v1431_v62  ;;  %v1346_v58 = vld [vmem:[#allocation10 + $0xaf8] sm:$0xff]  ;;  %v1089_v62 = vld [vmem:[#allocation10 + $0x2f0] sm:$0xff] }
 0x2c0   :  { %1957 = vmatprep.subr.mxu0 %v1168_v25  ;;  %2046 = vmatprep.subr.mxu1 %v1424_v37  ;;  %v1345_v25 = vld [vmem:[#allocation10 + $0xaf0] sm:$0xff]  ;;  %v1082_v37 = vld [vmem:[#allocation10 + $0x2b8] sm:$0xff] }
 0x2c1   :  { %1958 = vmatpush2.msra.mxu0 %v1167_v59  ;;  %2047 = vmatpush2.msra.mxu1 %v1423_v40  ;;  %v1338_v59 = vld [vmem:[#allocation10 + $0xab8] sm:$0xff]  ;;  %v1081_v40 = vld [vmem:[#allocation10 + $0x2b0] sm:$0xff] }
 0x2c2   :  { %1959 = vmatprep.subr.mxu0 %v1160_v2  ;;  %2048 = vmatprep.subr.mxu1 %v1416_v3  ;;  %v1337_v2 = vld [vmem:[#allocation10 + $0xab0] sm:$0xff]  ;;  %v1074_v3 = vld [vmem:[#allocation10 + $0x278] sm:$0xff] }
 0x2c3   :  { %1960 = vmatpush2.msra.mxu0 %v1159_v5  ;;  %2049 = vmatpush2.msra.mxu1 %v1415_v6  ;;  %v1330_v5 = vld [vmem:[#allocation10 + $0xa78] sm:$0xff]  ;;  %v1073_v6 = vld [vmem:[#allocation10 + $0x270] sm:$0xff] }
 0x2c4   :  { %1961 = vmatprep.subr.mxu0 %v1152_v7  ;;  %2050 = vmatprep.subr.mxu1 %v1408_v9  ;;  %v1329_v7 = vld [vmem:[#allocation10 + $0xa70] sm:$0xff]  ;;  %v1066_v9 = vld [vmem:[#allocation10 + $0x238] sm:$0xff] }
 0x2c5   :  { %1962 = vmatpush2.msra.mxu0 %v1151_v34  ;;  %2051 = vmatpush2.msra.mxu1 %v1407_v11  ;;  %v1322_v34 = vld [vmem:[#allocation10 + $0xa38] sm:$0xff]  ;;  %v1065_v11 = vld [vmem:[#allocation10 + $0x230] sm:$0xff] }
 0x2c6   :  { %1963 = vmatprep.subr.mxu0 %v1144_v12  ;;  %2052 = vmatprep.subr.mxu1 %v1400_v15  ;;  %v1321_v12 = vld [vmem:[#allocation10 + $0xa30] sm:$0xff]  ;;  %v1058_v15 = vld [vmem:[#allocation10 + $0x1f8] sm:$0xff] }
 0x2c7   :  { %1964 = vmatpush2.msra.mxu0 %v1143_v16  ;;  %2053 = vmatpush2.msra.mxu1 %v1399_v17  ;;  %v1314_v16 = vld [vmem:[#allocation10 + $0x9f8] sm:$0xff]  ;;  %v1057_v17 = vld [vmem:[#allocation10 + $0x1f0] sm:$0xff] }
 0x2c8   :  { %1965 = vmatprep.subr.mxu0 %v1136_v39  ;;  %2054 = vmatprep.subr.mxu1 %v1392_v19  ;;  %v1313_v39 = vld [vmem:[#allocation10 + $0x9f0] sm:$0xff]  ;;  %v1050_v19 = vld [vmem:[#allocation10 + $0x1b8] sm:$0xff] }
 0x2c9   :  { %1966 = vmatpush2.msra.mxu0 %v1135_v20  ;;  %2055 = vmatpush2.msra.mxu1 %v1391_v21  ;;  %v1306_v20 = vld [vmem:[#allocation10 + $0x9b8] sm:$0xff]  ;;  %v1049_v21 = vld [vmem:[#allocation10 + $0x1b0] sm:$0xff] }
 0x2ca   :  { %1967 = vmatprep.subr.mxu0 %v1128_v18  ;;  %2056 = vmatprep.subr.mxu1 %v1384_v32  ;;  %v1305_v18 = vld [vmem:[#allocation10 + $0x9b0] sm:$0xff]  ;;  %v1298_v32 = vld [vmem:[#allocation10 + $0x978] sm:$0xff] }
 0x2cb   :  { %1968 = vmatpush2.msra.mxu0 %v1127_v35  ;;  %2057 = vmatpush2.msra.mxu1 %v1383_v36  ;;  %v1041_v35 = vld [vmem:[#allocation10 + $0x170] sm:$0xff]  ;;  %v1034_v36 = vld [vmem:[#allocation10 + $0x138] sm:$0xff] }
 0x2cc   :  { %1970 = vmatmul.mubr.f32.vlgmr.msra.gmra.mxu0 %v2813_v61  ;;  %2059 = vmatmul.mubr.f32.vlgmr.msra.gmra.mxu1 %v2815_v1 }
 0x2cd   :  { %2083 = vmatprep.subr.mxu0 %v1122_v47  ;;  %2172 = vmatprep.subr.mxu1 %v1378_v23  ;;  %v1290_v47 = vld [vmem:[#allocation10 + $0x938] sm:$0xff]  ;;  %v1033_v23 = vld [vmem:[#allocation10 + $0x130] sm:$0xff] }
 0x2ce   :  { %1975 = vmatprep.mubr.f32.mxu0 %v2824_v13  ;;  %2064 = vmatprep.mubr.f32.mxu1 %v2826_v14 }
 0x2cf   :  { %2084 = vmatpush1.msra.mxu0 %v1121_v24  ;;  %2173 = vmatpush1.msra.mxu1 %v1377_v22  ;;  %v1289_v24 = vld [vmem:[#allocation10 + $0x930] sm:$0xff]  ;;  %v1026_v22 = vld [vmem:[#allocation10 + $0xf8] sm:$0xff] }
 0x2d0   :  { %2085 = vmatprep.subr.mxu0 %v1114_v42  ;;  %2174 = vmatprep.subr.mxu1 %v1370_v43  ;;  %v1282_v42 = vld [vmem:[#allocation10 + $0x8f8] sm:$0xff]  ;;  %v1025_v43 = vld [vmem:[#allocation10 + $0xf0] sm:$0xff] }
 0x2d1   :  { %2086 = vmatpush1.msra.mxu0 %v1113_v44  ;;  %2175 = vmatpush1.msra.mxu1 %v1369_v46  ;;  %v1281_v44 = vld [vmem:[#allocation10 + $0x8f0] sm:$0xff]  ;;  %v1018_v46 = vld [vmem:[#allocation10 + $0xb8] sm:$0xff] }
 0x2d2   :  { %1976 = vmatmul.mubr.f32.gmra.mxu0 %v2830_v33  ;;  %2065 = vmatmul.mubr.f32.gmra.mxu1 %v2835_v41 }
 0x2d3   :  { %2087 = vmatprep.subr.mxu0 %v1106_v48  ;;  %2176 = vmatprep.subr.mxu1 %v1362_v49  ;;  %v1274_v48 = vld [vmem:[#allocation10 + $0x8b8] sm:$0xff]  ;;  %v1017_v49 = vld [vmem:[#allocation10 + $0xb0] sm:$0xff] }
 0x2d4   :  { %1981 = vmatprep.mubr.f32.mxu0 %v2840_v45  ;;  %2070 = vmatprep.mubr.f32.mxu1 %v2845_v51 }
 0x2d5   :  { %2088 = vmatpush1.msra.mxu0 %v1105_v50  ;;  %2177 = vmatpush1.msra.mxu1 %v1361_v30  ;;  %v1273_v50 = vld [vmem:[#allocation10 + $0x8b0] sm:$0xff]  ;;  %v1010_v30 = vld [vmem:[#allocation10 + $0x78] sm:$0xff] }
 0x2d6   :  { %2089 = vmatprep.subr.mxu0 %v1098_v52  ;;  %2178 = vmatprep.subr.mxu1 %v1354_v53  ;;  %v1266_v52 = vld [vmem:[#allocation10 + $0x878] sm:$0xff]  ;;  %v1009_v53 = vld [vmem:[#allocation10 + $0x70] sm:$0xff] }
 0x2d7   :  { %2090 = vmatpush1.msra.mxu0 %v1097_v54  ;;  %2179 = vmatpush1.msra.mxu1 %v1353_v31  ;;  %v1265_v54 = vld [vmem:[#allocation10 + $0x870] sm:$0xff]  ;;  %v1002_v31 = vld [vmem:[#allocation10 + $0x38] sm:$0xff] }
 0x2d8   :  { %1982 = vmatmul.mubr.f32.gmra.mxu0 %v2852_v60  ;;  %2071 = vmatmul.mubr.f32.gmra.mxu1 %v2855_v63 }
 0x2d9   :  { %2091 = vmatprep.subr.mxu0 %v1090_v55  ;;  %2180 = vmatprep.subr.mxu1 %v1346_v58  ;;  %v1258_v55 = vld [vmem:[#allocation10 + $0x838] sm:$0xff]  ;;  %v1001_v58 = vld [vmem:[#allocation10 + $0x30] sm:$0xff] }
 0x2da   :  { %1987 = vmatprep.mubr.f32.mxu0 %v2859_v0  ;;  %2076 = vmatprep.mubr.f32.mxu1 %v2863_v4 }
 0x2db   :  { %2092 = vmatpush1.msra.mxu0 %v1089_v62  ;;  %2181 = vmatpush1.msra.mxu1 %v1345_v25  ;;  %v1257_v62 = vld [vmem:[#allocation10 + $0x830] sm:$0xff]  ;;  %v1250_v25 = vld [vmem:[#allocation10 + $0x7f8] sm:$0xff] }
 0x2dc   :  { %2093 = vmatprep.subr.mxu0 %v1082_v37  ;;  %2182 = vmatprep.subr.mxu1 %v1338_v59  ;;  %v1506_v37 = vld [vmem:[#allocation10 + $0xff8] sm:$0xff]  ;;  %v1249_v59 = vld [vmem:[#allocation10 + $0x7f0] sm:$0xff] }
 0x2dd   :  { %2094 = vmatpush1.msra.mxu0 %v1081_v40  ;;  %2183 = vmatpush1.msra.mxu1 %v1337_v2  ;;  %v1505_v40 = vld [vmem:[#allocation10 + $0xff0] sm:$0xff]  ;;  %v1242_v2 = vld [vmem:[#allocation10 + $0x7b8] sm:$0xff] }
 0x2de   :  { %1988 = vmatmul.mubr.f32.gmra.mxu0 %v2866_v8  ;;  %2077 = vmatmul.mubr.f32.gmra.mxu1 %v2869_v10 }
 0x2df   :  { %2095 = vmatprep.subr.mxu0 %v1074_v3  ;;  %2184 = vmatprep.subr.mxu1 %v1330_v5  ;;  %v1498_v3 = vld [vmem:[#allocation10 + $0xfb8] sm:$0xff]  ;;  %v1241_v5 = vld [vmem:[#allocation10 + $0x7b0] sm:$0xff] }
 0x2e0   :  { %2096 = vmatpush1.msra.mxu0 %v1073_v6  ;;  %2147 = vmatprep.mubr.f32.mxu0 %v2809_v56  ;;  %v1042_v56 = vld [vmem:[#allocation10 + $0x178] sm:$0xff]  ;;  %v1497_v6 = vld [vmem:[#allocation10 + $0xfb0] sm:$0xff] }
 0x2e1   :  { %2185 = vmatpush1.msra.mxu1 %v1329_v7  ;;  %2236 = vmatprep.mubr.f32.mxu1 %v2811_v57  ;;  %v1297_v57 = vld [vmem:[#allocation10 + $0x970] sm:$0xff]  ;;  %v1234_v7 = vld [vmem:[#allocation10 + $0x778] sm:$0xff] }
 0x2e2   :  { %2097 = vmatprep.subr.mxu0 %v1066_v9  ;;  %2186 = vmatprep.subr.mxu1 %v1322_v34  ;;  %v1490_v9 = vld [vmem:[#allocation10 + $0xf78] sm:$0xff]  ;;  %v1233_v34 = vld [vmem:[#allocation10 + $0x770] sm:$0xff] }
 0x2e3   :  { %2098 = vmatpush1.msra.mxu0 %v1065_v11  ;;  %2187 = vmatpush1.msra.mxu1 %v1321_v12  ;;  %v1489_v11 = vld [vmem:[#allocation10 + $0xf70] sm:$0xff]  ;;  %v1226_v12 = vld [vmem:[#allocation10 + $0x738] sm:$0xff] }
 0x2e4   :  { %2099 = vmatprep.subr.mxu0 %v1058_v15  ;;  %2188 = vmatprep.subr.mxu1 %v1314_v16  ;;  %v2908_v15 = vld [vmem:[#allocation12] sm:$0xff]  ;;  %v1482_v16 = vld [vmem:[#allocation10 + $0xf38] sm:$0xff] }
 0x2e5   :  { %2100 = vmatpush1.msra.mxu0 %v1057_v17  ;;  %2189 = vmatpush1.msra.mxu1 %v1313_v39  ;;  %v1225_v17 = vld [vmem:[#allocation10 + $0x730] sm:$0xff] }
 0x2e6   :  { %2101 = vmatprep.subr.mxu0 %v1050_v19  ;;  %2190 = vmatprep.subr.mxu1 %v1306_v20  ;;  %v1481_v39 = vld [vmem:[#allocation10 + $0xf30] sm:$0xff]  ;;  %v1218_v19 = vld [vmem:[#allocation10 + $0x6f8] sm:$0xff] }
 0x2e7   :  { %2102 = vmatpush1.msra.mxu0 %v1049_v21  ;;  %2191 = vmatpush1.msra.mxu1 %v1305_v18  ;;  %v1474_v20 = vld [vmem:[#allocation10 + $0xef8] sm:$0xff]  ;;  %v1217_v21 = vld [vmem:[#allocation10 + $0x6f0] sm:$0xff]  ;;  %v2913_v18 = vrot.slane %v2908_v15, %v945_v26 }
 0x2e8   :  { %2103 = vmatprep.subr.mxu0 %v1042_v56  ;;  %2192 = vmatprep.subr.mxu1 %v1298_v32  ;;  %v1473_v56 = vld [vmem:[#allocation10 + $0xef0] sm:$0xff]  ;;  %v1210_v32 = vld [vmem:[#allocation10 + $0x6b8] sm:$0xff] }
 0x2e9   :  { %2104 = vmatpush1.msra.mxu0 %v1041_v35  ;;  %2193 = vmatpush1.msra.mxu1 %v1297_v57  ;;  %v1466_v35 = vld [vmem:[#allocation10 + $0xeb8] sm:$0xff]  ;;  %v1209_v57 = vld [vmem:[#allocation10 + $0x6b0] sm:$0xff] }
 0x2ea   :  { %2105 = vmatprep.subr.mxu0 %v1034_v36  ;;  %2194 = vmatprep.subr.mxu1 %v1290_v47  ;;  %v2918_v36 = vrot.slane %v2908_v15, %v949_v28  ;;  %v1465_v47 = vld [vmem:[#allocation10 + $0xeb0] sm:$0xff]  ;;  %v1458_v26 = vld [vmem:[#allocation10 + $0xe78] sm:$0xff] }
 0x2eb   :  { %2106 = vmatpush1.msra.mxu0 %v1033_v23  ;;  %2195 = vmatpush1.msra.mxu1 %v1289_v24  ;;  %v1202_v23 = vld [vmem:[#allocation10 + $0x678] sm:$0xff] }
 0x2ec   :  { %2107 = vmatprep.subr.mxu0 %v1026_v22  ;;  %2196 = vmatprep.subr.mxu1 %v1282_v42  ;;  %v1201_v22 = vld [vmem:[#allocation10 + $0x670] sm:$0xff]  ;;  %v1450_v28 = vld [vmem:[#allocation10 + $0xe38] sm:$0xff] }
 0x2ed   :  { %2108 = vmatpush1.msra.mxu0 %v1025_v43  ;;  %2197 = vmatpush1.msra.mxu1 %v1281_v44  ;;  %v1457_v44 = vld [vmem:[#allocation10 + $0xe70] sm:$0xff] }
 0x2ee   :  { %2109 = vmatprep.subr.mxu0 %v1018_v46  ;;  %2198 = vmatprep.subr.mxu1 %v1274_v48  ;;  %v1194_v46 = vld [vmem:[#allocation10 + $0x638] sm:$0xff] }
 0x2ef   :  { %2110 = vmatpush1.msra.mxu0 %v1017_v49  ;;  %2199 = vmatpush1.msra.mxu1 %v1273_v50  ;;  %v1193_v49 = vld [vmem:[#allocation10 + $0x630] sm:$0xff] }
 0x2f0   :  { %2111 = vmatprep.subr.mxu0 %v1010_v30  ;;  %2200 = vmatprep.subr.mxu1 %v1266_v52 }
 0x2f1   :  { %2112 = vmatpush1.msra.mxu0 %v1009_v53  ;;  %2201 = vmatpush1.msra.mxu1 %v1265_v54  ;;  %v1449_v53 = vld [vmem:[#allocation10 + $0xe30] sm:$0xff]  ;;  %v1186_v54 = vld [vmem:[#allocation10 + $0x5f8] sm:$0xff] }
 0x2f2   :  { %2113 = vmatprep.subr.mxu0 %v1002_v31  ;;  %2202 = vmatprep.subr.mxu1 %v1258_v55  ;;  %v1442_v31 = vld [vmem:[#allocation10 + $0xdf8] sm:$0xff]  ;;  %v1185_v55 = vld [vmem:[#allocation10 + $0x5f0] sm:$0xff] }
 0x2f3   :  { %2114 = vmatpush1.msra.mxu0 %v1001_v58  ;;  %2203 = vmatpush1.msra.mxu1 %v1257_v62 }
 0x2f4   :  { %2115 = vmatprep.subr.mxu0 %v1250_v25  ;;  %2204 = vmatprep.subr.mxu1 %v1506_v37  ;;  %v1441_v25 = vld [vmem:[#allocation10 + $0xdf0] sm:$0xff]  ;;  %v1178_v37 = vld [vmem:[#allocation10 + $0x5b8] sm:$0xff] }
 0x2f5   :  { %2116 = vmatpush2.msra.mxu0 %v1249_v59  ;;  %2205 = vmatpush2.msra.mxu1 %v1505_v40  ;;  %v1434_v40 = vld [vmem:[#allocation10 + $0xdb8] sm:$0xff] }
 0x2f6   :  { %2117 = vmatprep.subr.mxu0 %v1242_v2  ;;  %2206 = vmatprep.subr.mxu1 %v1498_v3  ;;  %v1177_v2 = vld [vmem:[#allocation10 + $0x5b0] sm:$0xff] }
 0x2f7   :  { %2118 = vmatpush2.msra.mxu0 %v1241_v5  ;;  %2207 = vmatpush2.msra.mxu1 %v1497_v6 }
 0x2f8   :  { %2119 = vmatprep.subr.mxu0 %v1234_v7  ;;  %2208 = vmatprep.subr.mxu1 %v1490_v9  ;;  %v1433_v7 = vld [vmem:[#allocation10 + $0xdb0] sm:$0xff]  ;;  %v1170_v9 = vld [vmem:[#allocation10 + $0x578] sm:$0xff] }
 0x2f9   :  { %2120 = vmatpush2.msra.mxu0 %v1233_v34  ;;  %2209 = vmatpush2.msra.mxu1 %v1489_v11  ;;  %v1426_v11 = vld [vmem:[#allocation10 + $0xd78] sm:$0xff] }
 0x2fa   :  { %2121 = vmatprep.subr.mxu0 %v1226_v12  ;;  %2210 = vmatprep.subr.mxu1 %v1482_v16  ;;  %v1169_v12 = vld [vmem:[#allocation10 + $0x570] sm:$0xff] }
 0x2fb   :  { %2122 = vmatpush2.msra.mxu0 %v1225_v17  ;;  %2211 = vmatpush2.msra.mxu1 %v1481_v39 }
 0x2fc   :  { %2123 = vmatprep.subr.mxu0 %v1218_v19  ;;  %2212 = vmatprep.subr.mxu1 %v1474_v20  ;;  %v1425_v19 = vld [vmem:[#allocation10 + $0xd70] sm:$0xff]  ;;  %v1162_v20 = vld [vmem:[#allocation10 + $0x538] sm:$0xff] }
 0x2fd   :  { %2124 = vmatpush2.msra.mxu0 %v1217_v21  ;;  %v1615_v24 = vpop.f32.mrf.mxu0  ;;  %2213 = vmatpush2.msra.mxu1 %v1473_v56  ;;  %v1704_v43 = vpop.f32.mrf.mxu1  ;;  %v1418_v21 = vld [vmem:[#allocation10 + $0xd38] sm:$0xff]  ;;  %v1161_v56 = vld [vmem:[#allocation10 + $0x530] sm:$0xff] }
 0x2fe   :  { %2125 = vmatprep.subr.mxu0 %v1210_v32  ;;  %v1616_v42 = vadd.f32 %v1615_v24, %v2913_v18  ;;  %2214 = vmatprep.subr.mxu1 %v1466_v35  ;;  %v1410_v24 = vld [vmem:[#allocation10 + $0xcf8] sm:$0xff] }
 0x2ff   :  { %2126 = vmatpush2.msra.mxu0 %v1209_v57  ;;  %v1617_v48 = vpop.f32.mrf.mxu0  ;;  %2215 = vmatpush2.msra.mxu1 %v1465_v47  ;;  %v1706_v52 = vpop.f32.mrf.mxu1  ;;  %v1417_v57 = vld [vmem:[#allocation10 + $0xd30] sm:$0xff]  ;;  %v1154_v47 = vld [vmem:[#allocation10 + $0x4f8] sm:$0xff] }
 0x300   :  { %2127 = vmatprep.subr.mxu0 %v1202_v23  ;;  %v1705_v50 = vadd.f32 %v1704_v43, %v1616_v42  ;;  %v1618_v30 = vadd.f32 %v1617_v48, %v2918_v36  ;;  %2216 = vmatprep.subr.mxu1 %v1458_v26  ;;  %v1153_v26 = vld [vmem:[#allocation10 + $0x4f0] sm:$0xff] }
 0x301   :  { %2128 = vmatpush2.msra.mxu0 %v1201_v22  ;;  %2217 = vmatpush2.msra.mxu1 %v1457_v44  ;;  %v1409_v44 = vld [vmem:[#allocation10 + $0xcf0] sm:$0xff] }
 0x302   :  { %2129 = vmatprep.subr.mxu0 %v1194_v46  ;;  %v2261_v58 = vmax.f32 %v1705_v50, 0.0  ;;  %v1707_v62 = vadd.f32 %v1706_v52, %v1618_v30  ;;  %2218 = vmatprep.subr.mxu1 %v1450_v28  ;;  %v1146_v46 = vld [vmem:[#allocation10 + $0x4b8] sm:$0xff] }
 0x303   :  { %2130 = vmatpush2.msra.mxu0 %v1193_v49  ;;  %v1621_v59 = vpop.f32.mrf.mxu0  ;;  %2219 = vmatpush2.msra.mxu1 %v1449_v53  ;;  %v1710_v6 = vpop.f32.mrf.mxu1  ;;  %v1402_v28 = vld [vmem:[#allocation10 + $0xcb8] sm:$0xff]  ;;  %v1145_v49 = vld [vmem:[#allocation10 + $0x4b0] sm:$0xff] }
 0x304   :  { %2131 = vmatprep.subr.mxu0 %v1186_v54  ;;  %2293 = vst [vmem:[%s3060_s8] sm:$0xff] %v2261_v58  ;;  %v2262_v3 = vmax.f32 %v1707_v62, 0.0  ;;  %v1622_v5 = vadd.f32 %v1621_v59, %v2913_v18  ;;  %2220 = vmatprep.subr.mxu1 %v1442_v31  ;;  %v1401_v53 = vld [vmem:[#allocation10 + $0xcb0] sm:$0xff]  ;;  %v1138_v54 = vld [vmem:[#allocation10 + $0x478] sm:$0xff] }
 0x305   :  { %2132 = vmatpush2.msra.mxu0 %v1185_v55  ;;  %v1623_v34 = vpop.f32.mrf.mxu0  ;;  %2221 = vmatpush2.msra.mxu1 %v1441_v25  ;;  %v1712_v39 = vpop.f32.mrf.mxu1  ;;  %v1394_v31 = vld [vmem:[#allocation10 + $0xc78] sm:$0xff]  ;;  %v1137_v55 = vld [vmem:[#allocation10 + $0x470] sm:$0xff] }
 0x306   :  { %2133 = vmatprep.subr.mxu0 %v1178_v37  ;;  %2294 = vst [vmem:[%s3060_s8 + $0x8] sm:$0xff] %v2262_v3  ;;  %v1711_v16 = vadd.f32 %v1710_v6, %v1622_v5  ;;  %v1624_v17 = vadd.f32 %v1623_v34, %v2918_v36  ;;  %2222 = vmatprep.subr.mxu1 %v1434_v40  ;;  %v1393_v25 = vld [vmem:[#allocation10 + $0xc70] sm:$0xff]  ;;  %v1130_v37 = vld [vmem:[#allocation10 + $0x438] sm:$0xff] }
 0x307   :  { %2134 = vmatpush2.msra.mxu0 %v1177_v2  ;;  %2223 = vmatpush2.msra.mxu1 %v1433_v7  ;;  %v1386_v40 = vld [vmem:[#allocation10 + $0xc38] sm:$0xff]  ;;  %v1129_v2 = vld [vmem:[#allocation10 + $0x430] sm:$0xff] }
 0x308   :  { %2135 = vmatprep.subr.mxu0 %v1170_v9  ;;  %v2269_v32 = vmax.f32 %v1711_v16, 0.0  ;;  %v1713_v35 = vadd.f32 %v1712_v39, %v1624_v17  ;;  %2224 = vmatprep.subr.mxu1 %v1426_v11  ;;  %v1385_v7 = vld [vmem:[#allocation10 + $0xc30] sm:$0xff] }
 0x309   :  { %2136 = vmatpush2.msra.mxu0 %v1169_v12  ;;  %v1627_v23 = vpop.f32.mrf.mxu0  ;;  %2225 = vmatpush2.msra.mxu1 %v1425_v19  ;;  %v1716_v43 = vpop.f32.mrf.mxu1 }
 0x30a   :  { %2137 = vmatprep.subr.mxu0 %v1162_v20  ;;  %2301 = vst [vmem:[%s3060_s8 + $0x40] sm:$0xff] %v2269_v32  ;;  %v2270_v22 = vmax.f32 %v1713_v35, 0.0  ;;  %v1628_v42 = vadd.f32 %v1627_v23, %v2913_v18  ;;  %2226 = vmatprep.subr.mxu1 %v1418_v21 }
 0x30b   :  { %2138 = vmatpush2.msra.mxu0 %v1161_v56  ;;  %v1629_v48 = vpop.f32.mrf.mxu0  ;;  %2227 = vmatpush2.msra.mxu1 %v1417_v57  ;;  %v1718_v52 = vpop.f32.mrf.mxu1 }
 0x30c   :  { %2139 = vmatprep.subr.mxu0 %v1154_v47  ;;  %2302 = vst [vmem:[%s3060_s8 + $0x48] sm:$0xff] %v2270_v22  ;;  %v1717_v50 = vadd.f32 %v1716_v43, %v1628_v42  ;;  %v1630_v30 = vadd.f32 %v1629_v48, %v2918_v36  ;;  %2228 = vmatprep.subr.mxu1 %v1410_v24 }
 0x30d   :  { %2140 = vmatpush2.msra.mxu0 %v1153_v26  ;;  %2229 = vmatpush2.msra.mxu1 %v1409_v44 }
 0x30e   :  { %2141 = vmatprep.subr.mxu0 %v1146_v46  ;;  %v2277_v58 = vmax.f32 %v1717_v50, 0.0  ;;  %v1719_v62 = vadd.f32 %v1718_v52, %v1630_v30  ;;  %2230 = vmatprep.subr.mxu1 %v1402_v28 }
 0x30f   :  { %2142 = vmatpush2.msra.mxu0 %v1145_v49  ;;  %v1633_v59 = vpop.f32.mrf.mxu0  ;;  %2231 = vmatpush2.msra.mxu1 %v1401_v53  ;;  %v1722_v6 = vpop.f32.mrf.mxu1 }
 0x310   :  { %2143 = vmatprep.subr.mxu0 %v1138_v54  ;;  %2309 = vst [vmem:[%s3060_s8 + $0x80] sm:$0xff] %v2277_v58  ;;  %v2278_v3 = vmax.f32 %v1719_v62, 0.0  ;;  %v1634_v5 = vadd.f32 %v1633_v59, %v2913_v18  ;;  %2232 = vmatprep.subr.mxu1 %v1394_v31  ;;  %v1527_v31 = vsub.s32 4, %v2724_v38 }
 0x311   :  { %2144 = vmatpush2.msra.mxu0 %v1137_v55  ;;  %v1635_v9 = vpop.f32.mrf.mxu0  ;;  %2233 = vmatpush2.msra.mxu1 %v1393_v25  ;;  %v1724_v12 = vpop.f32.mrf.mxu1  ;;  %v1531_v55 = vsub.s32 5, %v2724_v38 }
 0x312   :  { %2145 = vmatprep.subr.mxu0 %v1130_v37  ;;  %2310 = vst [vmem:[%s3060_s8 + $0x88] sm:$0xff] %v2278_v3  ;;  %v1723_v34 = vadd.f32 %v1722_v6, %v1634_v5  ;;  %v1636_v11 = vadd.f32 %v1635_v9, %v2918_v36  ;;  %2234 = vmatprep.subr.mxu1 %v1386_v40 }
 0x313   :  { %2146 = vmatpush2.msra.mxu0 %v1129_v2  ;;  %2235 = vmatpush2.msra.mxu1 %v1385_v7  ;;  %v1528_v58 = vrot.slane %v2908_v15, %v1527_v31  ;;  %v1532_v62 = vrot.slane %v2908_v15, %v1531_v55 }
 0x314   :  { %2148 = vmatmul.mubr.f32.vlgmr.msra.gmra.mxu0 %v2813_v61  ;;  %v2285_v18 = vmax.f32 %v1723_v34, 0.0  ;;  %v1725_v16 = vadd.f32 %v1724_v12, %v1636_v11  ;;  %2237 = vmatmul.mubr.f32.vlgmr.msra.gmra.mxu1 %v2815_v1  ;;  %v1520_v61 = vrot.slane %v2908_v15, %v953_v27  ;;  %v1524_v1 = vrot.slane %v2908_v15, %v957_v29 }
 0x315   :  { %2153 = vmatprep.mubr.f32.mxu0 %v2824_v13  ;;  %2242 = vmatprep.mubr.f32.mxu1 %v2826_v14 }
 0x316   :  { %2317 = vst [vmem:[%s3060_s8 + $0xc0] sm:$0xff] %v2285_v18  ;;  %v2286_v17 = vmax.f32 %v1725_v16, 0.0 }
 0x318   :  { %2154 = vmatmul.mubr.f32.gmra.mxu0 %v2830_v33  ;;  %2318 = vst [vmem:[%s3060_s8 + $0xc8] sm:$0xff] %v2286_v17  ;;  %2243 = vmatmul.mubr.f32.gmra.mxu1 %v2835_v41 }
 0x319   :  { %2159 = vmatprep.mubr.f32.mxu0 %v2840_v45  ;;  %2248 = vmatprep.mubr.f32.mxu1 %v2845_v51 }
 0x31c   :  { %2160 = vmatmul.mubr.f32.gmra.mxu0 %v2852_v60  ;;  %2249 = vmatmul.mubr.f32.gmra.mxu1 %v2855_v63 }
 0x31d   :  { %2165 = vmatprep.mubr.f32.mxu0 %v2859_v0  ;;  %2254 = vmatprep.mubr.f32.mxu1 %v2863_v4 }
 0x320   :  { %2166 = vmatmul.mubr.f32.gmra.mxu0 %v2866_v8  ;;  %2255 = vmatmul.mubr.f32.gmra.mxu1 %v2869_v10 }
 0x344   :  { %v1793_v13 = vpop.f32.mrf.mxu0  ;;  %v1882_v33 = vpop.f32.mrf.mxu1 }
 0x345   :  { %v1794_v14 = vadd.f32 %v1793_v13, %v1520_v61 }
 0x346   :  { %v1795_v41 = vpop.f32.mrf.mxu0  ;;  %v1884_v60 = vpop.f32.mrf.mxu1 }
 0x347   :  { %v1883_v45 = vadd.f32 %v1882_v33, %v1794_v14  ;;  %v1796_v51 = vadd.f32 %v1795_v41, %v1524_v1 }
 0x349   :  { %v2263_v63 = vmax.f32 %v1883_v45, 0.0  ;;  %v1885_v0 = vadd.f32 %v1884_v60, %v1796_v51 }
 0x34a   :  { %v1799_v4 = vpop.f32.mrf.mxu0  ;;  %v1888_v10 = vpop.f32.mrf.mxu1 }
 0x34b   :  { %2295 = vst [vmem:[%s3060_s8 + $0x10] sm:$0xff] %v2263_v63  ;;  %v2264_v8 = vmax.f32 %v1885_v0, 0.0  ;;  %v1800_v27 = vadd.f32 %v1799_v4, %v1520_v61 }
 0x34c   :  { %v1801_v36 = vpop.f32.mrf.mxu0  ;;  %v1890_v19 = vpop.f32.mrf.mxu1 }
 0x34d   :  { %2296 = vst [vmem:[%s3060_s8 + $0x18] sm:$0xff] %v2264_v8  ;;  %v1889_v29 = vadd.f32 %v1888_v10, %v1800_v27  ;;  %v1802_v39 = vadd.f32 %v1801_v36, %v1524_v1 }
 0x34f   :  { %v2271_v20 = vmax.f32 %v1889_v29, 0.0  ;;  %v1891_v21 = vadd.f32 %v1890_v19, %v1802_v39 }
 0x350   :  { %v1805_v56 = vpop.f32.mrf.mxu0  ;;  %v1894_v57 = vpop.f32.mrf.mxu1 }
 0x351   :  { %2303 = vst [vmem:[%s3060_s8 + $0x50] sm:$0xff] %v2271_v20  ;;  %v2272_v32 = vmax.f32 %v1891_v21, 0.0  ;;  %v1806_v35 = vadd.f32 %v1805_v56, %v1520_v61 }
 0x352   :  { %v1807_v47 = vpop.f32.mrf.mxu0  ;;  %v1896_v26 = vpop.f32.mrf.mxu1 }
 0x353   :  { %2304 = vst [vmem:[%s3060_s8 + $0x58] sm:$0xff] %v2272_v32  ;;  %v1895_v23 = vadd.f32 %v1894_v57, %v1806_v35  ;;  %v1808_v24 = vadd.f32 %v1807_v47, %v1524_v1  ;;  %v1535_v57 = vsub.s32 6, %v2724_v38  ;;  %v1539_v47 = vsub.s32 7, %v2724_v38 }
 0x355   :  { %v2279_v22 = vmax.f32 %v1895_v23, 0.0  ;;  %v1897_v42 = vadd.f32 %v1896_v26, %v1808_v24  ;;  %v1536_v23 = vrot.slane %v2908_v15, %v1535_v57  ;;  %v1540_v24 = vrot.slane %v2908_v15, %v1539_v47 }
 0x356   :  { %v1811_v43 = vpop.f32.mrf.mxu0  ;;  %v1900_v48 = vpop.f32.mrf.mxu1 }
 0x357   :  { %2311 = vst [vmem:[%s3060_s8 + $0x90] sm:$0xff] %v2279_v22  ;;  %v2280_v44 = vmax.f32 %v1897_v42, 0.0  ;;  %v1812_v46 = vadd.f32 %v1811_v43, %v1520_v61 }
 0x358   :  { %v1813_v28 = vpop.f32.mrf.mxu0  ;;  %v1902_v30 = vpop.f32.mrf.mxu1 }
 0x359   :  { %2312 = vst [vmem:[%s3060_s8 + $0x98] sm:$0xff] %v2280_v44  ;;  %v1901_v49 = vadd.f32 %v1900_v48, %v1812_v46  ;;  %v1814_v50 = vadd.f32 %v1813_v28, %v1524_v1 }
 0x35b   :  { %v2287_v52 = vmax.f32 %v1901_v49, 0.0  ;;  %v1903_v53 = vadd.f32 %v1902_v30, %v1814_v50 }
 0x35d   :  { %2319 = vst [vmem:[%s3060_s8 + $0xd0] sm:$0xff] %v2287_v52  ;;  %v2288_v54 = vmax.f32 %v1903_v53, 0.0 }
 0x35f   :  { %2320 = vst [vmem:[%s3060_s8 + $0xd8] sm:$0xff] %v2288_v54 }
 0x38c   :  { %v1971_v25 = vpop.f32.mrf.mxu0  ;;  %v2060_v59 = vpop.f32.mrf.mxu1 }
 0x38d   :  { %v1972_v37 = vadd.f32 %v1971_v25, %v1528_v58 }
 0x38e   :  { %v1973_v40 = vpop.f32.mrf.mxu0  ;;  %v2062_v5 = vpop.f32.mrf.mxu1 }
 0x38f   :  { %v2061_v2 = vadd.f32 %v2060_v59, %v1972_v37  ;;  %v1974_v3 = vadd.f32 %v1973_v40, %v1532_v62 }
 0x391   :  { %v2265_v6 = vmax.f32 %v2061_v2, 0.0  ;;  %v2063_v7 = vadd.f32 %v2062_v5, %v1974_v3 }
 0x392   :  { %v1977_v9 = vpop.f32.mrf.mxu0  ;;  %v2066_v12 = vpop.f32.mrf.mxu1 }
 0x393   :  { %2297 = vst [vmem:[%s3060_s8 + $0x20] sm:$0xff] %v2265_v6  ;;  %v2266_v34 = vmax.f32 %v2063_v7, 0.0  ;;  %v1978_v11 = vadd.f32 %v1977_v9, %v1528_v58 }
 0x394   :  { %v1979_v18 = vpop.f32.mrf.mxu0  ;;  %v2068_v61 = vpop.f32.mrf.mxu1 }
 0x395   :  { %2298 = vst [vmem:[%s3060_s8 + $0x28] sm:$0xff] %v2266_v34  ;;  %v2067_v16 = vadd.f32 %v2066_v12, %v1978_v11  ;;  %v1980_v17 = vadd.f32 %v1979_v18, %v1532_v62 }
 0x397   :  { %v2273_v1 = vmax.f32 %v2067_v16, 0.0  ;;  %v2069_v13 = vadd.f32 %v2068_v61, %v1980_v17 }
 0x398   :  { %v1983_v14 = vpop.f32.mrf.mxu0  ;;  %v2072_v45 = vpop.f32.mrf.mxu1 }
 0x399   :  { %2305 = vst [vmem:[%s3060_s8 + $0x60] sm:$0xff] %v2273_v1  ;;  %v2274_v33 = vmax.f32 %v2069_v13, 0.0  ;;  %v1984_v41 = vadd.f32 %v1983_v14, %v1528_v58 }
 0x39a   :  { %v1985_v51 = vpop.f32.mrf.mxu0  ;;  %v2074_v0 = vpop.f32.mrf.mxu1 }
 0x39b   :  { %2306 = vst [vmem:[%s3060_s8 + $0x68] sm:$0xff] %v2274_v33  ;;  %v2073_v60 = vadd.f32 %v2072_v45, %v1984_v41  ;;  %v1986_v63 = vadd.f32 %v1985_v51, %v1532_v62 }
 0x39d   :  { %v2281_v4 = vmax.f32 %v2073_v60, 0.0  ;;  %v2075_v8 = vadd.f32 %v2074_v0, %v1986_v63 }
 0x39e   :  { %v1989_v27 = vpop.f32.mrf.mxu0  ;;  %v2078_v29 = vpop.f32.mrf.mxu1 }
 0x39f   :  { %2313 = vst [vmem:[%s3060_s8 + $0xa0] sm:$0xff] %v2281_v4  ;;  %v2282_v10 = vmax.f32 %v2075_v8, 0.0  ;;  %v1990_v36 = vadd.f32 %v1989_v27, %v1528_v58 }
 0x3a0   :  { %v1991_v39 = vpop.f32.mrf.mxu0  ;;  %v2080_v21 = vpop.f32.mrf.mxu1 }
 0x3a1   :  { %2314 = vst [vmem:[%s3060_s8 + $0xa8] sm:$0xff] %v2282_v10  ;;  %v2079_v19 = vadd.f32 %v2078_v29, %v1990_v36  ;;  %v1992_v20 = vadd.f32 %v1991_v39, %v1532_v62 }
 0x3a3   :  { %v2289_v56 = vmax.f32 %v2079_v19, 0.0  ;;  %v2081_v32 = vadd.f32 %v2080_v21, %v1992_v20 }
 0x3a5   :  { %2321 = vst [vmem:[%s3060_s8 + $0xe0] sm:$0xff] %v2289_v56  ;;  %v2290_v35 = vmax.f32 %v2081_v32, 0.0 }
 0x3a7   :  { %2322 = vst [vmem:[%s3060_s8 + $0xe8] sm:$0xff] %v2290_v35 }
 0x3d4   :  { %v2149_v26 = vpop.f32.mrf.mxu0  ;;  %v2238_v42 = vpop.f32.mrf.mxu1 }
 0x3d5   :  { %v2150_v22 = vadd.f32 %v2149_v26, %v1536_v23 }
 0x3d6   :  { %v2151_v43 = vpop.f32.mrf.mxu0  ;;  %v2240_v48 = vpop.f32.mrf.mxu1 }
 0x3d7   :  { %v2239_v44 = vadd.f32 %v2238_v42, %v2150_v22  ;;  %v2152_v46 = vadd.f32 %v2151_v43, %v1540_v24 }
 0x3d8   :  { %v2155_v28 = vpop.f32.mrf.mxu0  ;;  %v2244_v52 = vpop.f32.mrf.mxu1 }
 0x3d9   :  { %v2267_v49 = vmax.f32 %v2239_v44, 0.0  ;;  %v2241_v50 = vadd.f32 %v2240_v48, %v2152_v46  ;;  %v2156_v30 = vadd.f32 %v2155_v28, %v1536_v23 }
 0x3da   :  { %v2157_v53 = vpop.f32.mrf.mxu0  ;;  %v2246_v31 = vpop.f32.mrf.mxu1 }
 0x3db   :  { %2299 = vst [vmem:[%s3060_s8 + $0x30] sm:$0xff] %v2267_v49  ;;  %v2268_v38 = vmax.f32 %v2241_v50, 0.0  ;;  %v2245_v54 = vadd.f32 %v2244_v52, %v2156_v30  ;;  %v2158_v15 = vadd.f32 %v2157_v53, %v1540_v24 }
 0x3dc   :  { %v2161_v55 = vpop.f32.mrf.mxu0  ;;  %v2250_v37 = vpop.f32.mrf.mxu1 }
 0x3dd   :  { %2300 = vst [vmem:[%s3060_s8 + $0x38] sm:$0xff] %v2268_v38  ;;  %v2275_v58 = vmax.f32 %v2245_v54, 0.0  ;;  %v2247_v62 = vadd.f32 %v2246_v31, %v2158_v15  ;;  %v2162_v25 = vadd.f32 %v2161_v55, %v1536_v23 }
 0x3de   :  { %v2163_v59 = vpop.f32.mrf.mxu0  ;;  %v2252_v5 = vpop.f32.mrf.mxu1 }
 0x3df   :  { %2307 = vst [vmem:[%s3060_s8 + $0x70] sm:$0xff] %v2275_v58  ;;  %v2276_v40 = vmax.f32 %v2247_v62, 0.0  ;;  %v2251_v2 = vadd.f32 %v2250_v37, %v2162_v25  ;;  %v2164_v3 = vadd.f32 %v2163_v59, %v1540_v24 }
 0x3e0   :  { %v2167_v6 = vpop.f32.mrf.mxu0  ;;  %v2256_v11 = vpop.f32.mrf.mxu1 }
 0x3e1   :  { %2308 = vst [vmem:[%s3060_s8 + $0x78] sm:$0xff] %v2276_v40  ;;  %v2283_v7 = vmax.f32 %v2251_v2, 0.0  ;;  %v2253_v9 = vadd.f32 %v2252_v5, %v2164_v3  ;;  %v2168_v34 = vadd.f32 %v2167_v6, %v1536_v23 }
 0x3e2   :  { %v2169_v12 = vpop.f32.mrf.mxu0  ;;  %v2258_v61 = vpop.f32.mrf.mxu1 }
 0x3e3   :  { %2315 = vst [vmem:[%s3060_s8 + $0xb0] sm:$0xff] %v2283_v7  ;;  %v2284_v18 = vmax.f32 %v2253_v9, 0.0  ;;  %v2257_v16 = vadd.f32 %v2256_v11, %v2168_v34  ;;  %v2170_v17 = vadd.f32 %v2169_v12, %v1540_v24 }
 0x3e5   :  { %2316 = vst [vmem:[%s3060_s8 + $0xb8] sm:$0xff] %v2284_v18  ;;  %v2291_v1 = vmax.f32 %v2257_v16, 0.0  ;;  %v2259_v13 = vadd.f32 %v2258_v61, %v2170_v17 }
 0x3e7   :  { %2323 = vst [vmem:[%s3060_s8 + $0xf0] sm:$0xff] %v2291_v1  ;;  %v2292_v14 = vmax.f32 %v2259_v13, 0.0 }
 0x3e9   :  { %2324 = vst [vmem:[%s3060_s8 + $0xf8] sm:$0xff] %v2292_v14 }
 0x3ea   :  { %2329 = vsyncpa [#allocation3], 1 }
 0x3eb   :  { %2330 = vsyncpa [#allocation5], 1 }
 0x3ec   :  { %2331 = vsyncpa [#allocation8], 1 }
 0x3ed   :  { %2332 = vsyncpa [#allocation11], 1 }

</bundles_post_ra>
